<compile_context>
chip_gen: v7x
topology: tpu7x:2x2x1
jax: 0.10.0
libtpu: 0.0.40
codegen_flags: <defaults>
</compile_context>

<pallas_src>
import functools
import math

import jax
import jax.numpy as jnp
from jax.experimental import pallas as pl
from jax.experimental.pallas import tpu as pltpu

_EPS = 1e-5


def _bf16_mm(a, b):
    """(M,K)@(K,N) on the MXU: bf16 inputs, f32 accumulation."""
    return jax.lax.dot_general(
        a.astype(jnp.bfloat16), b.astype(jnp.bfloat16),
        (((1,), (0,)), ((), ())),
        preferred_element_type=jnp.float32)


def _bf16_einsum(spec, a, b):
    """Batched matmul on the MXU: bf16 inputs, f32 accumulation."""
    return jnp.einsum(spec, a.astype(jnp.bfloat16), b.astype(jnp.bfloat16),
                      preferred_element_type=jnp.float32)


def _layer_norm(x, g, b):
    mu = jnp.mean(x, axis=-1, keepdims=True)
    xc = x - mu
    var = jnp.mean(xc * xc, axis=-1, keepdims=True)
    return xc * jax.lax.rsqrt(var + _EPS) * g + b


# ---------------------------------------------------------------------------
# Fused whole-network kernel.  Grid = (batch, layer); the activation slab is
# carried across the layer axis in VMEM scratch.
# ---------------------------------------------------------------------------
def _transformer_kernel(x_ref, bias_ref, perm_ref,
                        g1_ref, be1_ref, wq_ref, wk_ref, wv_ref, wo_ref,
                        g2_ref, be2_ref, w1_ref, fb1_ref, w2_ref, fb2_ref,
                        o_ref, x_scr, *, n_head, num_layers, n_nodes, hidden):
    layer = pl.program_id(1)
    N, H = n_nodes, hidden
    d = H // n_head
    scale = 1.0 / math.sqrt(d)

    # Load this batch element's edge features into the carried VMEM slab.
    @pl.when(layer == 0)
    def _():
        x_scr[...] = x_ref[...].reshape(N * N, H)

    x = x_scr[...]                      # (N*N, H), row r = n1 * N + n2
    perm = perm_ref[...]                # (N*N, N*N) node-axis swap (involution)
    bias = bias_ref[...]                # (N, N, N) [i, j, k], 0 / -inf

    # ---------------- SelfAttention ----------------
    xn = _layer_norm(x, g1_ref[0], be1_ref[0])       # (N*N, H)
    xns = _bf16_mm(perm, xn)                         # node-swapped rows (k*N+i -> i*N+k)

    attn = jnp.zeros((N * N, H), dtype=jnp.float32)
    for h in range(n_head):                          # static, unrolled
        q3 = _bf16_mm(xn, wq_ref[0, h]).reshape(N, N, d)     # [i, j, d]
        k3 = _bf16_mm(xns, wk_ref[0, h]).reshape(N, N, d)    # [i, k, d]
        v3 = _bf16_mm(xns, wv_ref[0, h]).reshape(N, N, d)    # [i, k, d]
        s = _bf16_einsum("ijd,ikd->ijk", q3, k3) * scale + bias
        m = jnp.max(s, axis=-1, keepdims=True)
        p = jnp.exp(s - m)
        p = p * pl.reciprocal(jnp.sum(p, axis=-1, keepdims=True), approx=True)
        oh = _bf16_einsum("ijk,ikd->ijd", p, v3).reshape(N * N, d)   # rows i*N+j
        # Swap rows back to (j, i) order and apply this head's W_o slice.
        attn = attn + _bf16_mm(_bf16_mm(perm, oh), wo_ref[0, h])
    x = x + attn                                     # attention residual

    # ---------------- FeedForward ----------------
    xn2 = _layer_norm(x, g2_ref[0], be2_ref[0])
    h1 = jnp.maximum(_bf16_mm(xn2, w1_ref[0]) + fb1_ref[0], 0.0)     # (N*N, 4H)
    x = x + (_bf16_mm(h1, w2_ref[0]) + fb2_ref[0])   # feed-forward residual

    x_scr[...] = x

    @pl.when(layer == num_layers - 1)
    def _():
        o_ref[...] = x.reshape(o_ref.shape)


# ---------------------------------------------------------------------------
# Wrapper: builds the mask bias / permutation matrix, stacks per-layer weights
# on a leading layer axis and launches the single fused kernel.
# ---------------------------------------------------------------------------
def transformer_forward(x, mask, params, n_head):
    B, N, _, H = x.shape
    L = len(params)
    d = H // n_head
    M = N * N

    # Attention bias from the boolean edge mask.  Matches the torch reference:
    # diagonal (j==k) masked, key-node == target-node (i==k) masked, and —
    # because the reference SDPA uses attn_mask[0] for boolean masks — only
    # batch 0's mask.  Fully-masked rows would NaN exactly as in torch.
    eye = jnp.eye(N, dtype=bool)
    m1 = jnp.where(eye[None], False, mask)                        # (B, N, N)
    am0 = m1[0][None, :, :] & (~eye)[:, None, :]                  # (N, N, N) [i, j, k]
    bias = jnp.where(am0, 0.0, -jnp.inf).astype(jnp.float32)

    # Node-axis swap as a permutation matrix (applied on the otherwise-idle MXU).
    r = jnp.arange(M)
    swap = (r % N) * N + r // N
    perm = (swap[:, None] == r[None, :]).astype(jnp.float32)      # (M, M)

    # Stack per-layer weights along a leading layer axis; split Q/K/V and the
    # output projection per head so the kernel never lane-slices activations.
    def heads_in(w, chunk):        # (H, 3H) -> (n_head, H, d) for q/k/v chunk
        wc = w[:, chunk * H:(chunk + 1) * H]
        return wc.reshape(H, n_head, d).transpose(1, 0, 2)

    wq = jnp.stack([heads_in(p["w_qkv"], 0) for p in params])     # (L, nh, H, d)
    wk = jnp.stack([heads_in(p["w_qkv"], 1) for p in params])
    wv = jnp.stack([heads_in(p["w_qkv"], 2) for p in params])
    wo = jnp.stack([p["w_o"].reshape(n_head, d, H) for p in params])   # (L, nh, d, H)
    g1 = jnp.stack([p["ln1_g"] for p in params])                  # (L, 1, H)
    be1 = jnp.stack([p["ln1_b"] for p in params])
    g2 = jnp.stack([p["ln2_g"] for p in params])
    be2 = jnp.stack([p["ln2_b"] for p in params])
    w1 = jnp.stack([p["w1"] for p in params])                     # (L, H, 4H)
    fb1 = jnp.stack([p["b1"] for p in params])                    # (L, 1, 4H)
    w2 = jnp.stack([p["w2"] for p in params])                     # (L, 4H, H)
    fb2 = jnp.stack([p["b2"] for p in params])                    # (L, 1, H)

    kernel = functools.partial(_transformer_kernel, n_head=n_head,
                               num_layers=L, n_nodes=N, hidden=H)
    lw3 = lambda b, l: (l, 0, 0)        # per-layer rank-3 weights
    lw4 = lambda b, l: (l, 0, 0, 0)     # per-layer rank-4 weights

    return pl.pallas_call(
        kernel,
        out_shape=jax.ShapeDtypeStruct((B, N, N, H), jnp.float32),
        grid_spec=pltpu.PrefetchScalarGridSpec(
            num_scalar_prefetch=0,
            grid=(B, L),
            in_specs=[
                pl.BlockSpec((1, N, N, H), lambda b, l: (b, 0, 0, 0)),   # x
                pl.BlockSpec((N, N, N), lambda b, l: (0, 0, 0)),         # mask bias
                pl.BlockSpec((M, M), lambda b, l: (0, 0)),               # node-swap P
                pl.BlockSpec((1, 1, H), lw3),                            # ln1 gamma
                pl.BlockSpec((1, 1, H), lw3),                            # ln1 beta
                pl.BlockSpec((1, n_head, H, d), lw4),                    # W_q per head
                pl.BlockSpec((1, n_head, H, d), lw4),                    # W_k per head
                pl.BlockSpec((1, n_head, H, d), lw4),                    # W_v per head
                pl.BlockSpec((1, n_head, d, H), lw4),                    # W_o per head
                pl.BlockSpec((1, 1, H), lw3),                            # ln2 gamma
                pl.BlockSpec((1, 1, H), lw3),                            # ln2 beta
                pl.BlockSpec((1, H, 4 * H), lw3),                        # FF W1
                pl.BlockSpec((1, 1, 4 * H), lw3),                        # FF b1
                pl.BlockSpec((1, 4 * H, H), lw3),                        # FF W2
                pl.BlockSpec((1, 1, H), lw3),                            # FF b2
            ],
            out_specs=pl.BlockSpec((1, N, N, H), lambda b, l: (b, 0, 0, 0)),
            scratch_shapes=[pltpu.VMEM((M, H), jnp.float32)],
        ),
        compiler_params=pltpu.CompilerParams(
            dimension_semantics=("parallel", "arbitrary"),
            vmem_limit_bytes=32 * 1024 * 1024,
        ),
    )(x, bias, perm, g1, be1, wq, wk, wv, wo, g2, be2, w1, fb1, w2, fb2)


# ---------------------------------------------------------------------------
# Pure-JAX reference mirroring the PyTorch module (eval mode).  Uses the same
# bf16-input / f32-accumulate matmul convention as the kernel.
# ---------------------------------------------------------------------------
def transformer_ref(x, mask, params, n_head):
    B, N, _, H = x.shape
    d = H // n_head
    eye = jnp.eye(N, dtype=bool)
    for p in params:
        # SelfAttention
        xn = _layer_norm(x, p["ln1_g"][0], p["ln1_b"][0])
        proj = _bf16_einsum("bijh,hk->bijk", xn, p["w_qkv"])
        qc, kc, vc = jnp.split(proj, 3, axis=-1)
        query = qc.reshape(B, N, N, n_head, d).transpose(0, 3, 1, 2, 4)
        key = kc.reshape(B, N, N, n_head, d).transpose(0, 3, 2, 1, 4)
        value = vc.reshape(B, N, N, n_head, d).transpose(0, 3, 2, 1, 4)
        m1 = jnp.where(eye[None], False, mask)
        am = m1[:, None, :, :] & (~eye)[None, :, None, :]        # (B, N, N, N)
        bias = jnp.where(am[0], 0.0, -jnp.inf)                   # attn_mask[0] quirk
        scores = _bf16_einsum("bhijd,bhikd->bhijk", query, key) / math.sqrt(d)
        scores = scores + bias[None, None]
        w = jax.nn.softmax(scores, axis=-1)
        ao = _bf16_einsum("bhijk,bhikd->bhijd", w, value)
        ao = ao.transpose(0, 2, 3, 1, 4)          # permute(0,2,3,1,4)
        ao = ao.transpose(0, 2, 1, 3, 4)          # .transpose(1,2)
        ao = ao.reshape(B, N, N, H)               # .flatten(-2)
        x = x + _bf16_einsum("bijh,hk->bijk", ao, p["w_o"])
        # FeedForward
        sn = _layer_norm(x, p["ln2_g"][0], p["ln2_b"][0])
        h1 = jnp.maximum(
            _bf16_einsum("bijh,hk->bijk", sn, p["w1"]) + p["b1"][0], 0.0)
        x = x + (_bf16_einsum("bijh,hk->bijk", h1, p["w2"]) + p["b2"][0])
    return x


def init_params(key, num_layers, hidden_dim):
    H = hidden_dim
    params = []
    for _ in range(num_layers):
        key, k1, k2, k3, k4, k5, k6, k7, k8, k9, k10 = jax.random.split(key, 11)
        params.append(dict(
            ln1_g=(1.0 + 0.1 * jax.random.normal(k1, (1, H))).astype(jnp.float32),
            ln1_b=(0.1 * jax.random.normal(k2, (1, H))).astype(jnp.float32),
            w_qkv=(jax.random.normal(k3, (H, 3 * H)) / math.sqrt(H)).astype(jnp.float32),
            w_o=(jax.random.normal(k4, (H, H)) / math.sqrt(H)).astype(jnp.float32),
            ln2_g=(1.0 + 0.1 * jax.random.normal(k5, (1, H))).astype(jnp.float32),
            ln2_b=(0.1 * jax.random.normal(k6, (1, H))).astype(jnp.float32),
            w1=(jax.random.normal(k7, (H, 4 * H)) / math.sqrt(H)).astype(jnp.float32),
            b1=(0.1 * jax.random.normal(k8, (1, 4 * H))).astype(jnp.float32),
            w2=(jax.random.normal(k9, (4 * H, H)) / math.sqrt(4 * H)).astype(jnp.float32),
            b2=(0.1 * jax.random.normal(k10, (1, H))).astype(jnp.float32),
        ))
    return params


if __name__ == "__main__":
    # Small shapes: batch=2, num_nodes=8, hidden_dim=32, num_heads=4, 2 layers.
    B, N, H, NUM_HEADS, NUM_LAYERS = 2, 8, 32, 4, 2

    key = jax.random.PRNGKey(0)
    kx, kp = jax.random.split(key)
    x = jax.random.normal(kx, (B, N, N, H), dtype=jnp.float32)

    # Deterministic boolean edge mask, dense enough that no softmax row is
    # fully masked (avoids the NaN the torch reference would also produce).
    jj = jnp.arange(N)[:, None]
    kk = jnp.arange(N)[None, :]
    mask = ((jj + kk + jnp.arange(B)[:, None, None]) % 5) != 0     # (B, N, N) bool

    params = init_params(kp, NUM_LAYERS, H)

    fwd = jax.jit(functools.partial(transformer_forward, n_head=NUM_HEADS))
    out = jax.block_until_ready(fwd(x, mask, params))

    ref = transformer_ref(x, mask, params, NUM_HEADS)
    assert out.shape == (B, N, N, H)
    # Both kernel and reference use bf16-input / f32-accumulate matmuls (the
    # MXU-native path), so agreement is limited by bf16 rounding and the
    # approx softmax reciprocal, not by structure.
    err = float(jnp.max(jnp.abs(out - ref)))
    assert err < 3e-2, f"max abs diff = {err}"

    print("KERNEL_OK")
</pallas_src>

<mosaic_0001>
module attributes {stable_mosaic.version = 11 : i64} {
  func.func @_transformer_kernel(%arg0: i32, %arg1: i32, %arg2: memref<1x8x8x32xf32, #tpu.memory_space<vmem>>, %arg3: memref<8x8x8xf32, #tpu.memory_space<vmem>>, %arg4: memref<64x64xf32, #tpu.memory_space<vmem>>, %arg5: memref<1x1x32xf32, #tpu.memory_space<vmem>>, %arg6: memref<1x1x32xf32, #tpu.memory_space<vmem>>, %arg7: memref<1x4x32x8xf32, #tpu.memory_space<vmem>>, %arg8: memref<1x4x32x8xf32, #tpu.memory_space<vmem>>, %arg9: memref<1x4x32x8xf32, #tpu.memory_space<vmem>>, %arg10: memref<1x4x8x32xf32, #tpu.memory_space<vmem>>, %arg11: memref<1x1x32xf32, #tpu.memory_space<vmem>>, %arg12: memref<1x1x32xf32, #tpu.memory_space<vmem>>, %arg13: memref<1x32x128xf32, #tpu.memory_space<vmem>>, %arg14: memref<1x1x128xf32, #tpu.memory_space<vmem>>, %arg15: memref<1x128x32xf32, #tpu.memory_space<vmem>>, %arg16: memref<1x1x32xf32, #tpu.memory_space<vmem>>, %arg17: memref<1x8x8x32xf32, #tpu.memory_space<vmem>>, %arg18: memref<64x32xf32, #tpu.memory_space<vmem>>) attributes {dimension_semantics = [#tpu.dimension_semantics<parallel>, #tpu.dimension_semantics<arbitrary>], iteration_bounds = array<i64: 2, 2>, scalar_prefetch = 0 : i64, scratch_operands = 1 : i64, tpu.core_type = #tpu.core_type<tc>, window_params = [{transform_indices = @transform_0, window_bounds = array<i64: 1, 8, 8, 32>}, {pipeline_mode = #tpu.pipeline_mode<synchronous>, transform_indices = @transform_1, window_bounds = array<i64: 8, 8, 8>}, {pipeline_mode = #tpu.pipeline_mode<synchronous>, transform_indices = @transform_2, window_bounds = array<i64: 64, 64>}, {transform_indices = @transform_3, window_bounds = array<i64: 1, 1, 32>}, {transform_indices = @transform_4, window_bounds = array<i64: 1, 1, 32>}, {transform_indices = @transform_5, window_bounds = array<i64: 1, 4, 32, 8>}, {transform_indices = @transform_6, window_bounds = array<i64: 1, 4, 32, 8>}, {transform_indices = @transform_7, window_bounds = array<i64: 1, 4, 32, 8>}, {transform_indices = @transform_8, window_bounds = array<i64: 1, 4, 8, 32>}, {transform_indices = @transform_9, window_bounds = array<i64: 1, 1, 32>}, {transform_indices = @transform_10, window_bounds = array<i64: 1, 1, 32>}, {transform_indices = @transform_11, window_bounds = array<i64: 1, 32, 128>}, {transform_indices = @transform_12, window_bounds = array<i64: 1, 1, 128>}, {transform_indices = @transform_13, window_bounds = array<i64: 1, 128, 32>}, {transform_indices = @transform_14, window_bounds = array<i64: 1, 1, 32>}, {transform_indices = @transform_15, window_bounds = array<i64: 1, 8, 8, 32>}]} {
    %c0_i32 = arith.constant 0 : i32
    %0 = arith.cmpi eq, %arg1, %c0_i32 : i32
    %1 = arith.extui %0 : i1 to i32
    %c0_i32_0 = arith.constant 0 : i32
    %2 = arith.cmpi ne, %1, %c0_i32_0 : i32
    scf.if %2 {
      %c0_149 = arith.constant 0 : index
      %c0_150 = arith.constant 0 : index
      %c0_151 = arith.constant 0 : index
      %c0_152 = arith.constant 0 : index
      %272 = vector.load %arg2[%c0_149, %c0_150, %c0_151, %c0_152] : memref<1x8x8x32xf32, #tpu.memory_space<vmem>>, vector<1x8x8x32xf32>
      %273 = vector.shape_cast %272 : vector<1x8x8x32xf32> to vector<64x32xf32>
      %c0_153 = arith.constant 0 : index
      %c0_154 = arith.constant 0 : index
      %274 = vector.load %arg18[%c0_153, %c0_154] : memref<64x32xf32, #tpu.memory_space<vmem>>, vector<64x32xf32>
      tpu.vector_store %arg18[%c0_153, %c0_154], %273 {strides = array<i32>} : memref<64x32xf32, #tpu.memory_space<vmem>>, vector<64x32xf32>,
    } else {
    }
    %c0 = arith.constant 0 : index
    %c0_1 = arith.constant 0 : index
    %3 = vector.load %arg18[%c0, %c0_1] : memref<64x32xf32, #tpu.memory_space<vmem>>, vector<64x32xf32>
    %c0_2 = arith.constant 0 : index
    %c0_3 = arith.constant 0 : index
    %4 = vector.load %arg4[%c0_2, %c0_3] : memref<64x64xf32, #tpu.memory_space<vmem>>, vector<64x64xf32>
    %c0_4 = arith.constant 0 : index
    %c0_5 = arith.constant 0 : index
    %c0_6 = arith.constant 0 : index
    %5 = vector.load %arg3[%c0_4, %c0_5, %c0_6] : memref<8x8x8xf32, #tpu.memory_space<vmem>>, vector<8x8x8xf32>
    %c0_7 = arith.constant 0 : index
    %c0_8 = arith.constant 0 : index
    %c0_9 = arith.constant 0 : index
    %6 = vector.load %arg5[%c0_7, %c0_8, %c0_9] : memref<1x1x32xf32, #tpu.memory_space<vmem>>, vector<1x1x32xf32>
    %7 = vector.shape_cast %6 : vector<1x1x32xf32> to vector<1x32xf32>
    %c0_10 = arith.constant 0 : index
    %c0_11 = arith.constant 0 : index
    %c0_12 = arith.constant 0 : index
    %8 = vector.load %arg6[%c0_10, %c0_11, %c0_12] : memref<1x1x32xf32, #tpu.memory_space<vmem>>, vector<1x1x32xf32>
    %9 = vector.shape_cast %8 : vector<1x1x32xf32> to vector<1x32xf32>
    %cst = arith.constant dense<0.000000e+00> : vector<64xf32>
    %10 = vector.multi_reduction <add>, %3, %cst [1] : vector<64x32xf32> to vector<64xf32>
    %11 = vector.shape_cast %10 : vector<64xf32> to vector<64x1xf32>
    %cst_13 = arith.constant 3.200000e+01 : f32
    %12 = vector.broadcast %cst_13 : f32 to vector<64x1xf32>
    %13 = arith.divf %11, %12 : vector<64x1xf32>
    %14 = vector.broadcast %13 : vector<64x1xf32> to vector<64x32xf32>
    %15 = arith.subf %3, %14 : vector<64x32xf32>
    %16 = arith.mulf %15, %15 : vector<64x32xf32>
    %cst_14 = arith.constant dense<0.000000e+00> : vector<64xf32>
    %17 = vector.multi_reduction <add>, %16, %cst_14 [1] : vector<64x32xf32> to vector<64xf32>
    %18 = vector.shape_cast %17 : vector<64xf32> to vector<64x1xf32>
    %cst_15 = arith.constant 3.200000e+01 : f32
    %19 = vector.broadcast %cst_15 : f32 to vector<64x1xf32>
    %20 = arith.divf %18, %19 : vector<64x1xf32>
    %cst_16 = arith.constant 9.99999974E-6 : f32
    %21 = vector.broadcast %cst_16 : f32 to vector<64x1xf32>
    %22 = arith.addf %20, %21 : vector<64x1xf32>
    %23 = math.rsqrt %22 : vector<64x1xf32>
    %24 = vector.broadcast %23 : vector<64x1xf32> to vector<64x32xf32>
    %25 = arith.mulf %15, %24 : vector<64x32xf32>
    %26 = vector.broadcast %7 : vector<1x32xf32> to vector<64x32xf32>
    %27 = arith.mulf %25, %26 : vector<64x32xf32>
    %28 = vector.broadcast %9 : vector<1x32xf32> to vector<64x32xf32>
    %29 = arith.addf %27, %28 : vector<64x32xf32>
    %30 = arith.truncf %4 : vector<64x64xf32> to vector<64x64xbf16>
    %31 = arith.truncf %29 : vector<64x32xf32> to vector<64x32xbf16>
    %cst_17 = arith.constant dense<0.000000e+00> : vector<64x32xf32>
    %32 = tpu.matmul %30, %31, %cst_17 {dimension_numbers = #tpu.dot_dimension_numbers<[1], [0], [0], [1], [0, 0, 1, 1], [], []>} : vector<64x64xbf16>, vector<64x32xbf16>, vector<64x32xf32> -> vector<64x32xf32>
    %cst_18 = arith.constant 0.000000e+00 : f32
    %33 = vector.broadcast %cst_18 : f32 to vector<64x32xf32>
    %c0_19 = arith.constant 0 : index
    %c0_20 = arith.constant 0 : index
    %c0_21 = arith.constant 0 : index
    %c0_22 = arith.constant 0 : index
    %34 = vector.load %arg7[%c0_19, %c0_20, %c0_21, %c0_22] : memref<1x4x32x8xf32, #tpu.memory_space<vmem>>, vector<1x1x32x8xf32>
    %35 = vector.shape_cast %34 : vector<1x1x32x8xf32> to vector<32x8xf32>
    %36 = arith.truncf %29 : vector<64x32xf32> to vector<64x32xbf16>
    %37 = arith.truncf %35 : vector<32x8xf32> to vector<32x8xbf16>
    %cst_23 = arith.constant dense<0.000000e+00> : vector<64x8xf32>
    %38 = tpu.matmul %36, %37, %cst_23 {dimension_numbers = #tpu.dot_dimension_numbers<[1], [0], [0], [1], [0, 0, 1, 1], [], []>} : vector<64x32xbf16>, vector<32x8xbf16>, vector<64x8xf32> -> vector<64x8xf32>
    %39 = vector.shape_cast %38 : vector<64x8xf32> to vector<8x8x8xf32>
    %c0_24 = arith.constant 0 : index
    %c0_25 = arith.constant 0 : index
    %c0_26 = arith.constant 0 : index
    %c0_27 = arith.constant 0 : index
    %40 = vector.load %arg8[%c0_24, %c0_25, %c0_26, %c0_27] : memref<1x4x32x8xf32, #tpu.memory_space<vmem>>, vector<1x1x32x8xf32>
    %41 = vector.shape_cast %40 : vector<1x1x32x8xf32> to vector<32x8xf32>
    %42 = arith.truncf %32 : vector<64x32xf32> to vector<64x32xbf16>
    %43 = arith.truncf %41 : vector<32x8xf32> to vector<32x8xbf16>
    %cst_28 = arith.constant dense<0.000000e+00> : vector<64x8xf32>
    %44 = tpu.matmul %42, %43, %cst_28 {dimension_numbers = #tpu.dot_dimension_numbers<[1], [0], [0], [1], [0, 0, 1, 1], [], []>} : vector<64x32xbf16>, vector<32x8xbf16>, vector<64x8xf32> -> vector<64x8xf32>
    %45 = vector.shape_cast %44 : vector<64x8xf32> to vector<8x8x8xf32>
    %c0_29 = arith.constant 0 : index
    %c0_30 = arith.constant 0 : index
    %c0_31 = arith.constant 0 : index
    %c0_32 = arith.constant 0 : index
    %46 = vector.load %arg9[%c0_29, %c0_30, %c0_31, %c0_32] : memref<1x4x32x8xf32, #tpu.memory_space<vmem>>, vector<1x1x32x8xf32>
    %47 = vector.shape_cast %46 : vector<1x1x32x8xf32> to vector<32x8xf32>
    %48 = arith.truncf %32 : vector<64x32xf32> to vector<64x32xbf16>
    %49 = arith.truncf %47 : vector<32x8xf32> to vector<32x8xbf16>
    %cst_33 = arith.constant dense<0.000000e+00> : vector<64x8xf32>
    %50 = tpu.matmul %48, %49, %cst_33 {dimension_numbers = #tpu.dot_dimension_numbers<[1], [0], [0], [1], [0, 0, 1, 1], [], []>} : vector<64x32xbf16>, vector<32x8xbf16>, vector<64x8xf32> -> vector<64x8xf32>
    %51 = vector.shape_cast %50 : vector<64x8xf32> to vector<8x8x8xf32>
    %52 = arith.truncf %39 : vector<8x8x8xf32> to vector<8x8x8xbf16>
    %53 = arith.truncf %45 : vector<8x8x8xf32> to vector<8x8x8xbf16>
    "tpu.trace_start"() <{level = 10 : i32, message = "ijd,ikd->ijk"}> : () -> ()
    %cst_34 = arith.constant dense<0.000000e+00> : vector<8x8x8xf32>
    %54 = tpu.matmul %52, %53, %cst_34 {dimension_numbers = #tpu.dot_dimension_numbers<[2], [2], [1], [1], [0, 0, 0, 1, 1, 1], [0], [0]>} : vector<8x8x8xbf16>, vector<8x8x8xbf16>, vector<8x8x8xf32> -> vector<8x8x8xf32>
    "tpu.trace_stop"() : () -> ()
    %cst_35 = arith.constant 0.353553385 : f32
    %55 = vector.broadcast %cst_35 : f32 to vector<8x8x8xf32>
    %56 = arith.mulf %54, %55 : vector<8x8x8xf32>
    %57 = arith.addf %56, %5 : vector<8x8x8xf32>
    %cst_36 = arith.constant dense<0xFF800000> : vector<8x8xf32>
    %58 = vector.multi_reduction <maximumf>, %57, %cst_36 [2] : vector<8x8x8xf32> to vector<8x8xf32>
    %59 = vector.shape_cast %58 : vector<8x8xf32> to vector<8x8x1xf32>
    %60 = vector.broadcast %59 : vector<8x8x1xf32> to vector<8x8x8xf32>
    %61 = arith.subf %57, %60 : vector<8x8x8xf32>
    %62 = math.exp %61 : vector<8x8x8xf32>
    %cst_37 = arith.constant dense<0.000000e+00> : vector<8x8xf32>
    %63 = vector.multi_reduction <add>, %62, %cst_37 [2] : vector<8x8x8xf32> to vector<8x8xf32>
    %64 = vector.shape_cast %63 : vector<8x8xf32> to vector<8x8x1xf32>
    %65 = tpu.reciprocal %64 {approx = true} : vector<8x8x1xf32> -> vector<8x8x1xf32>
    %66 = vector.broadcast %65 : vector<8x8x1xf32> to vector<8x8x8xf32>
    %67 = arith.mulf %62, %66 : vector<8x8x8xf32>
    %68 = arith.truncf %67 : vector<8x8x8xf32> to vector<8x8x8xbf16>
    %69 = arith.truncf %51 : vector<8x8x8xf32> to vector<8x8x8xbf16>
    "tpu.trace_start"() <{level = 10 : i32, message = "ijk,ikd->ijd"}> : () -> ()
    %cst_38 = arith.constant dense<0.000000e+00> : vector<8x8x8xf32>
    %70 = tpu.matmul %68, %69, %cst_38 {dimension_numbers = #tpu.dot_dimension_numbers<[2], [1], [1], [2], [0, 0, 0, 1, 1, 2], [0], [0]>} : vector<8x8x8xbf16>, vector<8x8x8xbf16>, vector<8x8x8xf32> -> vector<8x8x8xf32>
    "tpu.trace_stop"() : () -> ()
    %71 = vector.shape_cast %70 : vector<8x8x8xf32> to vector<64x8xf32>
    %72 = arith.truncf %4 : vector<64x64xf32> to vector<64x64xbf16>
    %73 = arith.truncf %71 : vector<64x8xf32> to vector<64x8xbf16>
    %cst_39 = arith.constant dense<0.000000e+00> : vector<64x8xf32>
    %74 = tpu.matmul %72, %73, %cst_39 {dimension_numbers = #tpu.dot_dimension_numbers<[1], [0], [0], [1], [0, 0, 1, 1], [], []>} : vector<64x64xbf16>, vector<64x8xbf16>, vector<64x8xf32> -> vector<64x8xf32>
    %c0_40 = arith.constant 0 : index
    %c0_41 = arith.constant 0 : index
    %c0_42 = arith.constant 0 : index
    %c0_43 = arith.constant 0 : index
    %75 = vector.load %arg10[%c0_40, %c0_41, %c0_42, %c0_43] : memref<1x4x8x32xf32, #tpu.memory_space<vmem>>, vector<1x1x8x32xf32>
    %76 = vector.shape_cast %75 : vector<1x1x8x32xf32> to vector<8x32xf32>
    %77 = arith.truncf %74 : vector<64x8xf32> to vector<64x8xbf16>
    %78 = arith.truncf %76 : vector<8x32xf32> to vector<8x32xbf16>
    %cst_44 = arith.constant dense<0.000000e+00> : vector<64x32xf32>
    %79 = tpu.matmul %77, %78, %cst_44 {dimension_numbers = #tpu.dot_dimension_numbers<[1], [0], [0], [1], [0, 0, 1, 1], [], []>} : vector<64x8xbf16>, vector<8x32xbf16>, vector<64x32xf32> -> vector<64x32xf32>
    %80 = arith.addf %33, %79 : vector<64x32xf32>
    %c0_45 = arith.constant 0 : index
    %c1 = arith.constant 1 : index
    %c0_46 = arith.constant 0 : index
    %c0_47 = arith.constant 0 : index
    %81 = vector.load %arg7[%c0_45, %c1, %c0_46, %c0_47] : memref<1x4x32x8xf32, #tpu.memory_space<vmem>>, vector<1x1x32x8xf32>
    %82 = vector.shape_cast %81 : vector<1x1x32x8xf32> to vector<32x8xf32>
    %83 = arith.truncf %29 : vector<64x32xf32> to vector<64x32xbf16>
    %84 = arith.truncf %82 : vector<32x8xf32> to vector<32x8xbf16>
    %cst_48 = arith.constant dense<0.000000e+00> : vector<64x8xf32>
    %85 = tpu.matmul %83, %84, %cst_48 {dimension_numbers = #tpu.dot_dimension_numbers<[1], [0], [0], [1], [0, 0, 1, 1], [], []>} : vector<64x32xbf16>, vector<32x8xbf16>, vector<64x8xf32> -> vector<64x8xf32>
    %86 = vector.shape_cast %85 : vector<64x8xf32> to vector<8x8x8xf32>
    %c0_49 = arith.constant 0 : index
    %c1_50 = arith.constant 1 : index
    %c0_51 = arith.constant 0 : index
    %c0_52 = arith.constant 0 : index
    %87 = vector.load %arg8[%c0_49, %c1_50, %c0_51, %c0_52] : memref<1x4x32x8xf32, #tpu.memory_space<vmem>>, vector<1x1x32x8xf32>
    %88 = vector.shape_cast %87 : vector<1x1x32x8xf32> to vector<32x8xf32>
    %89 = arith.truncf %32 : vector<64x32xf32> to vector<64x32xbf16>
    %90 = arith.truncf %88 : vector<32x8xf32> to vector<32x8xbf16>
    %cst_53 = arith.constant dense<0.000000e+00> : vector<64x8xf32>
    %91 = tpu.matmul %89, %90, %cst_53 {dimension_numbers = #tpu.dot_dimension_numbers<[1], [0], [0], [1], [0, 0, 1, 1], [], []>} : vector<64x32xbf16>, vector<32x8xbf16>, vector<64x8xf32> -> vector<64x8xf32>
    %92 = vector.shape_cast %91 : vector<64x8xf32> to vector<8x8x8xf32>
    %c0_54 = arith.constant 0 : index
    %c1_55 = arith.constant 1 : index
    %c0_56 = arith.constant 0 : index
    %c0_57 = arith.constant 0 : index
    %93 = vector.load %arg9[%c0_54, %c1_55, %c0_56, %c0_57] : memref<1x4x32x8xf32, #tpu.memory_space<vmem>>, vector<1x1x32x8xf32>
    %94 = vector.shape_cast %93 : vector<1x1x32x8xf32> to vector<32x8xf32>
    %95 = arith.truncf %32 : vector<64x32xf32> to vector<64x32xbf16>
    %96 = arith.truncf %94 : vector<32x8xf32> to vector<32x8xbf16>
    %cst_58 = arith.constant dense<0.000000e+00> : vector<64x8xf32>
    %97 = tpu.matmul %95, %96, %cst_58 {dimension_numbers = #tpu.dot_dimension_numbers<[1], [0], [0], [1], [0, 0, 1, 1], [], []>} : vector<64x32xbf16>, vector<32x8xbf16>, vector<64x8xf32> -> vector<64x8xf32>
    %98 = vector.shape_cast %97 : vector<64x8xf32> to vector<8x8x8xf32>
    %99 = arith.truncf %86 : vector<8x8x8xf32> to vector<8x8x8xbf16>
    %100 = arith.truncf %92 : vector<8x8x8xf32> to vector<8x8x8xbf16>
    "tpu.trace_start"() <{level = 10 : i32, message = "ijd,ikd->ijk"}> : () -> ()
    %cst_59 = arith.constant dense<0.000000e+00> : vector<8x8x8xf32>
    %101 = tpu.matmul %99, %100, %cst_59 {dimension_numbers = #tpu.dot_dimension_numbers<[2], [2], [1], [1], [0, 0, 0, 1, 1, 1], [0], [0]>} : vector<8x8x8xbf16>, vector<8x8x8xbf16>, vector<8x8x8xf32> -> vector<8x8x8xf32>
    "tpu.trace_stop"() : () -> ()
    %cst_60 = arith.constant 0.353553385 : f32
    %102 = vector.broadcast %cst_60 : f32 to vector<8x8x8xf32>
    %103 = arith.mulf %101, %102 : vector<8x8x8xf32>
    %104 = arith.addf %103, %5 : vector<8x8x8xf32>
    %cst_61 = arith.constant dense<0xFF800000> : vector<8x8xf32>
    %105 = vector.multi_reduction <maximumf>, %104, %cst_61 [2] : vector<8x8x8xf32> to vector<8x8xf32>
    %106 = vector.shape_cast %105 : vector<8x8xf32> to vector<8x8x1xf32>
    %107 = vector.broadcast %106 : vector<8x8x1xf32> to vector<8x8x8xf32>
    %108 = arith.subf %104, %107 : vector<8x8x8xf32>
    %109 = math.exp %108 : vector<8x8x8xf32>
    %cst_62 = arith.constant dense<0.000000e+00> : vector<8x8xf32>
    %110 = vector.multi_reduction <add>, %109, %cst_62 [2] : vector<8x8x8xf32> to vector<8x8xf32>
    %111 = vector.shape_cast %110 : vector<8x8xf32> to vector<8x8x1xf32>
    %112 = tpu.reciprocal %111 {approx = true} : vector<8x8x1xf32> -> vector<8x8x1xf32>
    %113 = vector.broadcast %112 : vector<8x8x1xf32> to vector<8x8x8xf32>
    %114 = arith.mulf %109, %113 : vector<8x8x8xf32>
    %115 = arith.truncf %114 : vector<8x8x8xf32> to vector<8x8x8xbf16>
    %116 = arith.truncf %98 : vector<8x8x8xf32> to vector<8x8x8xbf16>
    "tpu.trace_start"() <{level = 10 : i32, message = "ijk,ikd->ijd"}> : () -> ()
    %cst_63 = arith.constant dense<0.000000e+00> : vector<8x8x8xf32>
    %117 = tpu.matmul %115, %116, %cst_63 {dimension_numbers = #tpu.dot_dimension_numbers<[2], [1], [1], [2], [0, 0, 0, 1, 1, 2], [0], [0]>} : vector<8x8x8xbf16>, vector<8x8x8xbf16>, vector<8x8x8xf32> -> vector<8x8x8xf32>
    "tpu.trace_stop"() : () -> ()
    %118 = vector.shape_cast %117 : vector<8x8x8xf32> to vector<64x8xf32>
    %119 = arith.truncf %4 : vector<64x64xf32> to vector<64x64xbf16>
    %120 = arith.truncf %118 : vector<64x8xf32> to vector<64x8xbf16>
    %cst_64 = arith.constant dense<0.000000e+00> : vector<64x8xf32>
    %121 = tpu.matmul %119, %120, %cst_64 {dimension_numbers = #tpu.dot_dimension_numbers<[1], [0], [0], [1], [0, 0, 1, 1], [], []>} : vector<64x64xbf16>, vector<64x8xbf16>, vector<64x8xf32> -> vector<64x8xf32>
    %c0_65 = arith.constant 0 : index
    %c1_66 = arith.constant 1 : index
    %c0_67 = arith.constant 0 : index
    %c0_68 = arith.constant 0 : index
    %122 = vector.load %arg10[%c0_65, %c1_66, %c0_67, %c0_68] : memref<1x4x8x32xf32, #tpu.memory_space<vmem>>, vector<1x1x8x32xf32>
    %123 = vector.shape_cast %122 : vector<1x1x8x32xf32> to vector<8x32xf32>
    %124 = arith.truncf %121 : vector<64x8xf32> to vector<64x8xbf16>
    %125 = arith.truncf %123 : vector<8x32xf32> to vector<8x32xbf16>
    %cst_69 = arith.constant dense<0.000000e+00> : vector<64x32xf32>
    %126 = tpu.matmul %124, %125, %cst_69 {dimension_numbers = #tpu.dot_dimension_numbers<[1], [0], [0], [1], [0, 0, 1, 1], [], []>} : vector<64x8xbf16>, vector<8x32xbf16>, vector<64x32xf32> -> vector<64x32xf32>
    %127 = arith.addf %80, %126 : vector<64x32xf32>
    %c0_70 = arith.constant 0 : index
    %c2 = arith.constant 2 : index
    %c0_71 = arith.constant 0 : index
    %c0_72 = arith.constant 0 : index
    %128 = vector.load %arg7[%c0_70, %c2, %c0_71, %c0_72] : memref<1x4x32x8xf32, #tpu.memory_space<vmem>>, vector<1x1x32x8xf32>
    %129 = vector.shape_cast %128 : vector<1x1x32x8xf32> to vector<32x8xf32>
    %130 = arith.truncf %29 : vector<64x32xf32> to vector<64x32xbf16>
    %131 = arith.truncf %129 : vector<32x8xf32> to vector<32x8xbf16>
    %cst_73 = arith.constant dense<0.000000e+00> : vector<64x8xf32>
    %132 = tpu.matmul %130, %131, %cst_73 {dimension_numbers = #tpu.dot_dimension_numbers<[1], [0], [0], [1], [0, 0, 1, 1], [], []>} : vector<64x32xbf16>, vector<32x8xbf16>, vector<64x8xf32> -> vector<64x8xf32>
    %133 = vector.shape_cast %132 : vector<64x8xf32> to vector<8x8x8xf32>
    %c0_74 = arith.constant 0 : index
    %c2_75 = arith.constant 2 : index
    %c0_76 = arith.constant 0 : index
    %c0_77 = arith.constant 0 : index
    %134 = vector.load %arg8[%c0_74, %c2_75, %c0_76, %c0_77] : memref<1x4x32x8xf32, #tpu.memory_space<vmem>>, vector<1x1x32x8xf32>
    %135 = vector.shape_cast %134 : vector<1x1x32x8xf32> to vector<32x8xf32>
    %136 = arith.truncf %32 : vector<64x32xf32> to vector<64x32xbf16>
    %137 = arith.truncf %135 : vector<32x8xf32> to vector<32x8xbf16>
    %cst_78 = arith.constant dense<0.000000e+00> : vector<64x8xf32>
    %138 = tpu.matmul %136, %137, %cst_78 {dimension_numbers = #tpu.dot_dimension_numbers<[1], [0], [0], [1], [0, 0, 1, 1], [], []>} : vector<64x32xbf16>, vector<32x8xbf16>, vector<64x8xf32> -> vector<64x8xf32>
    %139 = vector.shape_cast %138 : vector<64x8xf32> to vector<8x8x8xf32>
    %c0_79 = arith.constant 0 : index
    %c2_80 = arith.constant 2 : index
    %c0_81 = arith.constant 0 : index
    %c0_82 = arith.constant 0 : index
    %140 = vector.load %arg9[%c0_79, %c2_80, %c0_81, %c0_82] : memref<1x4x32x8xf32, #tpu.memory_space<vmem>>, vector<1x1x32x8xf32>
    %141 = vector.shape_cast %140 : vector<1x1x32x8xf32> to vector<32x8xf32>
    %142 = arith.truncf %32 : vector<64x32xf32> to vector<64x32xbf16>
    %143 = arith.truncf %141 : vector<32x8xf32> to vector<32x8xbf16>
    %cst_83 = arith.constant dense<0.000000e+00> : vector<64x8xf32>
    %144 = tpu.matmul %142, %143, %cst_83 {dimension_numbers = #tpu.dot_dimension_numbers<[1], [0], [0], [1], [0, 0, 1, 1], [], []>} : vector<64x32xbf16>, vector<32x8xbf16>, vector<64x8xf32> -> vector<64x8xf32>
    %145 = vector.shape_cast %144 : vector<64x8xf32> to vector<8x8x8xf32>
    %146 = arith.truncf %133 : vector<8x8x8xf32> to vector<8x8x8xbf16>
    %147 = arith.truncf %139 : vector<8x8x8xf32> to vector<8x8x8xbf16>
    "tpu.trace_start"() <{level = 10 : i32, message = "ijd,ikd->ijk"}> : () -> ()
    %cst_84 = arith.constant dense<0.000000e+00> : vector<8x8x8xf32>
    %148 = tpu.matmul %146, %147, %cst_84 {dimension_numbers = #tpu.dot_dimension_numbers<[2], [2], [1], [1], [0, 0, 0, 1, 1, 1], [0], [0]>} : vector<8x8x8xbf16>, vector<8x8x8xbf16>, vector<8x8x8xf32> -> vector<8x8x8xf32>
    "tpu.trace_stop"() : () -> ()
    %cst_85 = arith.constant 0.353553385 : f32
    %149 = vector.broadcast %cst_85 : f32 to vector<8x8x8xf32>
    %150 = arith.mulf %148, %149 : vector<8x8x8xf32>
    %151 = arith.addf %150, %5 : vector<8x8x8xf32>
    %cst_86 = arith.constant dense<0xFF800000> : vector<8x8xf32>
    %152 = vector.multi_reduction <maximumf>, %151, %cst_86 [2] : vector<8x8x8xf32> to vector<8x8xf32>
    %153 = vector.shape_cast %152 : vector<8x8xf32> to vector<8x8x1xf32>
    %154 = vector.broadcast %153 : vector<8x8x1xf32> to vector<8x8x8xf32>
    %155 = arith.subf %151, %154 : vector<8x8x8xf32>
    %156 = math.exp %155 : vector<8x8x8xf32>
    %cst_87 = arith.constant dense<0.000000e+00> : vector<8x8xf32>
    %157 = vector.multi_reduction <add>, %156, %cst_87 [2] : vector<8x8x8xf32> to vector<8x8xf32>
    %158 = vector.shape_cast %157 : vector<8x8xf32> to vector<8x8x1xf32>
    %159 = tpu.reciprocal %158 {approx = true} : vector<8x8x1xf32> -> vector<8x8x1xf32>
    %160 = vector.broadcast %159 : vector<8x8x1xf32> to vector<8x8x8xf32>
    %161 = arith.mulf %156, %160 : vector<8x8x8xf32>
    %162 = arith.truncf %161 : vector<8x8x8xf32> to vector<8x8x8xbf16>
    %163 = arith.truncf %145 : vector<8x8x8xf32> to vector<8x8x8xbf16>
    "tpu.trace_start"() <{level = 10 : i32, message = "ijk,ikd->ijd"}> : () -> ()
    %cst_88 = arith.constant dense<0.000000e+00> : vector<8x8x8xf32>
    %164 = tpu.matmul %162, %163, %cst_88 {dimension_numbers = #tpu.dot_dimension_numbers<[2], [1], [1], [2], [0, 0, 0, 1, 1, 2], [0], [0]>} : vector<8x8x8xbf16>, vector<8x8x8xbf16>, vector<8x8x8xf32> -> vector<8x8x8xf32>
    "tpu.trace_stop"() : () -> ()
    %165 = vector.shape_cast %164 : vector<8x8x8xf32> to vector<64x8xf32>
    %166 = arith.truncf %4 : vector<64x64xf32> to vector<64x64xbf16>
    %167 = arith.truncf %165 : vector<64x8xf32> to vector<64x8xbf16>
    %cst_89 = arith.constant dense<0.000000e+00> : vector<64x8xf32>
    %168 = tpu.matmul %166, %167, %cst_89 {dimension_numbers = #tpu.dot_dimension_numbers<[1], [0], [0], [1], [0, 0, 1, 1], [], []>} : vector<64x64xbf16>, vector<64x8xbf16>, vector<64x8xf32> -> vector<64x8xf32>
    %c0_90 = arith.constant 0 : index
    %c2_91 = arith.constant 2 : index
    %c0_92 = arith.constant 0 : index
    %c0_93 = arith.constant 0 : index
    %169 = vector.load %arg10[%c0_90, %c2_91, %c0_92, %c0_93] : memref<1x4x8x32xf32, #tpu.memory_space<vmem>>, vector<1x1x8x32xf32>
    %170 = vector.shape_cast %169 : vector<1x1x8x32xf32> to vector<8x32xf32>
    %171 = arith.truncf %168 : vector<64x8xf32> to vector<64x8xbf16>
    %172 = arith.truncf %170 : vector<8x32xf32> to vector<8x32xbf16>
    %cst_94 = arith.constant dense<0.000000e+00> : vector<64x32xf32>
    %173 = tpu.matmul %171, %172, %cst_94 {dimension_numbers = #tpu.dot_dimension_numbers<[1], [0], [0], [1], [0, 0, 1, 1], [], []>} : vector<64x8xbf16>, vector<8x32xbf16>, vector<64x32xf32> -> vector<64x32xf32>
    %174 = arith.addf %127, %173 : vector<64x32xf32>
    %c0_95 = arith.constant 0 : index
    %c3 = arith.constant 3 : index
    %c0_96 = arith.constant 0 : index
    %c0_97 = arith.constant 0 : index
    %175 = vector.load %arg7[%c0_95, %c3, %c0_96, %c0_97] : memref<1x4x32x8xf32, #tpu.memory_space<vmem>>, vector<1x1x32x8xf32>
    %176 = vector.shape_cast %175 : vector<1x1x32x8xf32> to vector<32x8xf32>
    %177 = arith.truncf %29 : vector<64x32xf32> to vector<64x32xbf16>
    %178 = arith.truncf %176 : vector<32x8xf32> to vector<32x8xbf16>
    %cst_98 = arith.constant dense<0.000000e+00> : vector<64x8xf32>
    %179 = tpu.matmul %177, %178, %cst_98 {dimension_numbers = #tpu.dot_dimension_numbers<[1], [0], [0], [1], [0, 0, 1, 1], [], []>} : vector<64x32xbf16>, vector<32x8xbf16>, vector<64x8xf32> -> vector<64x8xf32>
    %180 = vector.shape_cast %179 : vector<64x8xf32> to vector<8x8x8xf32>
    %c0_99 = arith.constant 0 : index
    %c3_100 = arith.constant 3 : index
    %c0_101 = arith.constant 0 : index
    %c0_102 = arith.constant 0 : index
    %181 = vector.load %arg8[%c0_99, %c3_100, %c0_101, %c0_102] : memref<1x4x32x8xf32, #tpu.memory_space<vmem>>, vector<1x1x32x8xf32>
    %182 = vector.shape_cast %181 : vector<1x1x32x8xf32> to vector<32x8xf32>
    %183 = arith.truncf %32 : vector<64x32xf32> to vector<64x32xbf16>
    %184 = arith.truncf %182 : vector<32x8xf32> to vector<32x8xbf16>
    %cst_103 = arith.constant dense<0.000000e+00> : vector<64x8xf32>
    %185 = tpu.matmul %183, %184, %cst_103 {dimension_numbers = #tpu.dot_dimension_numbers<[1], [0], [0], [1], [0, 0, 1, 1], [], []>} : vector<64x32xbf16>, vector<32x8xbf16>, vector<64x8xf32> -> vector<64x8xf32>
    %186 = vector.shape_cast %185 : vector<64x8xf32> to vector<8x8x8xf32>
    %c0_104 = arith.constant 0 : index
    %c3_105 = arith.constant 3 : index
    %c0_106 = arith.constant 0 : index
    %c0_107 = arith.constant 0 : index
    %187 = vector.load %arg9[%c0_104, %c3_105, %c0_106, %c0_107] : memref<1x4x32x8xf32, #tpu.memory_space<vmem>>, vector<1x1x32x8xf32>
    %188 = vector.shape_cast %187 : vector<1x1x32x8xf32> to vector<32x8xf32>
    %189 = arith.truncf %32 : vector<64x32xf32> to vector<64x32xbf16>
    %190 = arith.truncf %188 : vector<32x8xf32> to vector<32x8xbf16>
    %cst_108 = arith.constant dense<0.000000e+00> : vector<64x8xf32>
    %191 = tpu.matmul %189, %190, %cst_108 {dimension_numbers = #tpu.dot_dimension_numbers<[1], [0], [0], [1], [0, 0, 1, 1], [], []>} : vector<64x32xbf16>, vector<32x8xbf16>, vector<64x8xf32> -> vector<64x8xf32>
    %192 = vector.shape_cast %191 : vector<64x8xf32> to vector<8x8x8xf32>
    %193 = arith.truncf %180 : vector<8x8x8xf32> to vector<8x8x8xbf16>
    %194 = arith.truncf %186 : vector<8x8x8xf32> to vector<8x8x8xbf16>
    "tpu.trace_start"() <{level = 10 : i32, message = "ijd,ikd->ijk"}> : () -> ()
    %cst_109 = arith.constant dense<0.000000e+00> : vector<8x8x8xf32>
    %195 = tpu.matmul %193, %194, %cst_109 {dimension_numbers = #tpu.dot_dimension_numbers<[2], [2], [1], [1], [0, 0, 0, 1, 1, 1], [0], [0]>} : vector<8x8x8xbf16>, vector<8x8x8xbf16>, vector<8x8x8xf32> -> vector<8x8x8xf32>
    "tpu.trace_stop"() : () -> ()
    %cst_110 = arith.constant 0.353553385 : f32
    %196 = vector.broadcast %cst_110 : f32 to vector<8x8x8xf32>
    %197 = arith.mulf %195, %196 : vector<8x8x8xf32>
    %198 = arith.addf %197, %5 : vector<8x8x8xf32>
    %cst_111 = arith.constant dense<0xFF800000> : vector<8x8xf32>
    %199 = vector.multi_reduction <maximumf>, %198, %cst_111 [2] : vector<8x8x8xf32> to vector<8x8xf32>
    %200 = vector.shape_cast %199 : vector<8x8xf32> to vector<8x8x1xf32>
    %201 = vector.broadcast %200 : vector<8x8x1xf32> to vector<8x8x8xf32>
    %202 = arith.subf %198, %201 : vector<8x8x8xf32>
    %203 = math.exp %202 : vector<8x8x8xf32>
    %cst_112 = arith.constant dense<0.000000e+00> : vector<8x8xf32>
    %204 = vector.multi_reduction <add>, %203, %cst_112 [2] : vector<8x8x8xf32> to vector<8x8xf32>
    %205 = vector.shape_cast %204 : vector<8x8xf32> to vector<8x8x1xf32>
    %206 = tpu.reciprocal %205 {approx = true} : vector<8x8x1xf32> -> vector<8x8x1xf32>
    %207 = vector.broadcast %206 : vector<8x8x1xf32> to vector<8x8x8xf32>
    %208 = arith.mulf %203, %207 : vector<8x8x8xf32>
    %209 = arith.truncf %208 : vector<8x8x8xf32> to vector<8x8x8xbf16>
    %210 = arith.truncf %192 : vector<8x8x8xf32> to vector<8x8x8xbf16>
    "tpu.trace_start"() <{level = 10 : i32, message = "ijk,ikd->ijd"}> : () -> ()
    %cst_113 = arith.constant dense<0.000000e+00> : vector<8x8x8xf32>
    %211 = tpu.matmul %209, %210, %cst_113 {dimension_numbers = #tpu.dot_dimension_numbers<[2], [1], [1], [2], [0, 0, 0, 1, 1, 2], [0], [0]>} : vector<8x8x8xbf16>, vector<8x8x8xbf16>, vector<8x8x8xf32> -> vector<8x8x8xf32>
    "tpu.trace_stop"() : () -> ()
    %212 = vector.shape_cast %211 : vector<8x8x8xf32> to vector<64x8xf32>
    %213 = arith.truncf %4 : vector<64x64xf32> to vector<64x64xbf16>
    %214 = arith.truncf %212 : vector<64x8xf32> to vector<64x8xbf16>
    %cst_114 = arith.constant dense<0.000000e+00> : vector<64x8xf32>
    %215 = tpu.matmul %213, %214, %cst_114 {dimension_numbers = #tpu.dot_dimension_numbers<[1], [0], [0], [1], [0, 0, 1, 1], [], []>} : vector<64x64xbf16>, vector<64x8xbf16>, vector<64x8xf32> -> vector<64x8xf32>
    %c0_115 = arith.constant 0 : index
    %c3_116 = arith.constant 3 : index
    %c0_117 = arith.constant 0 : index
    %c0_118 = arith.constant 0 : index
    %216 = vector.load %arg10[%c0_115, %c3_116, %c0_117, %c0_118] : memref<1x4x8x32xf32, #tpu.memory_space<vmem>>, vector<1x1x8x32xf32>
    %217 = vector.shape_cast %216 : vector<1x1x8x32xf32> to vector<8x32xf32>
    %218 = arith.truncf %215 : vector<64x8xf32> to vector<64x8xbf16>
    %219 = arith.truncf %217 : vector<8x32xf32> to vector<8x32xbf16>
    %cst_119 = arith.constant dense<0.000000e+00> : vector<64x32xf32>
    %220 = tpu.matmul %218, %219, %cst_119 {dimension_numbers = #tpu.dot_dimension_numbers<[1], [0], [0], [1], [0, 0, 1, 1], [], []>} : vector<64x8xbf16>, vector<8x32xbf16>, vector<64x32xf32> -> vector<64x32xf32>
    %221 = arith.addf %174, %220 : vector<64x32xf32>
    %222 = arith.addf %3, %221 : vector<64x32xf32>
    %c0_120 = arith.constant 0 : index
    %c0_121 = arith.constant 0 : index
    %c0_122 = arith.constant 0 : index
    %223 = vector.load %arg11[%c0_120, %c0_121, %c0_122] : memref<1x1x32xf32, #tpu.memory_space<vmem>>, vector<1x1x32xf32>
    %224 = vector.shape_cast %223 : vector<1x1x32xf32> to vector<1x32xf32>
    %c0_123 = arith.constant 0 : index
    %c0_124 = arith.constant 0 : index
    %c0_125 = arith.constant 0 : index
    %225 = vector.load %arg12[%c0_123, %c0_124, %c0_125] : memref<1x1x32xf32, #tpu.memory_space<vmem>>, vector<1x1x32xf32>
    %226 = vector.shape_cast %225 : vector<1x1x32xf32> to vector<1x32xf32>
    %cst_126 = arith.constant dense<0.000000e+00> : vector<64xf32>
    %227 = vector.multi_reduction <add>, %222, %cst_126 [1] : vector<64x32xf32> to vector<64xf32>
    %228 = vector.shape_cast %227 : vector<64xf32> to vector<64x1xf32>
    %cst_127 = arith.constant 3.200000e+01 : f32
    %229 = vector.broadcast %cst_127 : f32 to vector<64x1xf32>
    %230 = arith.divf %228, %229 : vector<64x1xf32>
    %231 = vector.broadcast %230 : vector<64x1xf32> to vector<64x32xf32>
    %232 = arith.subf %222, %231 : vector<64x32xf32>
    %233 = arith.mulf %232, %232 : vector<64x32xf32>
    %cst_128 = arith.constant dense<0.000000e+00> : vector<64xf32>
    %234 = vector.multi_reduction <add>, %233, %cst_128 [1] : vector<64x32xf32> to vector<64xf32>
    %235 = vector.shape_cast %234 : vector<64xf32> to vector<64x1xf32>
    %cst_129 = arith.constant 3.200000e+01 : f32
    %236 = vector.broadcast %cst_129 : f32 to vector<64x1xf32>
    %237 = arith.divf %235, %236 : vector<64x1xf32>
    %cst_130 = arith.constant 9.99999974E-6 : f32
    %238 = vector.broadcast %cst_130 : f32 to vector<64x1xf32>
    %239 = arith.addf %237, %238 : vector<64x1xf32>
    %240 = math.rsqrt %239 : vector<64x1xf32>
    %241 = vector.broadcast %240 : vector<64x1xf32> to vector<64x32xf32>
    %242 = arith.mulf %232, %241 : vector<64x32xf32>
    %243 = vector.broadcast %224 : vector<1x32xf32> to vector<64x32xf32>
    %244 = arith.mulf %242, %243 : vector<64x32xf32>
    %245 = vector.broadcast %226 : vector<1x32xf32> to vector<64x32xf32>
    %246 = arith.addf %244, %245 : vector<64x32xf32>
    %c0_131 = arith.constant 0 : index
    %c0_132 = arith.constant 0 : index
    %c0_133 = arith.constant 0 : index
    %247 = vector.load %arg13[%c0_131, %c0_132, %c0_133] : memref<1x32x128xf32, #tpu.memory_space<vmem>>, vector<1x32x128xf32>
    %248 = vector.shape_cast %247 : vector<1x32x128xf32> to vector<32x128xf32>
    %249 = arith.truncf %246 : vector<64x32xf32> to vector<64x32xbf16>
    %250 = arith.truncf %248 : vector<32x128xf32> to vector<32x128xbf16>
    %cst_134 = arith.constant dense<0.000000e+00> : vector<64x128xf32>
    %251 = tpu.matmul %249, %250, %cst_134 {dimension_numbers = #tpu.dot_dimension_numbers<[1], [0], [0], [1], [0, 0, 1, 1], [], []>} : vector<64x32xbf16>, vector<32x128xbf16>, vector<64x128xf32> -> vector<64x128xf32>
    %c0_135 = arith.constant 0 : index
    %c0_136 = arith.constant 0 : index
    %c0_137 = arith.constant 0 : index
    %252 = vector.load %arg14[%c0_135, %c0_136, %c0_137] : memref<1x1x128xf32, #tpu.memory_space<vmem>>, vector<1x1x128xf32>
    %253 = vector.shape_cast %252 : vector<1x1x128xf32> to vector<1x128xf32>
    %254 = vector.broadcast %253 : vector<1x128xf32> to vector<64x128xf32>
    %255 = arith.addf %251, %254 : vector<64x128xf32>
    %cst_138 = arith.constant 0.000000e+00 : f32
    %256 = vector.broadcast %cst_138 : f32 to vector<64x128xf32>
    %257 = arith.maximumf %255, %256 : vector<64x128xf32>
    %c0_139 = arith.constant 0 : index
    %c0_140 = arith.constant 0 : index
    %c0_141 = arith.constant 0 : index
    %258 = vector.load %arg15[%c0_139, %c0_140, %c0_141] : memref<1x128x32xf32, #tpu.memory_space<vmem>>, vector<1x128x32xf32>
    %259 = vector.shape_cast %258 : vector<1x128x32xf32> to vector<128x32xf32>
    %260 = arith.truncf %257 : vector<64x128xf32> to vector<64x128xbf16>
    %261 = arith.truncf %259 : vector<128x32xf32> to vector<128x32xbf16>
    %cst_142 = arith.constant dense<0.000000e+00> : vector<64x32xf32>
    %262 = tpu.matmul %260, %261, %cst_142 {dimension_numbers = #tpu.dot_dimension_numbers<[1], [0], [0], [1], [0, 0, 1, 1], [], []>} : vector<64x128xbf16>, vector<128x32xbf16>, vector<64x32xf32> -> vector<64x32xf32>
    %c0_143 = arith.constant 0 : index
    %c0_144 = arith.constant 0 : index
    %c0_145 = arith.constant 0 : index
    %263 = vector.load %arg16[%c0_143, %c0_144, %c0_145] : memref<1x1x32xf32, #tpu.memory_space<vmem>>, vector<1x1x32xf32>
    %264 = vector.shape_cast %263 : vector<1x1x32xf32> to vector<1x32xf32>
    %265 = vector.broadcast %264 : vector<1x32xf32> to vector<64x32xf32>
    %266 = arith.addf %262, %265 : vector<64x32xf32>
    %267 = arith.addf %222, %266 : vector<64x32xf32>
    %c0_146 = arith.constant 0 : index
    %c0_147 = arith.constant 0 : index
    %268 = vector.load %arg18[%c0_146, %c0_147] : memref<64x32xf32, #tpu.memory_space<vmem>>, vector<64x32xf32>
    tpu.vector_store %arg18[%c0_146, %c0_147], %267 {strides = array<i32>} : memref<64x32xf32, #tpu.memory_space<vmem>>, vector<64x32xf32>,
    %c1_i32 = arith.constant 1 : i32
    %269 = arith.cmpi eq, %arg1, %c1_i32 : i32
    %270 = arith.extui %269 : i1 to i32
    %c0_i32_148 = arith.constant 0 : i32
    %271 = arith.cmpi ne, %270, %c0_i32_148 : i32
    scf.if %271 {
      %272 = vector.shape_cast %267 : vector<64x32xf32> to vector<1x8x8x32xf32>
      %c0_149 = arith.constant 0 : index
      %c0_150 = arith.constant 0 : index
      %c0_151 = arith.constant 0 : index
      %c0_152 = arith.constant 0 : index
      %273 = vector.load %arg17[%c0_149, %c0_150, %c0_151, %c0_152] : memref<1x8x8x32xf32, #tpu.memory_space<vmem>>, vector<1x8x8x32xf32>
      tpu.vector_store %arg17[%c0_149, %c0_150, %c0_151, %c0_152], %272 {strides = array<i32>} : memref<1x8x8x32xf32, #tpu.memory_space<vmem>>, vector<1x8x8x32xf32>,
    } else {
    }
    return
  }
  func.func @transform_0(%arg0: i32, %arg1: i32) -> (i32, i32, i32, i32) {
    %c0_i32 = arith.constant 0 : i32
    %c0_i32_0 = arith.constant 0 : i32
    %c0_i32_1 = arith.constant 0 : i32
    %c0_i32_2 = arith.constant 0 : i32
    return %arg0, %c0_i32, %c0_i32_0, %c0_i32_1 : i32, i32, i32, i32
  }
  func.func @transform_1(%arg0: i32, %arg1: i32) -> (i32, i32, i32) {
    %c0_i32 = arith.constant 0 : i32
    %c0_i32_0 = arith.constant 0 : i32
    %c0_i32_1 = arith.constant 0 : i32
    %c0_i32_2 = arith.constant 0 : i32
    return %c0_i32, %c0_i32_0, %c0_i32_1 : i32, i32, i32
  }
  func.func @transform_2(%arg0: i32, %arg1: i32) -> (i32, i32) {
    %c0_i32 = arith.constant 0 : i32
    %c0_i32_0 = arith.constant 0 : i32
    %c0_i32_1 = arith.constant 0 : i32
    return %c0_i32, %c0_i32_0 : i32, i32
  }
  func.func @transform_3(%arg0: i32, %arg1: i32) -> (i32, i32, i32) {
    %c0_i32 = arith.constant 0 : i32
    %c0_i32_0 = arith.constant 0 : i32
    %c0_i32_1 = arith.constant 0 : i32
    return %arg1, %c0_i32, %c0_i32_0 : i32, i32, i32
  }
  func.func @transform_4(%arg0: i32, %arg1: i32) -> (i32, i32, i32) {
    %c0_i32 = arith.constant 0 : i32
    %c0_i32_0 = arith.constant 0 : i32
    %c0_i32_1 = arith.constant 0 : i32
    return %arg1, %c0_i32, %c0_i32_0 : i32, i32, i32
  }
  func.func @transform_5(%arg0: i32, %arg1: i32) -> (i32, i32, i32, i32) {
    %c0_i32 = arith.constant 0 : i32
    %c0_i32_0 = arith.constant 0 : i32
    %c0_i32_1 = arith.constant 0 : i32
    %c0_i32_2 = arith.constant 0 : i32
    return %arg1, %c0_i32, %c0_i32_0, %c0_i32_1 : i32, i32, i32, i32
  }
  func.func @transform_6(%arg0: i32, %arg1: i32) -> (i32, i32, i32, i32) {
    %c0_i32 = arith.constant 0 : i32
    %c0_i32_0 = arith.constant 0 : i32
    %c0_i32_1 = arith.constant 0 : i32
    %c0_i32_2 = arith.constant 0 : i32
    return %arg1, %c0_i32, %c0_i32_0, %c0_i32_1 : i32, i32, i32, i32
  }
  func.func @transform_7(%arg0: i32, %arg1: i32) -> (i32, i32, i32, i32) {
    %c0_i32 = arith.constant 0 : i32
    %c0_i32_0 = arith.constant 0 : i32
    %c0_i32_1 = arith.constant 0 : i32
    %c0_i32_2 = arith.constant 0 : i32
    return %arg1, %c0_i32, %c0_i32_0, %c0_i32_1 : i32, i32, i32, i32
  }
  func.func @transform_8(%arg0: i32, %arg1: i32) -> (i32, i32, i32, i32) {
    %c0_i32 = arith.constant 0 : i32
    %c0_i32_0 = arith.constant 0 : i32
    %c0_i32_1 = arith.constant 0 : i32
    %c0_i32_2 = arith.constant 0 : i32
    return %arg1, %c0_i32, %c0_i32_0, %c0_i32_1 : i32, i32, i32, i32
  }
  func.func @transform_9(%arg0: i32, %arg1: i32) -> (i32, i32, i32) {
    %c0_i32 = arith.constant 0 : i32
    %c0_i32_0 = arith.constant 0 : i32
    %c0_i32_1 = arith.constant 0 : i32
    return %arg1, %c0_i32, %c0_i32_0 : i32, i32, i32
  }
  func.func @transform_10(%arg0: i32, %arg1: i32) -> (i32, i32, i32) {
    %c0_i32 = arith.constant 0 : i32
    %c0_i32_0 = arith.constant 0 : i32
    %c0_i32_1 = arith.constant 0 : i32
    return %arg1, %c0_i32, %c0_i32_0 : i32, i32, i32
  }
  func.func @transform_11(%arg0: i32, %arg1: i32) -> (i32, i32, i32) {
    %c0_i32 = arith.constant 0 : i32
    %c0_i32_0 = arith.constant 0 : i32
    %c0_i32_1 = arith.constant 0 : i32
    return %arg1, %c0_i32, %c0_i32_0 : i32, i32, i32
  }
  func.func @transform_12(%arg0: i32, %arg1: i32) -> (i32, i32, i32) {
    %c0_i32 = arith.constant 0 : i32
    %c0_i32_0 = arith.constant 0 : i32
    %c0_i32_1 = arith.constant 0 : i32
    return %arg1, %c0_i32, %c0_i32_0 : i32, i32, i32
  }
  func.func @transform_13(%arg0: i32, %arg1: i32) -> (i32, i32, i32) {
    %c0_i32 = arith.constant 0 : i32
    %c0_i32_0 = arith.constant 0 : i32
    %c0_i32_1 = arith.constant 0 : i32
    return %arg1, %c0_i32, %c0_i32_0 : i32, i32, i32
  }
  func.func @transform_14(%arg0: i32, %arg1: i32) -> (i32, i32, i32) {
    %c0_i32 = arith.constant 0 : i32
    %c0_i32_0 = arith.constant 0 : i32
    %c0_i32_1 = arith.constant 0 : i32
    return %arg1, %c0_i32, %c0_i32_0 : i32, i32, i32
  }
  func.func @transform_15(%arg0: i32, %arg1: i32) -> (i32, i32, i32, i32) {
    %c0_i32 = arith.constant 0 : i32
    %c0_i32_0 = arith.constant 0 : i32
    %c0_i32_1 = arith.constant 0 : i32
    %c0_i32_2 = arith.constant 0 : i32
    return %arg0, %c0_i32, %c0_i32_0, %c0_i32_1 : i32, i32, i32, i32
  }
}

</mosaic_0001>

<bundles_post_ra>
// kernel: transformer_forward.1
= control target key start
LH: loop header
LB: loop body
LE: loop exit
PB: predicated region body
PF: predicated region fallthrough
CT: control target
= control target key end

     0   :  { %s9778_s0 = inlined_call_operand.vmem [shape: f32[2,8,8,32], index: 0, kind: input, shape index: {}]   ;;  %s9779_s1 = inlined_call_operand.vmem [shape: f32[8,8,8], index: 1, kind: input, shape index: {}]   ;;  %s9780_s2 = inlined_call_operand.vmem [shape: f32[64,64], index: 2, kind: input, shape index: {}]   ;;  %s9781_s3 = inlined_call_operand.vmem [shape: f32[2,1,32], index: 3, kind: input, shape index: {}]   ;;  %s9782_s4 = inlined_call_operand.vmem [shape: f32[2,1,32], index: 4, kind: input, shape index: {}]   ;;  %s9783_s5 = inlined_call_operand.vmem [shape: f32[2,4,32,8], index: 5, kind: input, shape index: {}]   ;;  %s9784_s6 = inlined_call_operand.vmem [shape: f32[2,4,32,8], index: 6, kind: input, shape index: {}]   ;;  %s9785_s7 = inlined_call_operand.vmem [shape: f32[2,4,32,8], index: 7, kind: input, shape index: {}]   ;;  %s9786_s8 = inlined_call_operand.vmem [shape: f32[2,4,8,32], index: 8, kind: input, shape index: {}]   ;;  %s9787_s9 = inlined_call_operand.vmem [shape: f32[2,1,32], index: 9, kind: input, shape index: {}]   ;;  %s9788_s10 = inlined_call_operand.vmem [shape: f32[2,1,32], index: 10, kind: input, shape index: {}]   ;;  %s9789_s11 = inlined_call_operand.vmem [shape: f32[2,32,128], index: 11, kind: input, shape index: {}]   ;;  %s9790_s12 = inlined_call_operand.vmem [shape: f32[2,1,128], index: 12, kind: input, shape index: {}]   ;;  %s9791_s13 = inlined_call_operand.vmem [shape: f32[2,128,32], index: 13, kind: input, shape index: {}]   ;;  %s9792_s14 = inlined_call_operand.vmem [shape: f32[2,1,32], index: 14, kind: input, shape index: {}]   ;;  %s9793_s15 = inlined_call_operand.hbm [shape: f32[2,8,8,32], index: 15, kind: output, shape index: {}]  }
   0x1   :  { %9812 = sst [smem:[#allocation20_spill]] %s9778_s0 }
   0x2   :  { %9813 = sst [smem:[#allocation21_spill]] %s9779_s1 }
   0x3   :  { %9814 = sst [smem:[#allocation22_spill]] %s9780_s2 }
   0x4   :  { %9815 = sst [smem:[#allocation23_spill]] %s9783_s5 }
   0x5   :  { %9816 = sst [smem:[#allocation24_spill]] %s9784_s6 }
   0x6   :  { %9817 = sst [smem:[#allocation25_spill]] %s9785_s7 }
   0x7   :  { %9818 = sst [smem:[#allocation26_spill]] %s9786_s8 }
   0x8   :  { %9819 = sst [smem:[#allocation27_spill]] %s9793_s15 }
   0x9   :  { %20 = vsyncpa [#allocation4], 0 }
   0xa   :  { %22 = vsyncpa [#allocation4 + $0x1], 0  ;;  %s8242_s18 = smov 0   ;;  %s8244_s19 = smov 0  }
   0xb   :  { %s8246_s20 = smov 0   ;;  %s8248_s21 = smov 0  }
   0xc   :  { %s8250_s22 = smov 0   ;;  %s8252_s23 = smov 0  }
   0xd   :  { %s8254_s24 = smov 0   ;;  %s8256_s25 = smov 0  }
   0xe LB: > { %9820 = sst [smem:[#allocation6_spill]] %s8127_s18  ;;  %s6580_s26 = sadd.s32 4294967295, %s8155_s25   ;;  %s8155_s25 = sphi %s8256_s25, %s28_s25   ;;  %s8151_s24 = sphi %s8254_s24, %s9865_s24   ;;  %s8147_s23 = sphi %s8252_s23, %s9864_s23   ;;  %s8143_s22 = sphi %s8250_s22, %s9863_s22   ;;  %s8139_s21 = sphi %s8248_s21, %s9862_s21   ;;  %s8135_s20 = sphi %s8246_s20, %s9861_s20   ;;  %s8131_s19 = sphi %s8244_s19, %s9860_s19   ;;  %s8127_s18 = sphi %s8242_s18, %s9859_s18  }
   0xf   : > { %9821 = sst [smem:[#allocation7_spill]] %s8131_s19  ;;  %s6581_s27 = sadd.s32 4294967294, %s8155_s25  }
  0x10   : > { %9822 = sst [smem:[#allocation8_spill]] %s8135_s20  ;;  %s37_s28 = sadd.s32 1, %s8147_s23 }
  0x11   : > { %9823 = sst [smem:[#allocation9_spill]] %s8139_s21  ;;  %p38_p0 = scmp.ge.s32.totalorder %s37_s28, 2 }
  0x12   : > { %9824 = sst [smem:[#allocation10_spill]] %s8143_s22  ;;  %s40_s29 = sadd.s32 1, %s8151_s24 }
  0x13   : > { %9825 = sst [smem:[#allocation11_spill]] %s8147_s23  ;;  %p437_p1 = scmp.ne.s32.totalorder %s8135_s20, %s8131_s19 }
  0x14   : > { %9826 = sst [smem:[#allocation12_spill]] %s8151_s24  ;;  %p438_p2 = scmp.eq.s32.totalorder %s6580_s26, 3 }
  0x15   : > { %9827 = sst [smem:[#allocation13_spill]] %s8155_s25  ;;  %s9867_s28 = smov (%p38_p0, %s37_s28), 0 }
  0x16   : > { %9828 = sst [smem:[#allocation14_spill]] %s9867_s28  ;;  %s9869_s29 = smov (!%p38_p0, %s40_s29), %s8151_s24 }
  0x17   : > { %p8291_p3 = por %p438_p2, %p437_p1  ;;  %p443_p4 = scmp.ne.s32.totalorder %s8131_s19, %s8127_s18 }
  0x18   : > { %p42_p5 = scmp.ge.s32.totalorder %s9869_s29, 2  ;;  %p444_p6 = scmp.eq.s32.totalorder %s6581_s27, 3 }
  0x19   : > { %s9829_s30 = scalar_select %p8291_p3, 1, 0 }
  0x1a   : > { %p6584_p7 = scmp.ge.s32.totalorder %s8155_s25, 1  ;;  %p560_p8 = scmp.lt.s32.totalorder %s8155_s25, 5 }
  0x1b   : > { %9830 = sst [smem:[#allocation15_spill]] %s9829_s30  ;;  %s9871_s29 = smov (%p42_p5, %s9869_s29), 0 }
  0x1c   : > { %9831 = sst [smem:[#allocation16_spill]] %s9871_s29  ;;  %p8301_p9 = por %p444_p6, %p443_p4 }
  0x1d   : > { %p561_p10 = pnand %p6584_p7, %p560_p8  ;;  %s424_s17 = ssub.s32 %s8151_s24, %s9871_s29 }
  0x1e   : > { %s9832_s16 = scalar_select %p8301_p9, 1, 0 }
  0x1f   : > { %s427_s26 = sadd.s32 1, %s8135_s20  ;;  %p425_p11 = scmp.eq.s32.totalorder %s424_s17, 0 }
  0x20   : > { %9833 = sst [smem:[#allocation17_spill]] %s9832_s16  ;;  %564 = sbr.rel (%p561_p10) target bundleno = 5923 (0x1723), region = 80 }
  0x21   : > { %s8309_s28 = scalar_select %p425_p11, %s8135_s20, %s427_s26  }
  0x23   : > { %9834 = sst [smem:[#allocation18_spill]] %s8309_s28 }
  0x27   : > { %s9799_s27 = sand.u32 1, %s8131_s19   ;;  %p656_p12 = scmp.lt.s32.totalorder %s8143_s22, 1 }
  0x28   : > { %s6585_s23 = sshll.u32 %s9799_s27, 6  ;;  %p661_p13 = scmp.lt.s32.totalorder %s8139_s21, 1 }
  0x29   : > { %s657_s18 = scalar_select %p656_p12, %s8143_s22, 1 }
  0x2a   : > { %s8318_s16 = scalar_select %p661_p13, %s8139_s21, 1 }
  0x2b   : > { %s6804_s17 = sshll.u32 %s657_s18, 6  ;;  %s9835_s0 = sld [smem:[#allocation20_spill]] }
  0x2c   : > { %s6805_s19 = sshll.u32 %s8318_s16, 7  ;;  %s9836_s5 = sld [smem:[#allocation23_spill]] }
  0x2d   : > { %s9837_s6 = sld [smem:[#allocation24_spill]]  ;;  %s9839_s7 = sld [smem:[#allocation25_spill]] }
  0x2e   : > { %s6808_s27 = sshll.u32 %s8318_s16, 5  ;;  %s9840_s8 = sld [smem:[#allocation26_spill]] }
  0x2f   : > { %s692_s21 = scalar_lea.vmem %s9788_s10, %s8318_s16  ;;  %s708_s22 = scalar_lea.vmem %s9792_s14, %s8318_s16 }
  0x31   : > { %s8323_s24 = scalar_lea.vmem %s9835_s0, %s6804_s17  ;;  %s8366_s17 = scalar_lea.vmem %s9789_s11, %s6808_s27 }
  0x32   : > { %s8337_s2 = scalar_lea.vmem %s9836_s5, %s6805_s19  ;;  %s8381_s0 = scalar_lea.vmem [#allocation3], %s6585_s23 }
  0x33   : > { %s8342_s29 = scalar_lea.vmem %s9837_s6, %s6805_s19  ;;  %s8347_s28 = scalar_lea.vmem %s9839_s7, %s6805_s19 }
  0x34   : > { %9838 = sst [smem:[#allocation19_spill]] %s8342_s29  ;;  %s8353_s25 = scalar_lea.vmem %s9840_s8, %s6808_s27 }
  0x35   : > { %s700_s29 = scalar_lea.vmem %s9790_s12, %s8318_s16  ;;  %s8375_s8 = scalar_lea.vmem %s9791_s13, %s6805_s19 }
  0x36   : > { %s9841_s5 = sld [smem:[#allocation9_spill]] }
  0x3c   : > { %p6600_p0 = scmp.ne.s32.totalorder %s9841_s5, 0 }
  0x3d   : > { %v714_v0 = vld [vmem:[%s8323_s24] sm:$0xff] (!%p6600_p0)  ;;  %vm722_vm0 = vcmask (!%p6600_p0), 261120   ;;  %v715_v1 = vld [vmem:[%s8323_s24 + $0x8] sm:$0xff] (!%p6600_p0)  ;;  %v716_v2 = vld [vmem:[%s8323_s24 + $0x10] sm:$0xff] (!%p6600_p0) }
  0x3e   : > { %713 = sbr.rel (%p6600_p0) target bundleno = 69 (0x45), region = 84  ;;  %723 = vst.msk [vmem:[#allocation2] sm:$0xff] (!%p6600_p0), %vm722_vm0, %v714_v0  ;;  %724 = vst.msk [vmem:[#allocation2 + $0x8] sm:$0xff] (!%p6600_p0), %vm722_vm0, %v715_v1  ;;  %v717_v3 = vld [vmem:[%s8323_s24 + $0x18] sm:$0xff] (!%p6600_p0)  ;;  %v718_v4 = vld [vmem:[%s8323_s24 + $0x20] sm:$0xff] (!%p6600_p0) }
  0x3f   : > { %725 = vst.msk [vmem:[#allocation2 + $0x10] sm:$0xff] (!%p6600_p0), %vm722_vm0, %v716_v2  ;;  %v719_v5 = vld [vmem:[%s8323_s24 + $0x28] sm:$0xff] (!%p6600_p0)  ;;  %726 = vst.msk [vmem:[#allocation2 + $0x18] sm:$0xff] (!%p6600_p0), %vm722_vm0, %v717_v3  ;;  %v720_v6 = vld [vmem:[%s8323_s24 + $0x30] sm:$0xff] (!%p6600_p0) }
  0x40   : > { %727 = vst.msk [vmem:[#allocation2 + $0x20] sm:$0xff] (!%p6600_p0), %vm722_vm0, %v718_v4  ;;  %728 = vst.msk [vmem:[#allocation2 + $0x28] sm:$0xff] (!%p6600_p0), %vm722_vm0, %v719_v5  ;;  %v721_v7 = vld [vmem:[%s8323_s24 + $0x38] sm:$0xff] (!%p6600_p0) }
  0x41   : > { %729 = vst.msk [vmem:[#allocation2 + $0x30] sm:$0xff] (!%p6600_p0), %vm722_vm0, %v720_v6  ;;  %730 = vst.msk [vmem:[#allocation2 + $0x38] sm:$0xff] (!%p6600_p0), %vm722_vm0, %v721_v7 }
  0x45 PF: > { %v731_v8 = vld [vmem:[#allocation2] sm:$0xff]  ;;  %vm757_vm1 = vcmask 261120   ;;  %v732_v10 = vld [vmem:[#allocation2 + $0x8] sm:$0xff]  ;;  %s9842_s19 = sld [smem:[#allocation22_spill]]  ;;  %vm899_vm2 = vcmask 523264   ;;  %s9844_s5 = scalar_lea.vmem %s9781_s3, %s8318_s16  ;;  %vm8158_vm3 = vmmov 0  }
  0x46   : > { %v733_v9 = vld [vmem:[#allocation2 + $0x10] sm:$0xff]  ;;  %v758_v11 = vsel %vm757_vm1, %v731_v8, 0.0  ;;  %v734_v13 = vld [vmem:[#allocation2 + $0x18] sm:$0xff]  ;;  %v761_v14 = vsel %vm757_vm1, %v732_v10, 0.0  ;;  %vm1234_vm4 = vcmask 64512   ;;  %vm1726_vm5 = vcmask 1043456  }
  0x47   : > { %v764_v12 = vsel %vm757_vm1, %v733_v9, 0.0  ;;  %759 = vadd.xlane.f32.xlu0 %v758_v11  ;;  %v767_v15 = vsel %vm757_vm1, %v734_v13, 0.0  ;;  %v735_v16 = vld [vmem:[#allocation2 + $0x20] sm:$0xff]  ;;  %v736_v17 = vld [vmem:[#allocation2 + $0x28] sm:$0xff] }
  0x48   : > { %765 = vadd.xlane.f32.xlu1 %v764_v12  ;;  %v770_v18 = vsel %vm757_vm1, %v735_v16, 0.0  ;;  %v773_v19 = vsel %vm757_vm1, %v736_v17, 0.0  ;;  %v737_v20 = vld [vmem:[#allocation2 + $0x30] sm:$0xff]  ;;  %v738_v21 = vld [vmem:[#allocation2 + $0x38] sm:$0xff] }
  0x49   : > { %v776_v22 = vsel %vm757_vm1, %v737_v20, 0.0  ;;  %v779_v23 = vsel %vm757_vm1, %v738_v21, 0.0 }
  0x4b   : > { %762 = vadd.xlane.f32.xlu0 %v761_v14  ;;  %s9843_s27 = smov %s9842_s19  ;;  %v739_v0 = vld [vmem:[%s9842_s19] sm:$0xff]  ;;  %s9845_s19 = scalar_lea.vmem %s9782_s4, %s8318_s16 }
  0x4c   : > { %768 = vadd.xlane.f32.xlu1 %v767_v15  ;;  %v740_v1 = vld [vmem:[%s9843_s27 + $0x8] sm:$0xff]  ;;  %v743_v2 = vld [vmem:[%s9843_s27 + $0x20] sm:$0xff] }
  0x4d   : > { %v8449_v3 = vpack.c.bf16 %v740_v1, %v739_v0  ;;  %v744_v4 = vld [vmem:[%s9843_s27 + $0x28] sm:$0xff] }
  0x4e   : > { %v8454_v5 = vpack.c.bf16 %v744_v4, %v743_v2  ;;  %v977_v2 = vld [vmem:[%s8337_s2] sm:$0xff]  ;;  %v978_v4 = vld [vmem:[%s8337_s2 + $0x8] sm:$0xff] }
  0x4f   : > { %771 = vadd.xlane.f32.xlu0 %v770_v18  ;;  %7098 = vmatprep.mubr.msk.bf16.mxu0 %vm899_vm2, %v8449_v3 }
  0x50   : > { %774 = vadd.xlane.f32.xlu1 %v773_v19  ;;  %7102 = vmatprep.mubr.msk.bf16.mxu1 %vm899_vm2, %v8454_v5 }
  0x53   : > { %777 = vadd.xlane.f32.xlu0 %v776_v22 }
  0x54   : > { %780 = vadd.xlane.f32.xlu1 %v779_v23 }
  0xd4   : > { %v760_v24 = vpop.xlane.xlu0 %759 }
  0xd5   : > { %v766_v25 = vpop.xlane.xlu1 %765  ;;  %v783_v26 = vmul.f32 0.03125, %v760_v24 }
  0xd6   : > { %v785_v27 = vmul.f32 0.03125, %v766_v25 }
  0xd7   : > { %v8400_v28 = vsub.f32 %v731_v8, %v783_v26 }
  0xd8   : > { %v8402_v29 = vsub.f32 %v733_v9, %v785_v27  ;;  %v763_v30 = vpop.xlane.xlu0 %762 }
  0xd9   : > { %v769_v31 = vpop.xlane.xlu1 %768  ;;  %v784_v32 = vmul.f32 0.03125, %v763_v30  ;;  %v799_v34 = vmul.f32 %v8400_v28, %v8400_v28 }
  0xda   : > { %v786_v33 = vmul.f32 0.03125, %v769_v31  ;;  %v801_v35 = vmul.f32 %v8402_v29, %v8402_v29 }
  0xdb   : > { %v8408_v36 = vsub.f32 %v732_v10, %v784_v32  ;;  %v807_v38 = vsel %vm757_vm1, %v799_v34, 0.0  ;;  %v6601_v32 = vld [vmem:[%s9844_s5] ss:$0 sm:$0xff]  ;;  %s9846_s5 = sld [smem:[#allocation19_spill]] }
  0xdc   : > { %v8410_v37 = vsub.f32 %v734_v13, %v786_v33  ;;  %808 = vadd.xlane.f32.xlu0 %v807_v38  ;;  %v772_v39 = vpop.xlane.xlu0 %771  ;;  %v813_v41 = vsel %vm757_vm1, %v801_v35, 0.0 }
  0xdd   : > { %v775_v40 = vpop.xlane.xlu1 %774  ;;  %v787_v42 = vmul.f32 0.03125, %v772_v39  ;;  %v800_v44 = vmul.f32 %v8408_v36, %v8408_v36 }
  0xde   : > { %v788_v43 = vmul.f32 0.03125, %v775_v40  ;;  %v802_v45 = vmul.f32 %v8410_v37, %v8410_v37 }
  0xdf   : > { %v8418_v46 = vsub.f32 %v735_v16, %v787_v42  ;;  %v810_v48 = vsel %vm757_vm1, %v800_v44, 0.0 }
  0xe0   : > { %v8420_v47 = vsub.f32 %v736_v17, %v788_v43  ;;  %814 = vadd.xlane.f32.xlu0 %v813_v41  ;;  %811 = vadd.xlane.f32.xlu1 %v810_v48  ;;  %v778_v49 = vpop.xlane.xlu0 %777  ;;  %v816_v51 = vsel %vm757_vm1, %v802_v45, 0.0 }
  0xe1   : > { %v781_v50 = vpop.xlane.xlu1 %780  ;;  %v789_v52 = vmul.f32 0.03125, %v778_v49  ;;  %v803_v54 = vmul.f32 %v8418_v46, %v8418_v46 }
  0xe2   : > { %v790_v53 = vmul.f32 0.03125, %v781_v50  ;;  %v804_v55 = vmul.f32 %v8420_v47, %v8420_v47 }
  0xe3   : > { %v8428_v56 = vsub.f32 %v737_v20, %v789_v52  ;;  %v819_v58 = vsel %vm757_vm1, %v803_v54, 0.0 }
  0xe4   : > { %v8430_v57 = vsub.f32 %v738_v21, %v790_v53  ;;  %817 = vadd.xlane.f32.xlu1 %v816_v51  ;;  %820 = vadd.xlane.f32.xlu0 %v819_v58  ;;  %v822_v59 = vsel %vm757_vm1, %v804_v55, 0.0 }
  0xe5   : > { %v805_v60 = vmul.f32 %v8428_v56, %v8428_v56 }
  0xe6   : > { %v806_v61 = vmul.f32 %v8430_v57, %v8430_v57 }
  0xe7   : > { %v825_v62 = vsel %vm757_vm1, %v805_v60, 0.0 }
  0xe8   : > { %823 = vadd.xlane.f32.xlu1 %v822_v59  ;;  %826 = vadd.xlane.f32.xlu0 %v825_v62  ;;  %v828_v63 = vsel %vm757_vm1, %v806_v61, 0.0 }
  0xec   : > { %829 = vadd.xlane.f32.xlu1 %v828_v63 }
 0x169   : > { %v809_v6 = vpop.xlane.xlu0 %808 }
 0x16a   : > { %v831_v7 = vmul.f32 0.03125, %v809_v6  ;;  %v1147_v6 = vld [vmem:[%s8347_s28] sm:$0xff] }
 0x16c   : > { %v839_v8 = vadd.f32 1e-05, %v831_v7  ;;  %v1148_v7 = vld [vmem:[%s8347_s28 + $0x8] sm:$0xff] }
 0x16d   : > { %v812_v9 = vpop.xlane.xlu1 %811  ;;  %v815_v10 = vpop.xlane.xlu0 %814 }
 0x16e   : > { %7885 = vrsqrt.f32 %v839_v8  ;;  %v832_v11 = vmul.f32 0.03125, %v812_v9  ;;  %v833_v12 = vmul.f32 0.03125, %v815_v10  ;;  %v742_v10 = vld [vmem:[%s9843_s27 + $0x18] sm:$0xff] }
 0x170   : > { %v840_v13 = vadd.f32 1e-05, %v832_v11  ;;  %v841_v14 = vadd.f32 1e-05, %v833_v12  ;;  %v745_v11 = vld [vmem:[%s9843_s27 + $0x30] sm:$0xff]  ;;  %v746_v12 = vld [vmem:[%s9843_s27 + $0x38] sm:$0xff] }
 0x171   : > { %v818_v15 = vpop.xlane.xlu1 %817  ;;  %v821_v16 = vpop.xlane.xlu0 %820 }
 0x172   : > { %7887 = vrsqrt.f32 %v840_v13  ;;  %v834_v17 = vmul.f32 0.03125, %v818_v15  ;;  %v835_v18 = vmul.f32 0.03125, %v821_v16  ;;  %v1151_v15 = vpack.c.bf16 %v1148_v7, %v1147_v6  ;;  %v979_v16 = vld [vmem:[%s8337_s2 + $0x10] sm:$0xff] }
 0x173   : > { %7889 = vrsqrt.f32 %v841_v14  ;;  %v981_v14 = vpack.c.bf16 %v978_v4, %v977_v2 }
 0x174   : > { %v842_v19 = vadd.f32 1e-05, %v834_v17  ;;  %v843_v20 = vadd.f32 1e-05, %v835_v18  ;;  %v980_v17 = vld [vmem:[%s8337_s2 + $0x18] sm:$0xff] }
 0x175   : > { %v824_v21 = vpop.xlane.xlu1 %823  ;;  %v827_v22 = vpop.xlane.xlu0 %826 }
 0x176   : > { %7891 = vrsqrt.f32 %v842_v19  ;;  %v836_v23 = vmul.f32 0.03125, %v824_v21  ;;  %v837_v24 = vmul.f32 0.03125, %v827_v22  ;;  %v8520_v19 = vpack.c.bf16 %v746_v12, %v745_v11  ;;  %v1060_v21 = vld [vmem:[%s9846_s5] sm:$0xff]  ;;  %v1061_v22 = vld [vmem:[%s9846_s5 + $0x8] sm:$0xff] }
 0x177   : > { %7893 = vrsqrt.f32 %v843_v20  ;;  %v982_v20 = vpack.c.bf16 %v980_v17, %v979_v16 }
 0x178   : > { %v7886_v25 = vpop.eup %7885  ;;  %v844_v26 = vadd.f32 1e-05, %v836_v23  ;;  %v845_v27 = vadd.f32 1e-05, %v837_v24  ;;  %v1068_v23 = vpack.c.bf16 %v1061_v22, %v1060_v21  ;;  %v1062_v24 = vld [vmem:[%s9846_s5 + $0x10] sm:$0xff] }
 0x179   : > { %v855_v30 = vmul.f32 %v7886_v25, %v8400_v28  ;;  %v830_v31 = vpop.xlane.xlu1 %829  ;;  %v6602_v28 = vld [vmem:[%s9845_s19] ss:$0 sm:$0xff]  ;;  %v1063_v25 = vld [vmem:[%s9846_s5 + $0x18] sm:$0xff]  ;;  %s9847_s19 = sld [smem:[#allocation21_spill]] }
 0x17a   : > { %7895 = vrsqrt.f32 %v844_v26  ;;  %v838_v33 = vmul.f32 0.03125, %v830_v31  ;;  %v1149_v26 = vld [vmem:[%s8347_s28 + $0x10] sm:$0xff] }
 0x17b   : > { %7897 = vrsqrt.f32 %v845_v27  ;;  %v869_v39 = vmul.f32 %v6601_v32, %v855_v30  ;;  %v1069_v27 = vpack.c.bf16 %v1063_v25, %v1062_v24  ;;  %v1150_v30 = vld [vmem:[%s8347_s28 + $0x18] sm:$0xff] }
 0x17c   : > { %v7888_v34 = vpop.eup %7887  ;;  %v846_v35 = vadd.f32 1e-05, %v838_v33  ;;  %v1152_v31 = vpack.c.bf16 %v1150_v30, %v1149_v26 }
 0x17d   : > { %v7890_v38 = vpop.eup %7889  ;;  %v856_v40 = vmul.f32 %v7888_v34, %v8408_v36  ;;  %v883_v45 = vadd.f32 %v6602_v28, %v869_v39 }
 0x17e   : > { %v857_v41 = vmul.f32 %v7890_v38, %v8402_v29  ;;  %7899 = vrsqrt.f32 %v846_v35 }
 0x17f   : > { %v870_v42 = vmul.f32 %v6601_v32, %v856_v40  ;;  %s9848_s26 = smov %s9847_s19 }
 0x180   : > { %v7892_v43 = vpop.eup %7891  ;;  %v871_v49 = vmul.f32 %v6601_v32, %v857_v41 }
 0x181   : > { %v7894_v44 = vpop.eup %7893  ;;  %v884_v48 = vadd.f32 %v6602_v28, %v870_v42  ;;  %v858_v50 = vmul.f32 %v7892_v43, %v8410_v37 }
 0x182   : > { %v859_v51 = vmul.f32 %v7894_v44, %v8418_v46  ;;  %v885_v58 = vadd.f32 %v6602_v28, %v871_v49 }
 0x183   : > { %v8475_v52 = vpack.c.bf16 %v884_v48, %v883_v45  ;;  %v872_v36 = vmul.f32 %v6601_v32, %v858_v50 }
 0x184   : > { %v7896_v53 = vpop.eup %7895  ;;  %v873_v54 = vmul.f32 %v6601_v32, %v859_v51 }
 0x185   : > { %v7898_v55 = vpop.eup %7897  ;;  %v886_v59 = vadd.f32 %v6602_v28, %v872_v36  ;;  %v860_v29 = vmul.f32 %v7896_v53, %v8420_v47  ;;  %7090 = vmatprep.subr.bf16.mxu0 %v8475_v52  ;;  %7774 = vmatprep.subr.bf16.mxu1 %v8475_v52 }
 0x186   : > { %v861_v60 = vmul.f32 %v7898_v55, %v8428_v56  ;;  %7091 = vmatpush3.bf16.msra.mxu0 %v8475_v52  ;;  %7778 = vmatpush3.bf16.msra.mxu1 %v8475_v52  ;;  %v887_v62 = vadd.f32 %v6602_v28, %v873_v54  ;;  %v8157_v55 = vmov 0.0  }
 0x187   : > { %v8483_v37 = vpack.c.bf16 %v886_v59, %v885_v58  ;;  %v874_v46 = vmul.f32 %v6601_v32, %v860_v29 }
 0x188   : > { %v7900_v61 = vpop.eup %7899  ;;  %v875_v63 = vmul.f32 %v6601_v32, %v861_v60 }
 0x189   : > { %v888_v47 = vadd.f32 %v6602_v28, %v874_v46  ;;  %v862_v0 = vmul.f32 %v7900_v61, %v8430_v57  ;;  %7092 = vmatprep.subr.bf16.mxu0 %v8483_v37  ;;  %7775 = vmatprep.subr.bf16.mxu1 %v8483_v37  ;;  %v741_v57 = vld [vmem:[%s9843_s27 + $0x10] sm:$0xff] }
 0x18a   : > { %7093 = vmatpush3.bf16.msra.mxu0 %v8483_v37  ;;  %7779 = vmatpush3.bf16.msra.mxu1 %v8483_v37  ;;  %v889_v8 = vadd.f32 %v6602_v28, %v875_v63  ;;  %v8518_v18 = vpack.c.bf16 %v742_v10, %v741_v57 }
 0x18b   : > { %v8490_v56 = vpack.c.bf16 %v888_v47, %v887_v62  ;;  %v876_v1 = vmul.f32 %v6601_v32, %v862_v0 }
 0x18d   : > { %v890_v9 = vadd.f32 %v6602_v28, %v876_v1  ;;  %7094 = vmatprep.subr.bf16.mxu0 %v8490_v56  ;;  %7776 = vmatprep.subr.bf16.mxu1 %v8490_v56 }
 0x18e   : > { %7095 = vmatpush3.bf16.msra.mxu0 %v8490_v56  ;;  %7780 = vmatpush3.bf16.msra.mxu1 %v8490_v56 }
 0x18f   : > { %v8512_v13 = vpack.c.bf16 %v890_v9, %v889_v8 }
 0x191   : > { %7096 = vmatprep.subr.bf16.mxu0 %v8512_v13  ;;  %7777 = vmatprep.subr.bf16.mxu1 %v8512_v13 }
 0x192   : > { %7097 = vmatpush3.bf16.msra.mxu0 %v8512_v13  ;;  %7781 = vmatpush3.bf16.msra.mxu1 %v8512_v13 }
 0x193   : > { %7106 = vmatprep.subr.bf16.mxu1 %v981_v14  ;;  %7130 = vmatprep.subr.bf16.mxu0 %v1151_v15 }
 0x195   : > { %7099 = vmatmul.mubr.msk.bf16.vlgmr.msra.gmra.mrb[0].mxu0 %vm899_vm2, %v8518_v18  ;;  %7103 = vmatmul.mubr.msk.bf16.vlgmr.msra.gmra.mrb[0].mxu1 %vm899_vm2, %v8520_v19 }
 0x196   : > { %7107 = vmatpush3.bf16.msra.mxu1 %v981_v14  ;;  %7110 = vmatprep.mubr.msk.bf16.mxu1 %vm757_vm1, %v8475_v52 }
 0x197   : > { %7108 = vmatprep.subr.bf16.mxu1 %v982_v20  ;;  %7131 = vmatpush3.bf16.msra.mxu0 %v1151_v15 }
 0x198   : > { %7132 = vmatprep.subr.bf16.mxu0 %v1152_v31 }
 0x19a   : > { %7109 = vmatpush3.bf16.msra.mxu1 %v982_v20 }
 0x19b   : > { %7118 = vmatprep.subr.bf16.mxu1 %v1068_v23  ;;  %7133 = vmatpush3.bf16.msra.mxu0 %v1152_v31 }
 0x19c   : > { %7148 = vmatprep.subr.bf16.mxu0 %v8157_v55 }
 0x19d   : > { %7111 = vmatmul.mubr.msk.bf16.vlgmr.msra.gmra.mrb[4].mxu1 %vm757_vm1, %v8483_v37 }
 0x19e   : > { %7114 = vmatprep.mubr.msk.bf16.mxu1 %vm757_vm1, %v8490_v56  ;;  %7119 = vmatpush3.bf16.msra.mxu1 %v1068_v23 }
 0x19f   : > { %7120 = vmatprep.subr.bf16.mxu1 %v1069_v27 }
 0x1a2   : > { %7121 = vmatpush3.bf16.msra.mxu1 %v1069_v27 }
 0x1a3   : > { %7142 = vmatprep.subr.bf16.mxu1 %v8157_v55 }
 0x1a5   : > { %7115 = vmatmul.mubr.msk.bf16.gmra.mrb[8].mxu1 %vm757_vm1, %v8512_v13 }
 0x268   : > { %v7100_v32 = vpop.f32.mrb[0].mxu0  ;;  %v7104_v33 = vpop.f32.mrb[0].mxu1 }
 0x269   : > { %v946_v34 = vpop.f32.mrb[1].mxu0  ;;  %v962_v35 = vpop.f32.mrb[1].mxu1 }
 0x26a   : > { %v7101_v38 = vpop.f32.mrb[2].mxu0  ;;  %v7105_v39 = vpop.f32.mrb[2].mxu1 }
 0x26b   : > { %v8542_v40 = vpack.c.bf16 %v7101_v38, %v7100_v32  ;;  %v949_v28 = vpop.f32.mrb[3].mxu0  ;;  %v8544_v41 = vpack.c.bf16 %v7105_v39, %v7104_v33  ;;  %v965_v42 = vpop.f32.mrb[3].mxu1 }
 0x26c   : > { %v8546_v43 = vpack.c.bf16 %v949_v28, %v946_v34  ;;  %v8548_v44 = vpack.c.bf16 %v965_v42, %v962_v35 }
 0x26e   : > { %7122 = vmatprep.mubr.msk.bf16.mxu1 %vm757_vm1, %v8546_v43  ;;  %7134 = vmatprep.mubr.msk.bf16.mxu0 %vm757_vm1, %v8546_v43 }
 0x26f   : > { %7123 = vmatmul.mubr.msk.bf16.vlgmr.msra.gmra.mrb[12].mxu1 %vm757_vm1, %v8542_v40  ;;  %7135 = vmatmul.mubr.msk.bf16.vlgmr.msra.gmra.mrb[4].mxu0 %vm757_vm1, %v8542_v40 }
 0x270   : > { %v8558_v45 = vpop.f32.mrb[4].mxu1  ;;  %7126 = vmatprep.mubr.msk.bf16.mxu1 %vm757_vm1, %v8548_v44  ;;  %7138 = vmatprep.mubr.msk.bf16.mxu0 %vm757_vm1, %v8548_v44 }
 0x271   : > { %v1029_v48 = vpop.f32.mrb[5].mxu1  ;;  %v1220_v22 = vpack.c.bf16 %v8558_v45, %v8558_v45 }
 0x272   : > { %v8564_v49 = vpop.f32.mrb[6].mxu1  ;;  %v1218_v57 = vpack.c.bf16 %v1029_v48, %v1029_v48 }
 0x273   : > { %v1032_v50 = vpop.f32.mrb[7].mxu1  ;;  %v1221_v24 = vpack.c.bf16 %v8564_v49, %v8564_v49  ;;  %v8663_v49 = vld [vmem:[%s9847_s19] sm:$0xff] }
 0x274   : > { %v1219_v16 = vpack.c.bf16 %v1032_v50, %v1032_v50 }
 0x277   : > { %7127 = vmatmul.mubr.msk.bf16.gmra.mrb[16].mxu1 %vm757_vm1, %v8544_v41  ;;  %7139 = vmatmul.mubr.msk.bf16.gmra.mrb[8].mxu0 %vm757_vm1, %v8544_v41 }
 0x278   : > { %v8570_v51 = vpop.f32.mrb[8].mxu1  ;;  %7144 = vmatprep.mubr.msk.bf16.mxu1 %vm8158_vm3, %v8157_v55  ;;  %7150 = vmatprep.mubr.msk.bf16.mxu0 %vm8158_vm3, %v8157_v55 }
 0x279   : > { %v8572_v36 = vpop.f32.mrb[9].mxu1  ;;  %v1224_v38 = vpack.c.bf16 %v8570_v51, %v8570_v51 }
 0x27a   : > { %v8574_v53 = vpop.f32.mrb[10].mxu1  ;;  %v1222_v30 = vpack.c.bf16 %v8572_v36, %v8572_v36 }
 0x27b   : > { %v8576_v54 = vpop.f32.mrb[11].mxu1  ;;  %v1225_v28 = vpack.c.bf16 %v8574_v53, %v8574_v53 }
 0x27c   : > { %v1223_v32 = vpack.c.bf16 %v8576_v54, %v8576_v54  ;;  %v8668_v54 = vld [vmem:[%s9848_s26 + $0x8] sm:$0xff] }
 0x342   : > { %v7124_v58 = vpop.f32.mrb[12].mxu1  ;;  %v8584_v59 = vpop.f32.mrb[4].mxu0 }
 0x343   : > { %v1116_v29 = vpop.f32.mrb[13].mxu1  ;;  %v8586_v60 = vpop.f32.mrb[5].mxu0  ;;  %v1228_v4 = vpack.c.bf16 %v7124_v58, %v7124_v58 }
 0x344   : > { %v1226_v46 = vpack.c.bf16 %v1116_v29, %v1116_v29  ;;  %v7125_v61 = vpop.f32.mrb[14].mxu1  ;;  %v8588_v62 = vpop.f32.mrb[6].mxu0  ;;  %v1715_v35 = vpack.c.bf16 %v8586_v60, %v8586_v60 }
 0x345   : > { %v1119_v47 = vpop.f32.mrb[15].mxu1  ;;  %v8590_v63 = vpop.f32.mrb[7].mxu0  ;;  %v1229_v10 = vpack.c.bf16 %v7125_v61, %v7125_v61  ;;  %v1331_v17 = vsel %vm1234_vm4, %v1228_v4, 0  ;;  %v8683_v4 = vld [vmem:[%s9848_s26 + $0x10] sm:$0xff] }
 0x346   : > { %v1239_v0 = vsel %vm1234_vm4, %v1226_v46, 0  ;;  %v1227_v1 = vpack.c.bf16 %v1119_v47, %v1119_v47  ;;  %v1716_v39 = vpack.c.bf16 %v8590_v63, %v8590_v63  ;;  %v1728_v42 = vsel %vm1726_vm5, %v1715_v35, 0 }
 0x347   : > { %7143 = vmatpush3.bf16.xpose.msra.mxu1 %v1239_v0  ;;  %v1377_v20 = vsel %vm1234_vm4, %v1229_v10, 0 }
 0x348   : > { %v1285_v2 = vsel %vm1234_vm4, %v1227_v1, 0  ;;  %7154 = vmatprep.subr.bf16.mxu1 %v8157_v55  ;;  %v1774_v45 = vsel %vm1726_vm5, %v1716_v39, 0 }
 0x349   : > { %7149 = vmatpush3.bf16.xpose.msra.mxu0 %v1285_v2 }
 0x34a   : > { %v7128_v6 = vpop.f32.mrb[16].mxu1  ;;  %v8595_v7 = vpop.f32.mrb[8].mxu0  ;;  %7160 = vmatprep.subr.bf16.mxu0 %v8157_v55 }
 0x34b   : > { %v1132_v8 = vpop.f32.mrb[17].mxu1  ;;  %v8598_v9 = vpop.f32.mrb[9].mxu0  ;;  %v1232_v27 = vpack.c.bf16 %v7128_v6, %v7128_v6 }
 0x34c   : > { %v7129_v11 = vpop.f32.mrb[18].mxu1  ;;  %v8600_v12 = vpop.f32.mrb[10].mxu0  ;;  %v1230_v21 = vpack.c.bf16 %v1132_v8, %v1132_v8 }
 0x34d   : > { %v1135_v14 = vpop.f32.mrb[19].mxu1  ;;  %v8602_v15 = vpop.f32.mrb[11].mxu0  ;;  %v1233_v31 = vpack.c.bf16 %v7129_v11, %v7129_v11  ;;  %v1515_v33 = vsel %vm1234_vm4, %v1232_v27, 0  ;;  %v8688_v11 = vld [vmem:[%s9848_s26 + $0x18] sm:$0xff]  ;;  %v8697_v27 = vld [vmem:[%s9848_s26 + $0x20] sm:$0xff] }
 0x34e   : > { %7145 = vmatmul.mubr.msk.bf16.vlgmr.msra.gmra.mrb[20].mxu1 %vm1234_vm4, %v1218_v57  ;;  %v1231_v23 = vpack.c.bf16 %v1135_v14, %v1135_v14  ;;  %v1423_v25 = vsel %vm1234_vm4, %v1230_v21, 0 }
 0x34f   : > { %7155 = vmatpush3.bf16.xpose.msra.mxu1 %v1331_v17  ;;  %7156 = vmatprep.mubr.msk.bf16.mxu1 %vm8158_vm3, %v8157_v55  ;;  %v1561_v34 = vsel %vm1234_vm4, %v1233_v31, 0 }
 0x350   : > { %7151 = vmatmul.mubr.msk.bf16.vlgmr.msra.gmra.mrb[12].mxu0 %vm1234_vm4, %v1219_v16  ;;  %7166 = vmatprep.subr.bf16.mxu1 %v8157_v55  ;;  %v1469_v26 = vsel %vm1234_vm4, %v1231_v23, 0 }
 0x351   : > { %7161 = vmatpush3.bf16.xpose.msra.mxu0 %v1377_v20  ;;  %7162 = vmatprep.mubr.msk.bf16.mxu0 %vm8158_vm3, %v8157_v55 }
 0x352   : > { %7172 = vmatprep.subr.bf16.mxu0 %v8157_v55 }
 0x356   : > { %7157 = vmatmul.mubr.msk.bf16.vlgmr.msra.gmra.mrb[24].mxu1 %vm1234_vm4, %v1220_v22 }
 0x357   : > { %7167 = vmatpush3.bf16.xpose.msra.mxu1 %v1423_v25  ;;  %7168 = vmatprep.mubr.msk.bf16.mxu1 %vm8158_vm3, %v8157_v55 }
 0x358   : > { %7163 = vmatmul.mubr.msk.bf16.vlgmr.msra.gmra.mrb[16].mxu0 %vm1234_vm4, %v1221_v24  ;;  %7178 = vmatprep.subr.bf16.mxu1 %v8157_v55 }
 0x359   : > { %7173 = vmatpush3.bf16.xpose.msra.mxu0 %v1469_v26  ;;  %7174 = vmatprep.mubr.msk.bf16.mxu0 %vm8158_vm3, %v8157_v55 }
 0x35a   : > { %7184 = vmatprep.subr.bf16.mxu0 %v8157_v55 }
 0x35e   : > { %7169 = vmatmul.mubr.msk.bf16.vlgmr.msra.gmra.mrb[28].mxu1 %vm1234_vm4, %v1222_v30 }
 0x35f   : > { %7179 = vmatpush3.bf16.xpose.msra.mxu1 %v1515_v33  ;;  %7180 = vmatprep.mubr.msk.bf16.mxu1 %vm8158_vm3, %v8157_v55 }
 0x360   : > { %7175 = vmatmul.mubr.msk.bf16.vlgmr.msra.gmra.mrb[20].mxu0 %vm1234_vm4, %v1223_v32  ;;  %7190 = vmatprep.subr.bf16.mxu1 %v8157_v55 }
 0x361   : > { %7185 = vmatpush3.bf16.xpose.msra.mxu0 %v1561_v34  ;;  %7186 = vmatprep.mubr.msk.bf16.mxu0 %vm8158_vm3, %v8157_v55  ;;  %v8702_v34 = vld [vmem:[%s9848_s26 + $0x28] sm:$0xff] }
 0x362   : > { %7196 = vmatprep.subr.bf16.mxu0 %v8157_v55 }
 0x366   : > { %7181 = vmatmul.mubr.msk.bf16.vlgmr.msra.gmra.mrb[32].mxu1 %vm1234_vm4, %v1224_v38 }
 0x367   : > { %7191 = vmatpush3.bf16.msra.mxu1 %v1728_v42  ;;  %7192 = vmatprep.mubr.msk.bf16.mxu1 %vm8158_vm3, %v8157_v55 }
 0x368   : > { %7187 = vmatmul.mubr.msk.bf16.vlgmr.msra.gmra.mrb[24].mxu0 %vm1234_vm4, %v1225_v28  ;;  %7202 = vmatprep.subr.bf16.mxu1 %v8157_v55 }
 0x369   : > { %7197 = vmatpush3.bf16.msra.mxu0 %v1774_v45  ;;  %7198 = vmatprep.mubr.msk.bf16.mxu0 %vm8158_vm3, %v8157_v55 }
 0x36a   : > { %7208 = vmatprep.subr.bf16.mxu0 %v8157_v55 }
 0x421   : > { %v1275_v48 = vpop.f32.mrb[20].mxu1 }
 0x422   : > { %v1603_v50 = vmul.f32 0.35355338, %v1275_v48  ;;  %v7146_v51 = vpop.f32.mrb[21].mxu1 }
 0x423   : > { %v1278_v36 = vpop.f32.mrb[22].mxu1  ;;  %v1321_v53 = vpop.f32.mrb[12].mxu0 }
 0x424   : > { %v1604_v58 = vmul.f32 0.35355338, %v1321_v53  ;;  %v7147_v29 = vpop.f32.mrb[23].mxu1  ;;  %v7152_v60 = vpop.f32.mrb[13].mxu0  ;;  %v8671_v46 = vadd.f32 %v1603_v50, %v8663_v49  ;;  %v8711_v53 = vld [vmem:[%s9848_s26 + $0x30] sm:$0xff] }
 0x425   : > { %v1324_v61 = vpop.f32.mrb[14].mxu0 }
 0x426   : > { %v7153_v47 = vpop.f32.mrb[15].mxu0  ;;  %v1619_v63 = vsel %vm1234_vm4, %v8671_v46, -inf  ;;  %v8676_v0 = vadd.f32 %v1604_v58, %v8668_v54 }
 0x427   : > { %1620 = vmax.xlane.f32.xlu0 %v1619_v63  ;;  %v8716_v47 = vld [vmem:[%s9848_s26 + $0x38] sm:$0xff] }
 0x428   : > { %v1622_v1 = vsel %vm1234_vm4, %v8676_v0, -inf }
 0x429   : > { %1623 = vmax.xlane.f32.xlu1 %v1622_v1  ;;  %v1367_v2 = vpop.f32.mrb[24].mxu1 }
 0x42a   : > { %v1605_v6 = vmul.f32 0.35355338, %v1367_v2  ;;  %v7158_v8 = vpop.f32.mrb[25].mxu1 }
 0x42b   : > { %v1370_v57 = vpop.f32.mrb[26].mxu1  ;;  %v1413_v10 = vpop.f32.mrb[16].mxu0 }
 0x42c   : > { %v1606_v14 = vmul.f32 0.35355338, %v1413_v10  ;;  %v7159_v16 = vpop.f32.mrb[27].mxu1  ;;  %v7164_v17 = vpop.f32.mrb[17].mxu0  ;;  %v1613_v20 = vadd.f32 %v1605_v6, %v8683_v4 }
 0x42d   : > { %v1416_v21 = vpop.f32.mrb[18].mxu0 }
 0x42e   : > { %v7165_v22 = vpop.f32.mrb[19].mxu0  ;;  %v1625_v23 = vsel %vm1234_vm4, %v1613_v20, -inf  ;;  %v1614_v24 = vadd.f32 %v1606_v14, %v8688_v11 }
 0x42f   : > { %1626 = vmax.xlane.f32.xlu0 %v1625_v23 }
 0x430   : > { %v1628_v25 = vsel %vm1234_vm4, %v1614_v24, -inf }
 0x431   : > { %1629 = vmax.xlane.f32.xlu1 %v1628_v25  ;;  %v1459_v26 = vpop.f32.mrb[28].mxu1 }
 0x432   : > { %v1607_v30 = vmul.f32 0.35355338, %v1459_v26  ;;  %v7170_v31 = vpop.f32.mrb[29].mxu1 }
 0x433   : > { %v1462_v32 = vpop.f32.mrb[30].mxu1  ;;  %v1505_v33 = vpop.f32.mrb[20].mxu0 }
 0x434   : > { %v1608_v35 = vmul.f32 0.35355338, %v1505_v33  ;;  %v7171_v38 = vpop.f32.mrb[31].mxu1  ;;  %v7176_v39 = vpop.f32.mrb[21].mxu0  ;;  %v1615_v28 = vadd.f32 %v1607_v30, %v8697_v27 }
 0x435   : > { %v1508_v42 = vpop.f32.mrb[22].mxu0 }
 0x436   : > { %v7177_v45 = vpop.f32.mrb[23].mxu0  ;;  %v1631_v48 = vsel %vm1234_vm4, %v1615_v28, -inf  ;;  %v1616_v50 = vadd.f32 %v1608_v35, %v8702_v34 }
 0x437   : > { %1632 = vmax.xlane.f32.xlu0 %v1631_v48 }
 0x438   : > { %v1634_v51 = vsel %vm1234_vm4, %v1616_v50, -inf }
 0x439   : > { %v1551_v36 = vpop.f32.mrb[32].mxu1  ;;  %1635 = vmax.xlane.f32.xlu1 %v1634_v51 }
 0x43a   : > { %v1609_v58 = vmul.f32 0.35355338, %v1551_v36  ;;  %v7182_v29 = vpop.f32.mrb[33].mxu1 }
 0x43b   : > { %v1554_v60 = vpop.f32.mrb[34].mxu1  ;;  %v1597_v61 = vpop.f32.mrb[24].mxu0 }
 0x43c   : > { %v1610_v63 = vmul.f32 0.35355338, %v1597_v61  ;;  %v7183_v1 = vpop.f32.mrb[35].mxu1  ;;  %v7188_v2 = vpop.f32.mrb[25].mxu0  ;;  %v1617_v6 = vadd.f32 %v1609_v58, %v8711_v53 }
 0x43d   : > { %v1600_v8 = vpop.f32.mrb[26].mxu0 }
 0x43e   : > { %v7189_v57 = vpop.f32.mrb[27].mxu0  ;;  %v1637_v10 = vsel %vm1234_vm4, %v1617_v6, -inf  ;;  %v1618_v14 = vadd.f32 %v1610_v63, %v8716_v47 }
 0x43f   : > { %1638 = vmax.xlane.f32.xlu0 %v1637_v10 }
 0x440   : > { %v1640_v16 = vsel %vm1234_vm4, %v1618_v14, -inf }
 0x441   : > { %1641 = vmax.xlane.f32.xlu1 %v1640_v16 }
 0x4b4   : > { %v1621_v17 = vpop.xlane.xlu0 %1620 }
 0x4b5   : > { %v1643_v21 = vsub.f32 %v8671_v46, %v1621_v17 }
 0x4b6   : > { %v1624_v22 = vpop.xlane.xlu1 %1623 }
 0x4b7   : > { %v1651_v23 = vmul.f32 1.442695, %v1643_v21  ;;  %v1644_v25 = vsub.f32 %v8676_v0, %v1624_v22 }
 0x4b9   : > { %7901 = vpow2.f32 %v1651_v23  ;;  %v1653_v26 = vmul.f32 1.442695, %v1644_v25 }
 0x4bb   : > { %7903 = vpow2.f32 %v1653_v26 }
 0x4bc   : > { %v1627_v30 = vpop.xlane.xlu0 %1626 }
 0x4bd   : > { %v1645_v31 = vsub.f32 %v1613_v20, %v1627_v30 }
 0x4be   : > { %v1630_v32 = vpop.xlane.xlu1 %1629 }
 0x4bf   : > { %v1655_v33 = vmul.f32 1.442695, %v1645_v31  ;;  %v1646_v35 = vsub.f32 %v1614_v24, %v1630_v32  ;;  %v1717_v32 = vpack.c.bf16 %v8584_v59, %v8584_v59 }
 0x4c1   : > { %7905 = vpow2.f32 %v1655_v33  ;;  %v1657_v38 = vmul.f32 1.442695, %v1646_v35 }
 0x4c3   : > { %v7902_v39 = vpop.eup %7901  ;;  %7907 = vpow2.f32 %v1657_v38  ;;  %v1718_v38 = vpack.c.bf16 %v8588_v62, %v8588_v62 }
 0x4c4   : > { %v1633_v42 = vpop.xlane.xlu0 %1632  ;;  %v1667_v45 = vsel %vm1234_vm4, %v7902_v39, 0.0 }
 0x4c5   : > { %v7904_v46 = vpop.eup %7903  ;;  %v1647_v48 = vsub.f32 %v1615_v28, %v1633_v42  ;;  %1668 = vadd.xlane.f32.xlu0 %v1667_v45  ;;  %v1866_v59 = vsel %vm1726_vm5, %v1718_v38, 0 }
 0x4c6   : > { %v1636_v51 = vpop.xlane.xlu1 %1635  ;;  %v1670_v0 = vsel %vm1234_vm4, %v7904_v46, 0.0 }
 0x4c7   : > { %v1659_v36 = vmul.f32 1.442695, %v1647_v48  ;;  %v1648_v58 = vsub.f32 %v1616_v50, %v1636_v51  ;;  %1671 = vadd.xlane.f32.xlu1 %v1670_v0  ;;  %v1820_v48 = vsel %vm1726_vm5, %v1717_v32, 0 }
 0x4c9   : > { %7909 = vpow2.f32 %v1659_v36  ;;  %v1661_v20 = vmul.f32 1.442695, %v1648_v58 }
 0x4cb   : > { %v7906_v29 = vpop.eup %7905  ;;  %7911 = vpow2.f32 %v1661_v20  ;;  %v1720_v20 = vpack.c.bf16 %v8602_v15, %v8602_v15 }
 0x4cc   : > { %v1639_v24 = vpop.xlane.xlu0 %1638  ;;  %v1673_v60 = vsel %vm1234_vm4, %v7906_v29, 0.0 }
 0x4cd   : > { %v7908_v61 = vpop.eup %7907  ;;  %v1649_v63 = vsub.f32 %v1617_v6, %v1639_v24  ;;  %1674 = vadd.xlane.f32.xlu0 %v1673_v60 }
 0x4ce   : > { %v1642_v1 = vpop.xlane.xlu1 %1641  ;;  %v1676_v28 = vsel %vm1234_vm4, %v7908_v61, 0.0 }
 0x4cf   : > { %v1663_v2 = vmul.f32 1.442695, %v1649_v63  ;;  %v1650_v8 = vsub.f32 %v1618_v14, %v1642_v1  ;;  %1677 = vadd.xlane.f32.xlu1 %v1676_v28 }
 0x4d1   : > { %7913 = vpow2.f32 %v1663_v2  ;;  %v1665_v57 = vmul.f32 1.442695, %v1650_v8 }
 0x4d3   : > { %v8728_v50 = vpop.eup %7909  ;;  %7915 = vpow2.f32 %v1665_v57  ;;  %v6639_v57 = vld [vmem:[%s8337_s2 + $0x20] sm:$0xff] }
 0x4d4   : > { %v1679_v10 = vsel %vm1234_vm4, %v8728_v50, 0.0 }
 0x4d5   : > { %v8732_v16 = vpop.eup %7911  ;;  %1680 = vadd.xlane.f32.xlu0 %v1679_v10  ;;  %v6640_v10 = vld [vmem:[%s8337_s2 + $0x28] sm:$0xff] }
 0x4d6   : > { %v1682_v6 = vsel %vm1234_vm4, %v8732_v16, 0.0 }
 0x4d7   : > { %1683 = vadd.xlane.f32.xlu1 %v1682_v6  ;;  %v1722_v6 = vpack.c.bf16 %v8600_v12, %v8600_v12 }
 0x4db   : > { %v8736_v17 = vpop.eup %7913 }
 0x4dc   : > { %v1685_v14 = vsel %vm1234_vm4, %v8736_v17, 0.0 }
 0x4dd   : > { %v8740_v21 = vpop.eup %7915  ;;  %1686 = vadd.xlane.f32.xlu0 %v1685_v14 }
 0x4de   : > { %v1688_v22 = vsel %vm1234_vm4, %v8740_v21, 0.0 }
 0x4df   : > { %1689 = vadd.xlane.f32.xlu1 %v1688_v22 }
 0x552   : > { %v1669_v23 = vpop.xlane.xlu0 %1668 }
 0x553   : > { %7917 = vrcp.f32 %v1669_v23 }
 0x554   : > { %v1672_v25 = vpop.xlane.xlu1 %1671 }
 0x555   : > { %7919 = vrcp.f32 %v1672_v25  ;;  %v2172_v25 = vpack.c.bf16 %v6640_v10, %v6639_v57 }
 0x55a   : > { %v1675_v26 = vpop.xlane.xlu0 %1674 }
 0x55b   : > { %7921 = vrcp.f32 %v1675_v26 }
 0x55c   : > { %v1678_v30 = vpop.xlane.xlu1 %1677 }
 0x55d   : > { %v7918_v31 = vpop.eup %7917  ;;  %7923 = vrcp.f32 %v1678_v30  ;;  %v6641_v30 = vld [vmem:[%s8337_s2 + $0x30] sm:$0xff] }
 0x55e   : > { %v1699_v33 = vmul.f32 %v7918_v31, %v7902_v39  ;;  %v6642_v31 = vld [vmem:[%s8337_s2 + $0x38] sm:$0xff] }
 0x55f   : > { %v7920_v35 = vpop.eup %7919  ;;  %v2173_v38 = vpack.c.bf16 %v6642_v31, %v6641_v30 }
 0x560   : > { %v1700_v42 = vmul.f32 %v7920_v35, %v7904_v46  ;;  %v1707_v45 = vpack.c.bf16 %v1699_v33, %v1699_v33  ;;  %v1719_v46 = vpack.c.bf16 %v8598_v9, %v8598_v9  ;;  %v1958_v9 = vsel %vm1726_vm5, %v1720_v20, 0 }
 0x562   : > { %7193 = vmatmul.mubr.msk.bf16.vlgmr.msra.gmra.mrb[36].mxu1 %vm1234_vm4, %v1707_v45  ;;  %v1681_v51 = vpop.xlane.xlu0 %1680  ;;  %v1708_v0 = vpack.c.bf16 %v1700_v42, %v1700_v42  ;;  %v1912_v63 = vsel %vm1726_vm5, %v1719_v46, 0  ;;  %v6647_v42 = vld [vmem:[%s9846_s5 + $0x20] sm:$0xff]  ;;  %v6648_v45 = vld [vmem:[%s9846_s5 + $0x28] sm:$0xff] }
 0x563   : > { %7203 = vmatpush3.bf16.msra.mxu1 %v1820_v48  ;;  %7925 = vrcp.f32 %v1681_v51  ;;  %7204 = vmatprep.mubr.msk.bf16.mxu1 %vm8158_vm3, %v8157_v55  ;;  %v6649_v48 = vld [vmem:[%s9846_s5 + $0x30] sm:$0xff] }
 0x564   : > { %7199 = vmatmul.mubr.msk.bf16.vlgmr.msra.gmra.mrb[28].mxu0 %vm1234_vm4, %v1708_v0  ;;  %v1684_v39 = vpop.xlane.xlu1 %1683  ;;  %7214 = vmatprep.subr.bf16.mxu1 %v8157_v55 }
 0x565   : > { %v7922_v62 = vpop.eup %7921  ;;  %7209 = vmatpush3.bf16.msra.mxu0 %v1866_v59  ;;  %7927 = vrcp.f32 %v1684_v39  ;;  %7210 = vmatprep.mubr.msk.bf16.mxu0 %vm8158_vm3, %v8157_v55 }
 0x566   : > { %v1701_v36 = vmul.f32 %v7922_v62, %v7906_v29  ;;  %7220 = vmatprep.subr.bf16.mxu0 %v8157_v55 }
 0x567   : > { %v7924_v58 = vpop.eup %7923 }
 0x568   : > { %v1702_v24 = vmul.f32 %v7924_v58, %v7908_v61  ;;  %v1709_v60 = vpack.c.bf16 %v1701_v36, %v1701_v36  ;;  %v1721_v61 = vpack.c.bf16 %v8595_v7, %v8595_v7 }
 0x56a   : > { %7205 = vmatmul.mubr.msk.bf16.vlgmr.msra.gmra.mrb[40].mxu1 %vm1234_vm4, %v1709_v60  ;;  %v1687_v1 = vpop.xlane.xlu0 %1686  ;;  %v1710_v28 = vpack.c.bf16 %v1702_v24, %v1702_v24  ;;  %v2004_v23 = vsel %vm1726_vm5, %v1721_v61, 0 }
 0x56b   : > { %7215 = vmatpush3.bf16.msra.mxu1 %v1912_v63  ;;  %7929 = vrcp.f32 %v1687_v1  ;;  %7216 = vmatprep.mubr.msk.bf16.mxu1 %vm8158_vm3, %v8157_v55 }
 0x56c   : > { %7211 = vmatmul.mubr.msk.bf16.vlgmr.msra.gmra.mrb[32].mxu0 %vm1234_vm4, %v1710_v28  ;;  %v1690_v15 = vpop.xlane.xlu1 %1689  ;;  %7226 = vmatprep.subr.bf16.mxu1 %v8157_v55 }
 0x56d   : > { %v7926_v29 = vpop.eup %7925  ;;  %7221 = vmatpush3.bf16.msra.mxu0 %v1958_v9  ;;  %7931 = vrcp.f32 %v1690_v15  ;;  %7222 = vmatprep.mubr.msk.bf16.mxu0 %vm8158_vm3, %v8157_v55 }
 0x56e   : > { %v1703_v2 = vmul.f32 %v7926_v29, %v8728_v50  ;;  %7232 = vmatprep.subr.bf16.mxu0 %v8157_v55  ;;  %v2050_v50 = vsel %vm1726_vm5, %v1722_v6, 0 }
 0x56f   : > { %v7928_v8 = vpop.eup %7927 }
 0x570   : > { %v1704_v14 = vmul.f32 %v7928_v8, %v8732_v16  ;;  %v1711_v22 = vpack.c.bf16 %v1703_v2, %v1703_v2 }
 0x572   : > { %7217 = vmatmul.mubr.msk.bf16.vlgmr.msra.gmra.mrb[44].mxu1 %vm1234_vm4, %v1711_v22  ;;  %v1712_v7 = vpack.c.bf16 %v1704_v14, %v1704_v14 }
 0x573   : > { %7227 = vmatpush3.bf16.msra.mxu1 %v2004_v23  ;;  %7228 = vmatprep.mubr.msk.bf16.mxu1 %vm8158_vm3, %v8157_v55 }
 0x574   : > { %7223 = vmatmul.mubr.msk.bf16.vlgmr.msra.gmra.mrb[36].mxu0 %vm1234_vm4, %v1712_v7 }
 0x575   : > { %v7930_v12 = vpop.eup %7929  ;;  %7233 = vmatpush3.bf16.msra.mxu0 %v2050_v50  ;;  %7234 = vmatprep.mubr.msk.bf16.mxu0 %vm8158_vm3, %v8157_v55 }
 0x576   : > { %v1705_v16 = vmul.f32 %v7930_v12, %v8736_v17  ;;  %7254 = vmatprep.subr.bf16.mxu0 %v2172_v25  ;;  %v2244_v17 = vpack.c.bf16 %v6648_v45, %v6647_v42  ;;  %v6655_v12 = vld [vmem:[%s8347_s28 + $0x20] sm:$0xff]  ;;  %v6657_v45 = vld [vmem:[%s8347_s28 + $0x30] sm:$0xff] }
 0x577   : > { %v7932_v26 = vpop.eup %7931 }
 0x578   : > { %v1706_v32 = vmul.f32 %v7932_v26, %v8740_v21  ;;  %v1713_v33 = vpack.c.bf16 %v1705_v16, %v1705_v16  ;;  %v6650_v21 = vld [vmem:[%s9846_s5 + $0x38] sm:$0xff]  ;;  %v6656_v16 = vld [vmem:[%s8347_s28 + $0x28] sm:$0xff] }
 0x579   : > { %v2245_v51 = vpack.c.bf16 %v6650_v21, %v6649_v48 }
 0x57a   : > { %7229 = vmatmul.mubr.msk.bf16.vlgmr.msra.gmra.mrb[48].mxu1 %vm1234_vm4, %v1713_v33  ;;  %v1714_v35 = vpack.c.bf16 %v1706_v32, %v1706_v32 }
 0x57b   : > { %7246 = vmatprep.mubr.msk.bf16.mxu1 %vm899_vm2, %v8449_v3 }
 0x57c   : > { %7235 = vmatmul.mubr.msk.bf16.vlgmr.msra.gmra.mrb[40].mxu0 %vm1234_vm4, %v1714_v35 }
 0x57d   : > { %7255 = vmatpush3.bf16.msra.mxu0 %v2172_v25  ;;  %7258 = vmatprep.mubr.msk.bf16.mxu0 %vm757_vm1, %v8475_v52 }
 0x57e   : > { %7256 = vmatprep.subr.bf16.mxu0 %v2173_v38 }
 0x581   : > { %7257 = vmatpush3.bf16.msra.mxu0 %v2173_v38  ;;  %v2316_v38 = vpack.c.bf16 %v6656_v16, %v6655_v12 }
 0x582   : > { %7266 = vmatprep.subr.bf16.mxu0 %v2244_v17 }
 0x584   : > { %7259 = vmatmul.mubr.msk.bf16.vlgmr.msra.gmra.mrb[44].mxu0 %vm757_vm1, %v8483_v37 }
 0x585   : > { %7262 = vmatprep.mubr.msk.bf16.mxu0 %vm757_vm1, %v8490_v56  ;;  %7267 = vmatpush3.bf16.msra.mxu0 %v2244_v17  ;;  %v6658_v17 = vld [vmem:[%s8347_s28 + $0x38] sm:$0xff] }
 0x586   : > { %7268 = vmatprep.subr.bf16.mxu0 %v2245_v51  ;;  %v2317_v21 = vpack.c.bf16 %v6658_v17, %v6657_v45 }
 0x589   : > { %7269 = vmatpush3.bf16.msra.mxu0 %v2245_v51 }
 0x58a   : > { %7290 = vmatprep.subr.bf16.mxu0 %v8157_v55 }
 0x58c   : > { %7263 = vmatmul.mubr.msk.bf16.gmra.mrb[48].mxu0 %vm757_vm1, %v8512_v13 }
 0x58d   : > { %7270 = vmatprep.mubr.msk.bf16.mxu0 %vm757_vm1, %v8546_v43 }
 0x594   : > { %7271 = vmatmul.mubr.msk.bf16.vlgmr.msra.gmra.mrb[52].mxu0 %vm757_vm1, %v8542_v40 }
 0x595   : > { %7274 = vmatprep.mubr.msk.bf16.mxu0 %vm757_vm1, %v8548_v44 }
 0x59c   : > { %7275 = vmatmul.mubr.msk.bf16.gmra.mrb[56].mxu0 %vm757_vm1, %v8544_v41 }
 0x59d   : > { %7292 = vmatprep.mubr.msk.bf16.mxu0 %vm8158_vm3, %v8157_v55 }
 0x635   : > { %v1764_v0 = vpop.f32.mrb[36].mxu1 }
 0x636   : > { %v7194_v59 = vpop.f32.mrb[37].mxu1 }
 0x637   : > { %v1767_v39 = vpop.f32.mrb[38].mxu1  ;;  %v1810_v62 = vpop.f32.mrb[28].mxu0 }
 0x638   : > { %v2092_v46 = vpack.c.bf16 %v1810_v62, %v1764_v0  ;;  %v7195_v36 = vpop.f32.mrb[39].mxu1  ;;  %v7200_v58 = vpop.f32.mrb[29].mxu0 }
 0x639   : > { %v1813_v20 = vpop.f32.mrb[30].mxu0 }
 0x63a   : > { %v7201_v24 = vpop.f32.mrb[31].mxu0  ;;  %7238 = vmatprep.subr.bf16.mxu1 %v2092_v46 }
 0x63b   : > { %7239 = vmatpush3.bf16.msra.mxu1 %v2092_v46 }
 0x63d   : > { %v1856_v60 = vpop.f32.mrb[40].mxu1 }
 0x63e   : > { %v7206_v63 = vpop.f32.mrb[41].mxu1 }
 0x63f   : > { %v1859_v1 = vpop.f32.mrb[42].mxu1  ;;  %v1902_v28 = vpop.f32.mrb[32].mxu0 }
 0x640   : > { %v2093_v9 = vpack.c.bf16 %v1902_v28, %v1856_v60  ;;  %v7207_v15 = vpop.f32.mrb[43].mxu1  ;;  %v7212_v29 = vpop.f32.mrb[33].mxu0 }
 0x641   : > { %v1905_v61 = vpop.f32.mrb[34].mxu0 }
 0x642   : > { %v7213_v2 = vpop.f32.mrb[35].mxu0  ;;  %7240 = vmatprep.subr.bf16.mxu1 %v2093_v9 }
 0x643   : > { %7241 = vmatpush3.bf16.msra.mxu1 %v2093_v9 }
 0x645   : > { %v1948_v8 = vpop.f32.mrb[44].mxu1 }
 0x646   : > { %v7218_v57 = vpop.f32.mrb[45].mxu1 }
 0x647   : > { %v1951_v10 = vpop.f32.mrb[46].mxu1  ;;  %v1994_v6 = vpop.f32.mrb[36].mxu0 }
 0x648   : > { %v2094_v14 = vpack.c.bf16 %v1994_v6, %v1948_v8  ;;  %v7219_v22 = vpop.f32.mrb[47].mxu1  ;;  %v7224_v23 = vpop.f32.mrb[37].mxu0 }
 0x649   : > { %v1997_v7 = vpop.f32.mrb[38].mxu0 }
 0x64a   : > { %v7225_v25 = vpop.f32.mrb[39].mxu0  ;;  %7242 = vmatprep.subr.bf16.mxu1 %v2094_v14 }
 0x64b   : > { %7243 = vmatpush3.bf16.msra.mxu1 %v2094_v14 }
 0x64d   : > { %v2040_v50 = vpop.f32.mrb[48].mxu1 }
 0x64e   : > { %v7230_v26 = vpop.f32.mrb[49].mxu1 }
 0x64f   : > { %v2043_v30 = vpop.f32.mrb[50].mxu1  ;;  %v2086_v31 = vpop.f32.mrb[40].mxu0 }
 0x650   : > { %v2095_v32 = vpack.c.bf16 %v2086_v31, %v2040_v50  ;;  %v7231_v33 = vpop.f32.mrb[51].mxu1  ;;  %v7236_v35 = vpop.f32.mrb[41].mxu0 }
 0x651   : > { %v2089_v42 = vpop.f32.mrb[42].mxu0 }
 0x652   : > { %v7237_v48 = vpop.f32.mrb[43].mxu0  ;;  %7244 = vmatprep.subr.bf16.mxu1 %v2095_v32 }
 0x653   : > { %7245 = vmatpush3.bf16.msra.mxu1 %v2095_v32 }
 0x654   : > { %7278 = vmatprep.subr.bf16.mxu1 %v2316_v38 }
 0x656   : > { %7247 = vmatmul.mubr.msk.bf16.vlgmr.msra.gmra.mrb[52].mxu1 %vm899_vm2, %v8518_v18 }
 0x657   : > { %v7260_v51 = vpop.f32.mrb[44].mxu0  ;;  %7250 = vmatprep.mubr.msk.bf16.mxu1 %vm899_vm2, %v8454_v5  ;;  %7279 = vmatpush3.bf16.msra.mxu1 %v2316_v38 }
 0x658   : > { %v2208_v0 = vpop.f32.mrb[45].mxu0  ;;  %7280 = vmatprep.subr.bf16.mxu1 %v2317_v21  ;;  %v2385_v25 = vpack.c.bf16 %v7260_v51, %v7260_v51 }
 0x659   : > { %v7261_v59 = vpop.f32.mrb[46].mxu0  ;;  %v2383_v8 = vpack.c.bf16 %v2208_v0, %v2208_v0 }
 0x65a   : > { %v2211_v39 = vpop.f32.mrb[47].mxu0  ;;  %v2386_v16 = vpack.c.bf16 %v7261_v59, %v7261_v59 }
 0x65b   : > { %7281 = vmatpush3.bf16.msra.mxu1 %v2317_v21  ;;  %v2384_v22 = vpack.c.bf16 %v2211_v39, %v2211_v39 }
 0x65c   : > { %7296 = vmatprep.subr.bf16.mxu1 %v8157_v55 }
 0x65e   : > { %7251 = vmatmul.mubr.msk.bf16.gmra.mrb[56].mxu1 %vm899_vm2, %v8520_v19 }
 0x65f   : > { %v8830_v62 = vpop.f32.mrb[48].mxu0  ;;  %7282 = vmatprep.mubr.msk.bf16.mxu1 %vm757_vm1, %v8546_v43 }
 0x660   : > { %v2224_v46 = vpop.f32.mrb[49].mxu0  ;;  %v2389_v42 = vpack.c.bf16 %v8830_v62, %v8830_v62 }
 0x661   : > { %v8834_v36 = vpop.f32.mrb[50].mxu0  ;;  %v2387_v31 = vpack.c.bf16 %v2224_v46, %v2224_v46 }
 0x662   : > { %v2227_v58 = vpop.f32.mrb[51].mxu0  ;;  %v2390_v45 = vpack.c.bf16 %v8834_v36, %v8834_v36 }
 0x663   : > { %v2388_v35 = vpack.c.bf16 %v2227_v58, %v2227_v58 }
 0x666   : > { %7283 = vmatmul.mubr.msk.bf16.vlgmr.msra.gmra.mrb[60].mxu1 %vm757_vm1, %v8542_v40 }
 0x667   : > { %v7272_v20 = vpop.f32.mrb[52].mxu0  ;;  %7286 = vmatprep.mubr.msk.bf16.mxu1 %vm757_vm1, %v8548_v44 }
 0x668   : > { %v2280_v24 = vpop.f32.mrb[53].mxu0  ;;  %v2393_v29 = vpack.c.bf16 %v7272_v20, %v7272_v20 }
 0x669   : > { %v2391_v60 = vpack.c.bf16 %v2280_v24, %v2280_v24  ;;  %v7273_v63 = vpop.f32.mrb[54].mxu0 }
 0x66a   : > { %v2283_v1 = vpop.f32.mrb[55].mxu0  ;;  %v2394_v10 = vpack.c.bf16 %v7273_v63, %v7273_v63  ;;  %v2495_v14 = vsel %vm1234_vm4, %v2393_v29, 0 }
 0x66b   : > { %v2403_v28 = vsel %vm1234_vm4, %v2391_v60, 0  ;;  %v2392_v9 = vpack.c.bf16 %v2283_v1, %v2283_v1 }
 0x66c   : > { %7291 = vmatpush3.bf16.xpose.msra.mxu0 %v2403_v28  ;;  %v2541_v23 = vsel %vm1234_vm4, %v2394_v10, 0 }
 0x66d   : > { %v2449_v15 = vsel %vm1234_vm4, %v2392_v9, 0  ;;  %7302 = vmatprep.subr.bf16.mxu0 %v8157_v55 }
 0x66e   : > { %7287 = vmatmul.mubr.msk.bf16.gmra.mrb[64].mxu1 %vm757_vm1, %v8544_v41 }
 0x66f   : > { %7297 = vmatpush3.bf16.xpose.msra.mxu1 %v2449_v15  ;;  %v7276_v61 = vpop.f32.mrb[56].mxu0  ;;  %7298 = vmatprep.mubr.msk.bf16.mxu1 %vm8158_vm3, %v8157_v55 }
 0x670   : > { %v2296_v2 = vpop.f32.mrb[57].mxu0  ;;  %7308 = vmatprep.subr.bf16.mxu1 %v8157_v55  ;;  %v2397_v30 = vpack.c.bf16 %v7276_v61, %v7276_v61 }
 0x671   : > { %v7277_v57 = vpop.f32.mrb[58].mxu0  ;;  %v2395_v7 = vpack.c.bf16 %v2296_v2, %v2296_v2 }
 0x672   : > { %v2299_v6 = vpop.f32.mrb[59].mxu0  ;;  %v2398_v32 = vpack.c.bf16 %v7277_v57, %v7277_v57  ;;  %v2679_v33 = vsel %vm1234_vm4, %v2397_v30, 0 }
 0x673   : > { %7293 = vmatmul.mubr.msk.bf16.vlgmr.msra.gmra.mrb[60].mxu0 %vm1234_vm4, %v2383_v8  ;;  %v2396_v50 = vpack.c.bf16 %v2299_v6, %v2299_v6  ;;  %v2587_v12 = vsel %vm1234_vm4, %v2395_v7, 0 }
 0x674   : > { %7303 = vmatpush3.bf16.xpose.msra.mxu0 %v2495_v14  ;;  %7304 = vmatprep.mubr.msk.bf16.mxu0 %vm8158_vm3, %v8157_v55  ;;  %v2725_v38 = vsel %vm1234_vm4, %v2398_v32, 0 }
 0x675   : > { %7314 = vmatprep.subr.bf16.mxu0 %v8157_v55  ;;  %v2633_v26 = vsel %vm1234_vm4, %v2396_v50, 0 }
 0x676   : > { %7299 = vmatmul.mubr.msk.bf16.vlgmr.msra.gmra.mrb[68].mxu1 %vm1234_vm4, %v2384_v22 }
 0x677   : > { %7309 = vmatpush3.bf16.xpose.msra.mxu1 %v2541_v23  ;;  %7310 = vmatprep.mubr.msk.bf16.mxu1 %vm8158_vm3, %v8157_v55 }
 0x678   : > { %7320 = vmatprep.subr.bf16.mxu1 %v8157_v55 }
 0x67b   : > { %7305 = vmatmul.mubr.msk.bf16.vlgmr.msra.gmra.mrb[64].mxu0 %vm1234_vm4, %v2385_v25 }
 0x67c   : > { %7315 = vmatpush3.bf16.xpose.msra.mxu0 %v2587_v12  ;;  %7316 = vmatprep.mubr.msk.bf16.mxu0 %vm8158_vm3, %v8157_v55 }
 0x67d   : > { %7326 = vmatprep.subr.bf16.mxu0 %v8157_v55 }
 0x67e   : > { %7311 = vmatmul.mubr.msk.bf16.vlgmr.msra.gmra.mrb[72].mxu1 %vm1234_vm4, %v2386_v16 }
 0x67f   : > { %7321 = vmatpush3.bf16.xpose.msra.mxu1 %v2633_v26  ;;  %7322 = vmatprep.mubr.msk.bf16.mxu1 %vm8158_vm3, %v8157_v55 }
 0x680   : > { %7332 = vmatprep.subr.bf16.mxu1 %v8157_v55 }
 0x683   : > { %7317 = vmatmul.mubr.msk.bf16.vlgmr.msra.gmra.mrb[68].mxu0 %vm1234_vm4, %v2387_v31 }
 0x684   : > { %7327 = vmatpush3.bf16.xpose.msra.mxu0 %v2679_v33  ;;  %7328 = vmatprep.mubr.msk.bf16.mxu0 %vm8158_vm3, %v8157_v55 }
 0x685   : > { %7338 = vmatprep.subr.bf16.mxu0 %v8157_v55 }
 0x686   : > { %7323 = vmatmul.mubr.msk.bf16.vlgmr.msra.gmra.mrb[76].mxu1 %vm1234_vm4, %v2388_v35 }
 0x687   : > { %7333 = vmatpush3.bf16.xpose.msra.mxu1 %v2725_v38  ;;  %7334 = vmatprep.mubr.msk.bf16.mxu1 %vm8158_vm3, %v8157_v55 }
 0x688   : > { %7344 = vmatprep.subr.bf16.mxu1 %v8157_v55 }
 0x68b   : > { %7329 = vmatmul.mubr.msk.bf16.vlgmr.msra.gmra.mrb[72].mxu0 %vm1234_vm4, %v2389_v42 }
 0x68c   : > { %7340 = vmatprep.mubr.msk.bf16.mxu0 %vm8158_vm3, %v8157_v55 }
 0x68e   : > { %7335 = vmatmul.mubr.msk.bf16.vlgmr.msra.gmra.mrb[80].mxu1 %vm1234_vm4, %v2390_v45 }
 0x68f   : > { %7346 = vmatprep.mubr.msk.bf16.mxu1 %vm8158_vm3, %v8157_v55 }
 0x729   : > { %v8888_v17 = vpop.f32.mrb[52].mxu1 }
 0x72a   : > { %v8890_v48 = vpop.f32.mrb[53].mxu1 }
 0x72b   : > { %v8892_v21 = vpop.f32.mrb[54].mxu1 }
 0x72c   : > { %v2163_v51 = vpack.c.bf16 %v8892_v21, %v8888_v17  ;;  %v8896_v0 = vpop.f32.mrb[55].mxu1 }
 0x72d   : > { %v2162_v59 = vpack.c.bf16 %v8896_v0, %v8890_v48 }
 0x731   : > { %v8900_v39 = vpop.f32.mrb[56].mxu1 }
 0x732   : > { %v8902_v62 = vpop.f32.mrb[57].mxu1 }
 0x733   : > { %v8904_v46 = vpop.f32.mrb[58].mxu1 }
 0x734   : > { %v2165_v36 = vpack.c.bf16 %v8904_v46, %v8900_v39  ;;  %v8908_v58 = vpop.f32.mrb[59].mxu1 }
 0x735   : > { %v2164_v20 = vpack.c.bf16 %v8908_v58, %v8902_v62 }
 0x739   : > { %v8912_v24 = vpop.f32.mrb[60].mxu1 }
 0x73a   : > { %v2352_v60 = vpop.f32.mrb[61].mxu1 }
 0x73b   : > { %v2879_v63 = vpack.c.bf16 %v2352_v60, %v2352_v60  ;;  %v8914_v1 = vpop.f32.mrb[62].mxu1 }
 0x73c   : > { %v2355_v28 = vpop.f32.mrb[63].mxu1 }
 0x73d   : > { %v2891_v9 = vsel %vm1726_vm5, %v2879_v63, 0  ;;  %v2880_v15 = vpack.c.bf16 %v2355_v28, %v2355_v28 }
 0x73e   : > { %7339 = vmatpush3.bf16.msra.mxu0 %v2891_v9 }
 0x73f   : > { %v2937_v29 = vsel %vm1726_vm5, %v2880_v15, 0  ;;  %7350 = vmatprep.subr.bf16.mxu0 %v8157_v55 }
 0x740   : > { %7345 = vmatpush3.bf16.msra.mxu1 %v2937_v29 }
 0x741   : > { %v8919_v61 = vpop.f32.mrb[64].mxu1  ;;  %7356 = vmatprep.subr.bf16.mxu1 %v8157_v55 }
 0x742   : > { %v8922_v2 = vpop.f32.mrb[65].mxu1 }
 0x743   : > { %v8924_v8 = vpop.f32.mrb[66].mxu1 }
 0x744   : > { %v8926_v57 = vpop.f32.mrb[67].mxu1 }
 0x746   : > { %v2439_v10 = vpop.f32.mrb[60].mxu0 }
 0x747   : > { %v2767_v6 = vmul.f32 0.35355338, %v2439_v10  ;;  %v7294_v14 = vpop.f32.mrb[61].mxu0 }
 0x748   : > { %v2442_v22 = vpop.f32.mrb[62].mxu0 }
 0x749   : > { %v7295_v23 = vpop.f32.mrb[63].mxu0  ;;  %v2485_v7 = vpop.f32.mrb[68].mxu1  ;;  %v2775_v25 = vadd.f32 %v2767_v6, %v8663_v49 }
 0x74a   : > { %v2768_v50 = vmul.f32 0.35355338, %v2485_v7  ;;  %v7300_v12 = vpop.f32.mrb[69].mxu1 }
 0x74b   : > { %v2488_v16 = vpop.f32.mrb[70].mxu1  ;;  %v2783_v26 = vsel %vm1234_vm4, %v2775_v25, -inf }
 0x74c   : > { %v7301_v30 = vpop.f32.mrb[71].mxu1  ;;  %2784 = vmax.xlane.f32.xlu0 %v2783_v26  ;;  %v2776_v31 = vadd.f32 %v2768_v50, %v8668_v54 }
 0x74e   : > { %v2531_v32 = vpop.f32.mrb[64].mxu0  ;;  %v2786_v33 = vsel %vm1234_vm4, %v2776_v31, -inf }
 0x74f   : > { %v2769_v35 = vmul.f32 0.35355338, %v2531_v32  ;;  %2787 = vmax.xlane.f32.xlu1 %v2786_v33  ;;  %v7306_v38 = vpop.f32.mrb[65].mxu0 }
 0x750   : > { %v2534_v42 = vpop.f32.mrb[66].mxu0 }
 0x751   : > { %v7307_v45 = vpop.f32.mrb[67].mxu0  ;;  %v2577_v60 = vpop.f32.mrb[72].mxu1  ;;  %v2777_v49 = vadd.f32 %v2769_v35, %v8683_v4 }
 0x752   : > { %v2770_v63 = vmul.f32 0.35355338, %v2577_v60  ;;  %v7312_v28 = vpop.f32.mrb[73].mxu1 }
 0x753   : > { %v2580_v9 = vpop.f32.mrb[74].mxu1  ;;  %v2789_v15 = vsel %vm1234_vm4, %v2777_v49, -inf }
 0x754   : > { %v7313_v29 = vpop.f32.mrb[75].mxu1  ;;  %2790 = vmax.xlane.f32.xlu0 %v2789_v15  ;;  %v2778_v54 = vadd.f32 %v2770_v63, %v8688_v11 }
 0x756   : > { %v2623_v10 = vpop.f32.mrb[68].mxu0  ;;  %v2792_v6 = vsel %vm1234_vm4, %v2778_v54, -inf }
 0x757   : > { %v2771_v14 = vmul.f32 0.35355338, %v2623_v10  ;;  %2793 = vmax.xlane.f32.xlu1 %v2792_v6  ;;  %v7318_v22 = vpop.f32.mrb[69].mxu0 }
 0x758   : > { %v2626_v23 = vpop.f32.mrb[70].mxu0 }
 0x759   : > { %v7319_v7 = vpop.f32.mrb[71].mxu0  ;;  %v2669_v50 = vpop.f32.mrb[76].mxu1  ;;  %v2779_v4 = vadd.f32 %v2771_v14, %v8697_v27 }
 0x75a   : > { %v2772_v12 = vmul.f32 0.35355338, %v2669_v50  ;;  %v7324_v16 = vpop.f32.mrb[77].mxu1 }
 0x75b   : > { %v2672_v26 = vpop.f32.mrb[78].mxu1  ;;  %v2795_v30 = vsel %vm1234_vm4, %v2779_v4, -inf }
 0x75c   : > { %2796 = vmax.xlane.f32.xlu0 %v2795_v30  ;;  %v7325_v32 = vpop.f32.mrb[79].mxu1  ;;  %v2780_v11 = vadd.f32 %v2772_v12, %v8702_v34 }
 0x75e   : > { %v2715_v33 = vpop.f32.mrb[72].mxu0  ;;  %v2798_v35 = vsel %vm1234_vm4, %v2780_v11, -inf }
 0x75f   : > { %v2773_v38 = vmul.f32 0.35355338, %v2715_v33  ;;  %v7330_v42 = vpop.f32.mrb[73].mxu0  ;;  %2799 = vmax.xlane.f32.xlu1 %v2798_v35 }
 0x760   : > { %v2718_v45 = vpop.f32.mrb[74].mxu0 }
 0x761   : > { %v7331_v60 = vpop.f32.mrb[75].mxu0  ;;  %v2761_v63 = vpop.f32.mrb[80].mxu1  ;;  %v2781_v27 = vadd.f32 %v2773_v38, %v8711_v53 }
 0x762   : > { %v2774_v28 = vmul.f32 0.35355338, %v2761_v63  ;;  %v7336_v9 = vpop.f32.mrb[81].mxu1 }
 0x763   : > { %v2764_v15 = vpop.f32.mrb[82].mxu1  ;;  %v2801_v29 = vsel %vm1234_vm4, %v2781_v27, -inf }
 0x764   : > { %2802 = vmax.xlane.f32.xlu0 %v2801_v29  ;;  %v7337_v10 = vpop.f32.mrb[83].mxu1  ;;  %v2782_v34 = vadd.f32 %v2774_v28, %v8716_v47 }
 0x766   : > { %v2804_v6 = vsel %vm1234_vm4, %v2782_v34, -inf }
 0x767   : > { %2805 = vmax.xlane.f32.xlu1 %v2804_v6 }
 0x7d9   : > { %v2785_v14 = vpop.xlane.xlu0 %2784 }
 0x7da   : > { %v2807_v22 = vsub.f32 %v2775_v25, %v2785_v14 }
 0x7dc   : > { %v2815_v23 = vmul.f32 1.442695, %v2807_v22  ;;  %v2788_v7 = vpop.xlane.xlu1 %2787 }
 0x7dd   : > { %v2808_v50 = vsub.f32 %v2776_v31, %v2788_v7 }
 0x7de   : > { %7933 = vpow2.f32 %v2815_v23 }
 0x7df   : > { %v2817_v12 = vmul.f32 1.442695, %v2808_v50 }
 0x7e1   : > { %7935 = vpow2.f32 %v2817_v12  ;;  %v2791_v53 = vpop.xlane.xlu0 %2790 }
 0x7e2   : > { %v2809_v16 = vsub.f32 %v2777_v49, %v2791_v53 }
 0x7e4   : > { %v2819_v26 = vmul.f32 1.442695, %v2809_v16  ;;  %v2794_v30 = vpop.xlane.xlu1 %2793 }
 0x7e5   : > { %v2810_v32 = vsub.f32 %v2778_v54, %v2794_v30 }
 0x7e6   : > { %7937 = vpow2.f32 %v2819_v26 }
 0x7e7   : > { %v2821_v33 = vmul.f32 1.442695, %v2810_v32 }
 0x7e8   : > { %v7934_v35 = vpop.eup %7933 }
 0x7e9   : > { %7939 = vpow2.f32 %v2821_v33  ;;  %v2797_v47 = vpop.xlane.xlu0 %2796  ;;  %v2831_v38 = vsel %vm1234_vm4, %v7934_v35, 0.0 }
 0x7ea   : > { %v2811_v42 = vsub.f32 %v2779_v4, %v2797_v47  ;;  %2832 = vadd.xlane.f32.xlu0 %v2831_v38  ;;  %v2881_v47 = vpack.c.bf16 %v8912_v24, %v8912_v24 }
 0x7eb   : > { %v7936_v25 = vpop.eup %7935 }
 0x7ec   : > { %v2823_v45 = vmul.f32 1.442695, %v2811_v42  ;;  %v2800_v31 = vpop.xlane.xlu1 %2799  ;;  %v2834_v60 = vsel %vm1234_vm4, %v7936_v25, 0.0 }
 0x7ed   : > { %v2812_v63 = vsub.f32 %v2780_v11, %v2800_v31  ;;  %2835 = vadd.xlane.f32.xlu1 %v2834_v60  ;;  %v2882_v31 = vpack.c.bf16 %v8914_v1, %v8914_v1 }
 0x7ee   : > { %7941 = vpow2.f32 %v2823_v45 }
 0x7ef   : > { %v2825_v49 = vmul.f32 1.442695, %v2812_v63  ;;  %v2983_v63 = vsel %vm1726_vm5, %v2881_v47, 0 }
 0x7f0   : > { %v7938_v28 = vpop.eup %7937 }
 0x7f1   : > { %7943 = vpow2.f32 %v2825_v49  ;;  %v2803_v54 = vpop.xlane.xlu0 %2802  ;;  %v2837_v9 = vsel %vm1234_vm4, %v7938_v28, 0.0 }
 0x7f2   : > { %v2813_v15 = vsub.f32 %v2781_v27, %v2803_v54  ;;  %2838 = vadd.xlane.f32.xlu0 %v2837_v9 }
 0x7f3   : > { %v7940_v29 = vpop.eup %7939 }
 0x7f4   : > { %v2827_v10 = vmul.f32 1.442695, %v2813_v15  ;;  %v2806_v4 = vpop.xlane.xlu1 %2805  ;;  %v2840_v6 = vsel %vm1234_vm4, %v7940_v29, 0.0 }
 0x7f5   : > { %v2814_v14 = vsub.f32 %v2782_v34, %v2806_v4  ;;  %2841 = vadd.xlane.f32.xlu1 %v2840_v6  ;;  %v2884_v4 = vpack.c.bf16 %v8926_v57, %v8926_v57 }
 0x7f6   : > { %7945 = vpow2.f32 %v2827_v10 }
 0x7f7   : > { %v2829_v22 = vmul.f32 1.442695, %v2814_v14 }
 0x7f8   : > { %v8948_v11 = vpop.eup %7941 }
 0x7f9   : > { %7947 = vpow2.f32 %v2829_v22  ;;  %v2843_v23 = vsel %vm1234_vm4, %v8948_v11, 0.0 }
 0x7fa   : > { %2844 = vadd.xlane.f32.xlu0 %v2843_v23  ;;  %v3121_v23 = vsel %vm1726_vm5, %v2884_v4, 0 }
 0x7fb   : > { %v8952_v7 = vpop.eup %7943 }
 0x7fc   : > { %v2846_v27 = vsel %vm1234_vm4, %v8952_v7, 0.0 }
 0x7fd   : > { %2847 = vadd.xlane.f32.xlu1 %v2846_v27 }
 0x800   : > { %v8956_v50 = vpop.eup %7945 }
 0x801   : > { %v2849_v34 = vsel %vm1234_vm4, %v8956_v50, 0.0 }
 0x802   : > { %2850 = vadd.xlane.f32.xlu0 %v2849_v34 }
 0x803   : > { %v8960_v12 = vpop.eup %7947 }
 0x804   : > { %v2852_v53 = vsel %vm1234_vm4, %v8960_v12, 0.0 }
 0x805   : > { %2853 = vadd.xlane.f32.xlu1 %v2852_v53 }
 0x877   : > { %v2833_v16 = vpop.xlane.xlu0 %2832 }
 0x878   : > { %7949 = vrcp.f32 %v2833_v16  ;;  %v2886_v16 = vpack.c.bf16 %v8924_v8, %v8924_v8 }
 0x87a   : > { %v2836_v26 = vpop.xlane.xlu1 %2835 }
 0x87b   : > { %7951 = vrcp.f32 %v2836_v26 }
 0x87f   : > { %v2839_v30 = vpop.xlane.xlu0 %2838 }
 0x880   : > { %7953 = vrcp.f32 %v2839_v30 }
 0x882   : > { %v7950_v32 = vpop.eup %7949  ;;  %v2842_v33 = vpop.xlane.xlu1 %2841 }
 0x883   : > { %v2863_v38 = vmul.f32 %v7950_v32, %v7934_v35  ;;  %7955 = vrcp.f32 %v2842_v33  ;;  %v3029_v35 = vsel %vm1726_vm5, %v2882_v31, 0  ;;  %v3213_v32 = vsel %vm1726_vm5, %v2886_v16, 0 }
 0x885   : > { %v7952_v42 = vpop.eup %7951  ;;  %v2871_v45 = vpack.c.bf16 %v2863_v38, %v2863_v38 }
 0x886   : > { %v2864_v60 = vmul.f32 %v7952_v42, %v7936_v25  ;;  %v2883_v25 = vpack.c.bf16 %v8922_v2, %v8922_v2 }
 0x887   : > { %7341 = vmatmul.mubr.msk.bf16.vlgmr.msra.gmra.mrb[76].mxu0 %vm1234_vm4, %v2871_v45  ;;  %v2845_v49 = vpop.xlane.xlu0 %2844 }
 0x888   : > { %7351 = vmatpush3.bf16.msra.mxu0 %v2983_v63  ;;  %7957 = vrcp.f32 %v2845_v49  ;;  %v2872_v54 = vpack.c.bf16 %v2864_v60, %v2864_v60  ;;  %7352 = vmatprep.mubr.msk.bf16.mxu0 %vm8158_vm3, %v8157_v55  ;;  %v3075_v14 = vsel %vm1726_vm5, %v2883_v25, 0 }
 0x889   : > { %7362 = vmatprep.subr.bf16.mxu0 %v8157_v55 }
 0x88a   : > { %v7954_v24 = vpop.eup %7953  ;;  %7347 = vmatmul.mubr.msk.bf16.vlgmr.msra.gmra.mrb[84].mxu1 %vm1234_vm4, %v2872_v54  ;;  %v2848_v1 = vpop.xlane.xlu1 %2847 }
 0x88b   : > { %v2865_v9 = vmul.f32 %v7954_v24, %v7938_v28  ;;  %7357 = vmatpush3.bf16.msra.mxu1 %v3029_v35  ;;  %7959 = vrcp.f32 %v2848_v1  ;;  %7358 = vmatprep.mubr.msk.bf16.mxu1 %vm8158_vm3, %v8157_v55 }
 0x88c   : > { %7368 = vmatprep.subr.bf16.mxu1 %v8157_v55 }
 0x88d   : > { %v7956_v15 = vpop.eup %7955  ;;  %v2873_v10 = vpack.c.bf16 %v2865_v9, %v2865_v9 }
 0x88e   : > { %v2866_v6 = vmul.f32 %v7956_v15, %v7940_v29  ;;  %v2885_v29 = vpack.c.bf16 %v8919_v61, %v8919_v61 }
 0x88f   : > { %7353 = vmatmul.mubr.msk.bf16.vlgmr.msra.gmra.mrb[80].mxu0 %vm1234_vm4, %v2873_v10  ;;  %v2851_v22 = vpop.xlane.xlu0 %2850 }
 0x890   : > { %7363 = vmatpush3.bf16.msra.mxu0 %v3075_v14  ;;  %7961 = vrcp.f32 %v2851_v22  ;;  %v2874_v2 = vpack.c.bf16 %v2866_v6, %v2866_v6  ;;  %7364 = vmatprep.mubr.msk.bf16.mxu0 %vm8158_vm3, %v8157_v55  ;;  %v3167_v30 = vsel %vm1726_vm5, %v2885_v29, 0 }
 0x891   : > { %7374 = vmatprep.subr.bf16.mxu0 %v8157_v55 }
 0x892   : > { %v7958_v28 = vpop.eup %7957  ;;  %7359 = vmatmul.mubr.msk.bf16.vlgmr.msra.gmra.mrb[88].mxu1 %vm1234_vm4, %v2874_v2  ;;  %v2854_v57 = vpop.xlane.xlu1 %2853 }
 0x893   : > { %v2867_v27 = vmul.f32 %v7958_v28, %v8948_v11  ;;  %7369 = vmatpush3.bf16.msra.mxu1 %v3121_v23  ;;  %7963 = vrcp.f32 %v2854_v57  ;;  %7370 = vmatprep.mubr.msk.bf16.mxu1 %vm8158_vm3, %v8157_v55 }
 0x894   : > { %7380 = vmatprep.subr.bf16.mxu1 %v8157_v55 }
 0x895   : > { %v7960_v34 = vpop.eup %7959  ;;  %v2875_v53 = vpack.c.bf16 %v2867_v27, %v2867_v27 }
 0x896   : > { %v2868_v26 = vmul.f32 %v7960_v34, %v8952_v7 }
 0x897   : > { %7365 = vmatmul.mubr.msk.bf16.vlgmr.msra.gmra.mrb[84].mxu0 %vm1234_vm4, %v2875_v53 }
 0x898   : > { %7375 = vmatpush3.bf16.msra.mxu0 %v3167_v30  ;;  %v2876_v61 = vpack.c.bf16 %v2868_v26, %v2868_v26  ;;  %7376 = vmatprep.mubr.msk.bf16.mxu0 %vm8158_vm3, %v8157_v55  ;;  %v6692_v26 = vld [vmem:[%s8337_s2 + $0x40] sm:$0xff]  ;;  %v6693_v30 = vld [vmem:[%s8337_s2 + $0x48] sm:$0xff] }
 0x89a   : > { %v7962_v11 = vpop.eup %7961  ;;  %7371 = vmatmul.mubr.msk.bf16.vlgmr.msra.gmra.mrb[92].mxu1 %vm1234_vm4, %v2876_v61 }
 0x89b   : > { %v2869_v33 = vmul.f32 %v7962_v11, %v8956_v50  ;;  %7381 = vmatpush3.bf16.msra.mxu1 %v3213_v32  ;;  %7382 = vmatprep.mubr.msk.bf16.mxu1 %vm8158_vm3, %v8157_v55 }
 0x89d   : > { %v7964_v8 = vpop.eup %7963  ;;  %v2877_v7 = vpack.c.bf16 %v2869_v33, %v2869_v33 }
 0x89e   : > { %v2870_v47 = vmul.f32 %v7964_v8, %v8960_v12 }
 0x89f   : > { %7377 = vmatmul.mubr.msk.bf16.vlgmr.msra.gmra.mrb[88].mxu0 %vm1234_vm4, %v2877_v7  ;;  %v3496_v7 = vpack.c.bf16 %v6693_v30, %v6692_v26 }
 0x8a0   : > { %v2878_v38 = vpack.c.bf16 %v2870_v47, %v2870_v47  ;;  %7394 = vmatprep.mubr.msk.bf16.mxu0 %vm899_vm2, %v8449_v3 }
 0x8a2   : > { %7383 = vmatmul.mubr.msk.bf16.vlgmr.msra.gmra.mrb[96].mxu1 %vm1234_vm4, %v2878_v38  ;;  %v6694_v38 = vld [vmem:[%s8337_s2 + $0x50] sm:$0xff] }
 0x95a   : > { %v2927_v42 = vpop.f32.mrb[76].mxu0 }
 0x95b   : > { %v7342_v45 = vpop.f32.mrb[77].mxu0 }
 0x95c   : > { %v2930_v31 = vpop.f32.mrb[78].mxu0 }
 0x95d   : > { %v7343_v50 = vpop.f32.mrb[79].mxu0  ;;  %v2973_v60 = vpop.f32.mrb[84].mxu1 }
 0x95e   : > { %v3255_v63 = vpack.c.bf16 %v2973_v60, %v2927_v42  ;;  %v7348_v49 = vpop.f32.mrb[85].mxu1  ;;  %v6695_v42 = vld [vmem:[%s8337_s2 + $0x58] sm:$0xff]  ;;  %v6708_v50 = vld [vmem:[%s8347_s28 + $0x40] sm:$0xff]  ;;  %v6709_v60 = vld [vmem:[%s8347_s28 + $0x48] sm:$0xff] }
 0x95f   : > { %v2976_v54 = vpop.f32.mrb[86].mxu1  ;;  %v3497_v31 = vpack.c.bf16 %v6695_v42, %v6694_v38  ;;  %v6710_v49 = vld [vmem:[%s8347_s28 + $0x50] sm:$0xff] }
 0x960   : > { %v7349_v24 = vpop.f32.mrb[87].mxu1  ;;  %7386 = vmatprep.subr.bf16.mxu0 %v3255_v63  ;;  %v6711_v54 = vld [vmem:[%s8347_s28 + $0x58] sm:$0xff] }
 0x961   : > { %7387 = vmatpush3.bf16.msra.mxu0 %v3255_v63  ;;  %v3640_v63 = vpack.c.bf16 %v6709_v60, %v6708_v50  ;;  %v3641_v24 = vpack.c.bf16 %v6711_v54, %v6710_v49 }
 0x962   : > { %v3019_v12 = vpop.f32.mrb[80].mxu0 }
 0x963   : > { %v7354_v35 = vpop.f32.mrb[81].mxu0 }
 0x964   : > { %v3022_v1 = vpop.f32.mrb[82].mxu0 }
 0x965   : > { %v7355_v25 = vpop.f32.mrb[83].mxu0  ;;  %v3065_v9 = vpop.f32.mrb[88].mxu1 }
 0x966   : > { %v3256_v15 = vpack.c.bf16 %v3065_v9, %v3019_v12  ;;  %v7360_v10 = vpop.f32.mrb[89].mxu1  ;;  %v6683_v12 = vld [vmem:[%s8353_s25 + $0x8] sm:$0xff]  ;;  %v2161_v25 = vld [vmem:[%s8353_s25] sm:$0xff] }
 0x967   : > { %v3068_v4 = vpop.f32.mrb[90].mxu1  ;;  %v3330_v35 = vpack.c.bf16 %v6683_v12, %v6683_v12  ;;  %v2166_v9 = vpack.c.bf16 %v2161_v25, %v2161_v25 }
 0x968   : > { %v7361_v6 = vpop.f32.mrb[91].mxu1  ;;  %7388 = vmatprep.subr.bf16.mxu0 %v3256_v15 }
 0x969   : > { %7389 = vmatpush3.bf16.msra.mxu0 %v3256_v15  ;;  %7806 = vmatprep.subr.msk.bf16.mxu1 %vm1726_vm5, %v3330_v35  ;;  %v3344_v1 = vsel %vm1726_vm5, %v3330_v35, 0  ;;  %v6700_v6 = vld [vmem:[%s9846_s5 + $0x40] sm:$0xff] }
 0x96a   : > { %v3111_v14 = vpop.f32.mrb[84].mxu0  ;;  %7403 = vmatpush3.bf16.msra.mxu1 %v3344_v1 }
 0x96b   : > { %v7366_v22 = vpop.f32.mrb[85].mxu0  ;;  %7807 = vmatprep.subr.msk.bf16.mxu1 %vm1726_vm5, %v2166_v9 }
 0x96c   : > { %v3114_v2 = vpop.f32.mrb[86].mxu0 }
 0x96d   : > { %v7367_v28 = vpop.f32.mrb[87].mxu0  ;;  %v3157_v23 = vpop.f32.mrb[92].mxu1 }
 0x96e   : > { %v3257_v57 = vpack.c.bf16 %v3157_v23, %v3111_v14  ;;  %v7372_v29 = vpop.f32.mrb[93].mxu1  ;;  %v6701_v14 = vld [vmem:[%s9846_s5 + $0x48] sm:$0xff]  ;;  %v3424_v23 = vsel %vm1726_vm5, %v2166_v9, 0 }
 0x96f   : > { %v3160_v27 = vpop.f32.mrb[94].mxu1 }
 0x970   : > { %v7373_v34 = vpop.f32.mrb[95].mxu1  ;;  %7390 = vmatprep.subr.bf16.mxu0 %v3257_v57 }
 0x971   : > { %7391 = vmatpush3.bf16.msra.mxu0 %v3257_v57  ;;  %v3568_v57 = vpack.c.bf16 %v6701_v14, %v6700_v6 }
 0x972   : > { %v3203_v53 = vpop.f32.mrb[88].mxu0 }
 0x973   : > { %v7378_v16 = vpop.f32.mrb[89].mxu0 }
 0x974   : > { %v3206_v61 = vpop.f32.mrb[90].mxu0 }
 0x975   : > { %v7379_v11 = vpop.f32.mrb[91].mxu0  ;;  %v3249_v32 = vpop.f32.mrb[96].mxu1 }
 0x976   : > { %v3258_v33 = vpack.c.bf16 %v3249_v32, %v3203_v53  ;;  %v7384_v8 = vpop.f32.mrb[97].mxu1  ;;  %v6702_v32 = vld [vmem:[%s9846_s5 + $0x50] sm:$0xff] }
 0x977   : > { %v3252_v47 = vpop.f32.mrb[98].mxu1 }
 0x978   : > { %v7385_v45 = vpop.f32.mrb[99].mxu1  ;;  %7392 = vmatprep.subr.bf16.mxu0 %v3258_v33 }
 0x979   : > { %7393 = vmatpush3.bf16.msra.mxu0 %v3258_v33  ;;  %v6703_v33 = vld [vmem:[%s9846_s5 + $0x58] sm:$0xff] }
 0x97a   : > { %7422 = vmatprep.subr.bf16.mxu0 %v3496_v7 }
 0x97c   : > { %7395 = vmatmul.mubr.msk.bf16.vlgmr.msra.gmra.mrb[92].mxu0 %vm899_vm2, %v8518_v18 }
 0x97d   : > { %7398 = vmatprep.mubr.msk.bf16.mxu0 %vm899_vm2, %v8454_v5  ;;  %7423 = vmatpush3.bf16.msra.mxu0 %v3496_v7  ;;  %v3569_v7 = vpack.c.bf16 %v6703_v33, %v6702_v32 }
 0x97e   : > { %7424 = vmatprep.subr.bf16.mxu0 %v3497_v31 }
 0x981   : > { %7425 = vmatpush3.bf16.msra.mxu0 %v3497_v31 }
 0x982   : > { %7446 = vmatprep.subr.bf16.mxu0 %v3640_v63 }
 0x984   : > { %7399 = vmatmul.mubr.msk.bf16.gmra.mrb[96].mxu0 %vm899_vm2, %v8520_v19 }
 0x985   : > { %7426 = vmatprep.mubr.msk.bf16.mxu0 %vm757_vm1, %v8475_v52 }
 0x98c   : > { %7427 = vmatmul.mubr.msk.bf16.vlgmr.msra.gmra.mrb[100].mxu0 %vm757_vm1, %v8483_v37 }
 0x98d   : > { %7430 = vmatprep.mubr.msk.bf16.mxu0 %vm757_vm1, %v8490_v56  ;;  %7447 = vmatpush3.bf16.msra.mxu0 %v3640_v63 }
 0x98e   : > { %7448 = vmatprep.subr.bf16.mxu0 %v3641_v24 }
 0x991   : > { %7449 = vmatpush3.bf16.msra.mxu0 %v3641_v24 }
 0x992   : > { %7464 = vmatprep.subr.bf16.mxu0 %v8157_v55 }
 0x994   : > { %7431 = vmatmul.mubr.msk.bf16.gmra.mrb[104].mxu0 %vm757_vm1, %v8512_v13 }
 0x995   : > { %7450 = vmatprep.mubr.msk.bf16.mxu0 %vm757_vm1, %v8546_v43 }
 0x99c   : > { %7451 = vmatmul.mubr.msk.bf16.vlgmr.msra.gmra.mrb[108].mxu0 %vm757_vm1, %v8542_v40 }
 0x99d   : > { %7454 = vmatprep.mubr.msk.bf16.mxu0 %vm757_vm1, %v8548_v44 }
 0x9a4   : > { %7455 = vmatmul.mubr.msk.bf16.gmra.mrb[112].mxu0 %vm757_vm1, %v8544_v41 }
 0x9a5   : > { %7466 = vmatprep.mubr.msk.bf16.mxu0 %vm8158_vm3, %v8157_v55 }
 0xa4f   : > { %v7396_v15 = vpop.f32.mrb[92].mxu0 }
 0xa50   : > { %v3293_v10 = vpop.f32.mrb[93].mxu0 }
 0xa51   : > { %v7397_v4 = vpop.f32.mrb[94].mxu0 }
 0xa52   : > { %v3327_v22 = vpack.c.bf16 %v7397_v4, %v7396_v15  ;;  %v3296_v2 = vpop.f32.mrb[95].mxu0 }
 0xa53   : > { %v3326_v28 = vpack.c.bf16 %v3296_v2, %v3293_v10 }
 0xa55   : > { %7404 = vmatprep.mubr.msk.bf16.mxu1 %vm1234_vm4, %v3326_v28 }
 0xa56   : > { %7405 = vmatmul.mubr.msk.bf16.vlgmr.msra.gmra.mrb[100].mxu1 %vm1234_vm4, %v3327_v22 }
 0xa57   : > { %v7400_v29 = vpop.f32.mrb[96].mxu0  ;;  %7413 = vmatpush3.bf16.msra.mxu1 %v3424_v23 }
 0xa58   : > { %v3309_v27 = vpop.f32.mrb[97].mxu0  ;;  %7434 = vmatprep.subr.bf16.mxu1 %v3568_v57 }
 0xa59   : > { %v7401_v34 = vpop.f32.mrb[98].mxu0 }
 0xa5a   : > { %v3329_v53 = vpack.c.bf16 %v7401_v34, %v7400_v29  ;;  %v3312_v16 = vpop.f32.mrb[99].mxu0 }
 0xa5b   : > { %v3328_v26 = vpack.c.bf16 %v3312_v16, %v3309_v27 }
 0xa5d   : > { %7408 = vmatprep.mubr.msk.bf16.mxu1 %vm1234_vm4, %v3328_v26 }
 0xa5e   : > { %7409 = vmatmul.mubr.msk.bf16.gmra.mrb[104].mxu1 %vm1234_vm4, %v3329_v53 }
 0xa5f   : > { %7414 = vmatprep.mubr.msk.bf16.mxu1 %vm1234_vm4, %v2162_v59  ;;  %v9061_v30 = vpop.f32.mrb[100].mxu0 }
 0xa60   : > { %v3532_v61 = vpop.f32.mrb[101].mxu0  ;;  %v3709_v6 = vpack.c.bf16 %v9061_v30, %v9061_v30 }
 0xa61   : > { %v9063_v11 = vpop.f32.mrb[102].mxu0  ;;  %v3707_v12 = vpack.c.bf16 %v3532_v61, %v3532_v61 }
 0xa62   : > { %v3535_v8 = vpop.f32.mrb[103].mxu0  ;;  %v3710_v22 = vpack.c.bf16 %v9063_v11, %v9063_v11 }
 0xa63   : > { %v3708_v9 = vpack.c.bf16 %v3535_v8, %v3535_v8 }
 0xa66   : > { %7415 = vmatmul.mubr.msk.bf16.vlgmr.msra.gmra.mrb[100].mxu1 %vm1234_vm4, %v2163_v51 }
 0xa67   : > { %7418 = vmatprep.mubr.msk.bf16.mxu1 %vm1234_vm4, %v2164_v20  ;;  %v9075_v48 = vpop.f32.mrb[104].mxu0  ;;  %7435 = vmatpush3.bf16.msra.mxu1 %v3568_v57 }
 0xa68   : > { %v9077_v0 = vpop.f32.mrb[105].mxu0  ;;  %7436 = vmatprep.subr.bf16.mxu1 %v3569_v7  ;;  %v3713_v26 = vpack.c.bf16 %v9075_v48, %v9075_v48 }
 0xa69   : > { %v9079_v59 = vpop.f32.mrb[106].mxu0  ;;  %v3711_v57 = vpack.c.bf16 %v9077_v0, %v9077_v0 }
 0xa6a   : > { %v9081_v47 = vpop.f32.mrb[107].mxu0  ;;  %v3714_v61 = vpack.c.bf16 %v9079_v59, %v9079_v59 }
 0xa6b   : > { %7437 = vmatpush3.bf16.msra.mxu1 %v3569_v7  ;;  %v3712_v27 = vpack.c.bf16 %v9081_v47, %v9081_v47 }
 0xa6c   : > { %7458 = vmatprep.subr.bf16.mxu1 %v8157_v55 }
 0xa6e   : > { %7419 = vmatmul.mubr.msk.bf16.gmra.mrb[104].mxu1 %vm1234_vm4, %v2165_v36 }
 0xa6f   : > { %7438 = vmatprep.mubr.msk.bf16.mxu1 %vm757_vm1, %v8546_v43  ;;  %v9090_v17 = vpop.f32.mrb[108].mxu0 }
 0xa70   : > { %v9092_v21 = vpop.f32.mrb[109].mxu0 }
 0xa71   : > { %v9094_v51 = vpop.f32.mrb[110].mxu0  ;;  %v4203_v16 = vpack.c.bf16 %v9092_v21, %v9092_v21 }
 0xa72   : > { %v9096_v62 = vpop.f32.mrb[111].mxu0 }
 0xa73   : > { %v4204_v30 = vpack.c.bf16 %v9096_v62, %v9096_v62  ;;  %v4215_v11 = vsel %vm1726_vm5, %v4203_v16, 0  ;;  %v9177_v62 = vld [vmem:[%s9848_s26] sm:$0xff] }
 0xa75   : > { %v4261_v32 = vsel %vm1726_vm5, %v4204_v30, 0 }
 0xa76   : > { %7439 = vmatmul.mubr.msk.bf16.vlgmr.msra.gmra.mrb[108].mxu1 %vm757_vm1, %v8542_v40 }
 0xa77   : > { %7442 = vmatprep.mubr.msk.bf16.mxu1 %vm757_vm1, %v8548_v44  ;;  %v9102_v39 = vpop.f32.mrb[112].mxu0 }
 0xa78   : > { %v9104_v46 = vpop.f32.mrb[113].mxu0 }
 0xa79   : > { %v9106_v36 = vpop.f32.mrb[114].mxu0 }
 0xa7a   : > { %v9108_v58 = vpop.f32.mrb[115].mxu0 }
 0xa7e   : > { %7443 = vmatmul.mubr.msk.bf16.gmra.mrb[112].mxu1 %vm757_vm1, %v8544_v41 }
 0xa7f   : > { %7460 = vmatprep.mubr.msk.bf16.mxu1 %vm8158_vm3, %v8157_v55 }
 0xb49   : > { %v7440_v20 = vpop.f32.mrb[108].mxu1 }
 0xb4a   : > { %v3604_v38 = vpop.f32.mrb[109].mxu1  ;;  %v3717_v49 = vpack.c.bf16 %v7440_v20, %v7440_v20 }
 0xb4b   : > { %v3715_v42 = vpack.c.bf16 %v3604_v38, %v3604_v38  ;;  %v7441_v45 = vpop.f32.mrb[110].mxu1 }
 0xb4c   : > { %v3607_v31 = vpop.f32.mrb[111].mxu1  ;;  %v3718_v35 = vpack.c.bf16 %v7441_v45, %v7441_v45  ;;  %v3819_v15 = vsel %vm1234_vm4, %v3717_v49, 0 }
 0xb4d   : > { %v3727_v50 = vsel %vm1234_vm4, %v3715_v42, 0  ;;  %v3716_v60 = vpack.c.bf16 %v3607_v31, %v3607_v31  ;;  %v9187_v31 = vld [vmem:[%s9848_s26 + $0x8] sm:$0xff] }
 0xb4e   : > { %7459 = vmatpush3.bf16.xpose.msra.mxu1 %v3727_v50  ;;  %v3865_v10 = vsel %vm1234_vm4, %v3718_v35, 0 }
 0xb4f   : > { %v3773_v63 = vsel %vm1234_vm4, %v3716_v60, 0  ;;  %7470 = vmatprep.subr.bf16.mxu1 %v8157_v55 }
 0xb50   : > { %7465 = vmatpush3.bf16.xpose.msra.mxu0 %v3773_v63 }
 0xb51   : > { %v7444_v54 = vpop.f32.mrb[112].mxu1  ;;  %7476 = vmatprep.subr.bf16.mxu0 %v8157_v55 }
 0xb52   : > { %v3620_v24 = vpop.f32.mrb[113].mxu1  ;;  %v3721_v23 = vpack.c.bf16 %v7444_v54, %v7444_v54 }
 0xb53   : > { %v7445_v1 = vpop.f32.mrb[114].mxu1  ;;  %v3719_v4 = vpack.c.bf16 %v3620_v24, %v3620_v24 }
 0xb54   : > { %v3623_v25 = vpop.f32.mrb[115].mxu1  ;;  %v3722_v29 = vpack.c.bf16 %v7445_v1, %v7445_v1  ;;  %v4003_v34 = vsel %vm1234_vm4, %v3721_v23, 0 }
 0xb55   : > { %7461 = vmatmul.mubr.msk.bf16.vlgmr.msra.gmra.mrb[116].mxu1 %vm1234_vm4, %v3707_v12  ;;  %v3720_v14 = vpack.c.bf16 %v3623_v25, %v3623_v25  ;;  %v3911_v2 = vsel %vm1234_vm4, %v3719_v4, 0 }
 0xb56   : > { %7471 = vmatpush3.bf16.xpose.msra.mxu1 %v3819_v15  ;;  %7472 = vmatprep.mubr.msk.bf16.mxu1 %vm8158_vm3, %v8157_v55  ;;  %v4049_v53 = vsel %vm1234_vm4, %v3722_v29, 0 }
 0xb57   : > { %7467 = vmatmul.mubr.msk.bf16.vlgmr.msra.gmra.mrb[116].mxu0 %vm1234_vm4, %v3708_v9  ;;  %7482 = vmatprep.subr.bf16.mxu1 %v8157_v55  ;;  %v3957_v28 = vsel %vm1234_vm4, %v3720_v14, 0  ;;  %v9197_v9 = vld [vmem:[%s9848_s26 + $0x10] sm:$0xff]  ;;  %v9204_v14 = vld [vmem:[%s9848_s26 + $0x18] sm:$0xff] }
 0xb58   : > { %7477 = vmatpush3.bf16.xpose.msra.mxu0 %v3865_v10  ;;  %7478 = vmatprep.mubr.msk.bf16.mxu0 %vm8158_vm3, %v8157_v55 }
 0xb59   : > { %7488 = vmatprep.subr.bf16.mxu0 %v8157_v55 }
 0xb5d   : > { %7473 = vmatmul.mubr.msk.bf16.vlgmr.msra.gmra.mrb[120].mxu1 %vm1234_vm4, %v3709_v6 }
 0xb5e   : > { %7483 = vmatpush3.bf16.xpose.msra.mxu1 %v3911_v2  ;;  %7484 = vmatprep.mubr.msk.bf16.mxu1 %vm8158_vm3, %v8157_v55 }
 0xb5f   : > { %7479 = vmatmul.mubr.msk.bf16.vlgmr.msra.gmra.mrb[120].mxu0 %vm1234_vm4, %v3710_v22  ;;  %7494 = vmatprep.subr.bf16.mxu1 %v8157_v55 }
 0xb60   : > { %7489 = vmatpush3.bf16.xpose.msra.mxu0 %v3957_v28  ;;  %7490 = vmatprep.mubr.msk.bf16.mxu0 %vm8158_vm3, %v8157_v55 }
 0xb61   : > { %7500 = vmatprep.subr.bf16.mxu0 %v8157_v55 }
 0xb65   : > { %7485 = vmatmul.mubr.msk.bf16.vlgmr.msra.gmra.mrb[124].mxu1 %vm1234_vm4, %v3711_v57 }
 0xb66   : > { %7495 = vmatpush3.bf16.xpose.msra.mxu1 %v4003_v34  ;;  %7496 = vmatprep.mubr.msk.bf16.mxu1 %vm8158_vm3, %v8157_v55 }
 0xb67   : > { %7491 = vmatmul.mubr.msk.bf16.vlgmr.msra.gmra.mrb[124].mxu0 %vm1234_vm4, %v3712_v27  ;;  %7506 = vmatprep.subr.bf16.mxu1 %v8157_v55 }
 0xb68   : > { %7501 = vmatpush3.bf16.xpose.msra.mxu0 %v4049_v53  ;;  %7502 = vmatprep.mubr.msk.bf16.mxu0 %vm8158_vm3, %v8157_v55 }
 0xb69   : > { %7512 = vmatprep.subr.bf16.mxu0 %v8157_v55 }
 0xb6d   : > { %7497 = vmatmul.mubr.msk.bf16.vlgmr.msra.gmra.mrb[128].mxu1 %vm1234_vm4, %v3713_v26  ;;  %v9211_v26 = vld [vmem:[%s9848_s26 + $0x20] sm:$0xff] }
 0xb6e   : > { %7507 = vmatpush3.bf16.msra.mxu1 %v4215_v11  ;;  %7508 = vmatprep.mubr.msk.bf16.mxu1 %vm8158_vm3, %v8157_v55 }
 0xb6f   : > { %7503 = vmatmul.mubr.msk.bf16.vlgmr.msra.gmra.mrb[128].mxu0 %vm1234_vm4, %v3714_v61  ;;  %7518 = vmatprep.subr.bf16.mxu1 %v8157_v55 }
 0xb70   : > { %7513 = vmatpush3.bf16.msra.mxu0 %v4261_v32  ;;  %7514 = vmatprep.mubr.msk.bf16.mxu0 %vm8158_vm3, %v8157_v55 }
 0xb71   : > { %7524 = vmatprep.subr.bf16.mxu0 %v8157_v55 }
 0xc28   : > { %v3763_v33 = vpop.f32.mrb[116].mxu1 }
 0xc29   : > { %v4091_v8 = vmul.f32 0.35355338, %v3763_v33  ;;  %v7462_v7 = vpop.f32.mrb[117].mxu1  ;;  %v9218_v33 = vld [vmem:[%s9848_s26 + $0x28] sm:$0xff] }
 0xc2a   : > { %v3766_v48 = vpop.f32.mrb[118].mxu1  ;;  %v3809_v0 = vpop.f32.mrb[116].mxu0 }
 0xc2b   : > { %v4092_v59 = vmul.f32 0.35355338, %v3809_v0  ;;  %v7463_v47 = vpop.f32.mrb[119].mxu1  ;;  %v7468_v21 = vpop.f32.mrb[117].mxu0  ;;  %v9180_v20 = vadd.f32 %v9177_v62, %v4091_v8 }
 0xc2c   : > { %v3812_v38 = vpop.f32.mrb[118].mxu0 }
 0xc2d   : > { %v7469_v42 = vpop.f32.mrb[119].mxu0  ;;  %v4107_v45 = vsel %vm1234_vm4, %v9180_v20, -inf  ;;  %v9190_v50 = vadd.f32 %v9187_v31, %v4092_v59 }
 0xc2e   : > { %4108 = vmax.xlane.f32.xlu0 %v4107_v45 }
 0xc2f   : > { %v4110_v60 = vsel %vm1234_vm4, %v9190_v50, -inf }
 0xc30   : > { %4111 = vmax.xlane.f32.xlu1 %v4110_v60  ;;  %v3855_v63 = vpop.f32.mrb[120].mxu1  ;;  %v9225_v60 = vld [vmem:[%s9848_s26 + $0x30] sm:$0xff] }
 0xc31   : > { %v4093_v49 = vmul.f32 0.35355338, %v3855_v63  ;;  %v7474_v54 = vpop.f32.mrb[121].mxu1 }
 0xc32   : > { %v3858_v24 = vpop.f32.mrb[122].mxu1  ;;  %v3901_v12 = vpop.f32.mrb[120].mxu0 }
 0xc33   : > { %v4094_v35 = vmul.f32 0.35355338, %v3901_v12  ;;  %v7475_v1 = vpop.f32.mrb[123].mxu1  ;;  %v7480_v25 = vpop.f32.mrb[121].mxu0  ;;  %v4101_v15 = vadd.f32 %v9197_v9, %v4093_v49  ;;  %v9232_v12 = vld [vmem:[%s9848_s26 + $0x38] sm:$0xff] }
 0xc34   : > { %v3904_v10 = vpop.f32.mrb[122].mxu0 }
 0xc35   : > { %v7481_v4 = vpop.f32.mrb[123].mxu0  ;;  %v4113_v6 = vsel %vm1234_vm4, %v4101_v15, -inf  ;;  %v4102_v22 = vadd.f32 %v9204_v14, %v4094_v35 }
 0xc36   : > { %4114 = vmax.xlane.f32.xlu0 %v4113_v6 }
 0xc37   : > { %v4116_v2 = vsel %vm1234_vm4, %v4102_v22, -inf }
 0xc38   : > { %4117 = vmax.xlane.f32.xlu1 %v4116_v2  ;;  %v3947_v28 = vpop.f32.mrb[124].mxu1 }
 0xc39   : > { %v4095_v23 = vmul.f32 0.35355338, %v3947_v28  ;;  %v7486_v57 = vpop.f32.mrb[125].mxu1 }
 0xc3a   : > { %v3950_v29 = vpop.f32.mrb[126].mxu1  ;;  %v3993_v27 = vpop.f32.mrb[124].mxu0 }
 0xc3b   : > { %v4096_v34 = vmul.f32 0.35355338, %v3993_v27  ;;  %v7487_v53 = vpop.f32.mrb[127].mxu1  ;;  %v7492_v16 = vpop.f32.mrb[125].mxu0  ;;  %v4103_v30 = vadd.f32 %v9211_v26, %v4095_v23 }
 0xc3c   : > { %v3996_v61 = vpop.f32.mrb[126].mxu0 }
 0xc3d   : > { %v7493_v11 = vpop.f32.mrb[127].mxu0  ;;  %v4119_v32 = vsel %vm1234_vm4, %v4103_v30, -inf  ;;  %v4104_v8 = vadd.f32 %v9218_v33, %v4096_v34 }
 0xc3e   : > { %4120 = vmax.xlane.f32.xlu0 %v4119_v32 }
 0xc3f   : > { %v4122_v7 = vsel %vm1234_vm4, %v4104_v8, -inf }
 0xc40   : > { %v4039_v48 = vpop.f32.mrb[128].mxu1  ;;  %4123 = vmax.xlane.f32.xlu1 %v4122_v7 }
 0xc41   : > { %v4097_v0 = vmul.f32 0.35355338, %v4039_v48  ;;  %v7498_v59 = vpop.f32.mrb[129].mxu1 }
 0xc42   : > { %v4042_v47 = vpop.f32.mrb[130].mxu1  ;;  %v4085_v21 = vpop.f32.mrb[128].mxu0 }
 0xc43   : > { %v4098_v38 = vmul.f32 0.35355338, %v4085_v21  ;;  %v7499_v42 = vpop.f32.mrb[131].mxu1  ;;  %v7504_v45 = vpop.f32.mrb[129].mxu0  ;;  %v4105_v63 = vadd.f32 %v9225_v60, %v4097_v0 }
 0xc44   : > { %v4088_v49 = vpop.f32.mrb[130].mxu0 }
 0xc45   : > { %v7505_v54 = vpop.f32.mrb[131].mxu0  ;;  %v4125_v24 = vsel %vm1234_vm4, %v4105_v63, -inf  ;;  %v4106_v35 = vadd.f32 %v9232_v12, %v4098_v38 }
 0xc46   : > { %4126 = vmax.xlane.f32.xlu0 %v4125_v24 }
 0xc47   : > { %v4128_v1 = vsel %vm1234_vm4, %v4106_v35, -inf }
 0xc48   : > { %4129 = vmax.xlane.f32.xlu1 %v4128_v1 }
 0xcbb   : > { %v4109_v25 = vpop.xlane.xlu0 %4108 }
 0xcbc   : > { %v4131_v10 = vsub.f32 %v9180_v20, %v4109_v25 }
 0xcbd   : > { %v4112_v4 = vpop.xlane.xlu1 %4111 }
 0xcbe   : > { %v4139_v6 = vmul.f32 1.442695, %v4131_v10  ;;  %v4132_v2 = vsub.f32 %v9190_v50, %v4112_v4 }
 0xcc0   : > { %7965 = vpow2.f32 %v4139_v6  ;;  %v4141_v28 = vmul.f32 1.442695, %v4132_v2 }
 0xcc2   : > { %7967 = vpow2.f32 %v4141_v28 }
 0xcc3   : > { %v4115_v23 = vpop.xlane.xlu0 %4114 }
 0xcc4   : > { %v4133_v57 = vsub.f32 %v4101_v15, %v4115_v23 }
 0xcc5   : > { %v4118_v29 = vpop.xlane.xlu1 %4117 }
 0xcc6   : > { %v4143_v27 = vmul.f32 1.442695, %v4133_v57  ;;  %v4134_v34 = vsub.f32 %v4102_v22, %v4118_v29  ;;  %v4205_v29 = vpack.c.bf16 %v9090_v17, %v9090_v17 }
 0xcc8   : > { %7969 = vpow2.f32 %v4143_v27  ;;  %v4145_v53 = vmul.f32 1.442695, %v4134_v34 }
 0xcca   : > { %v7966_v16 = vpop.eup %7965  ;;  %7971 = vpow2.f32 %v4145_v53  ;;  %v4206_v53 = vpack.c.bf16 %v9094_v51, %v9094_v51 }
 0xccb   : > { %v4121_v61 = vpop.xlane.xlu0 %4120  ;;  %v4155_v11 = vsel %vm1234_vm4, %v7966_v16, 0.0 }
 0xccc   : > { %v7968_v20 = vpop.eup %7967  ;;  %v4135_v32 = vsub.f32 %v4103_v30, %v4121_v61  ;;  %4156 = vadd.xlane.f32.xlu0 %v4155_v11  ;;  %v4353_v17 = vsel %vm1726_vm5, %v4206_v53, 0 }
 0xccd   : > { %v4124_v7 = vpop.xlane.xlu1 %4123  ;;  %v4158_v50 = vsel %vm1234_vm4, %v7968_v20, 0.0 }
 0xcce   : > { %v4147_v48 = vmul.f32 1.442695, %v4135_v32  ;;  %v4136_v0 = vsub.f32 %v4104_v8, %v4124_v7  ;;  %4159 = vadd.xlane.f32.xlu1 %v4158_v50  ;;  %v4307_v32 = vsel %vm1726_vm5, %v4205_v29, 0 }
 0xcd0   : > { %7973 = vpow2.f32 %v4147_v48  ;;  %v4149_v15 = vmul.f32 1.442695, %v4136_v0 }
 0xcd2   : > { %v7970_v59 = vpop.eup %7969  ;;  %7975 = vpow2.f32 %v4149_v15  ;;  %v4208_v15 = vpack.c.bf16 %v9108_v58, %v9108_v58 }
 0xcd3   : > { %v4127_v22 = vpop.xlane.xlu0 %4126  ;;  %v4161_v47 = vsel %vm1234_vm4, %v7970_v59, 0.0 }
 0xcd4   : > { %v7972_v21 = vpop.eup %7971  ;;  %v4137_v38 = vsub.f32 %v4105_v63, %v4127_v22  ;;  %4162 = vadd.xlane.f32.xlu0 %v4161_v47 }
 0xcd5   : > { %v4130_v42 = vpop.xlane.xlu1 %4129  ;;  %v4164_v30 = vsel %vm1234_vm4, %v7972_v21, 0.0 }
 0xcd6   : > { %v4151_v45 = vmul.f32 1.442695, %v4137_v38  ;;  %v4138_v49 = vsub.f32 %v4106_v35, %v4130_v42  ;;  %4165 = vadd.xlane.f32.xlu1 %v4164_v30 }
 0xcd8   : > { %7977 = vpow2.f32 %v4151_v45  ;;  %v4153_v54 = vmul.f32 1.442695, %v4138_v49 }
 0xcda   : > { %v9242_v8 = vpop.eup %7973  ;;  %7979 = vpow2.f32 %v4153_v54  ;;  %v6741_v54 = vld [vmem:[%s8337_s2 + $0x60] sm:$0xff] }
 0xcdb   : > { %v4167_v24 = vsel %vm1234_vm4, %v9242_v8, 0.0 }
 0xcdc   : > { %v9246_v1 = vpop.eup %7975  ;;  %4168 = vadd.xlane.f32.xlu0 %v4167_v24  ;;  %v6742_v24 = vld [vmem:[%s8337_s2 + $0x68] sm:$0xff] }
 0xcdd   : > { %v4170_v63 = vsel %vm1234_vm4, %v9246_v1, 0.0 }
 0xcde   : > { %4171 = vadd.xlane.f32.xlu1 %v4170_v63  ;;  %v4210_v63 = vpack.c.bf16 %v9106_v36, %v9106_v36 }
 0xce2   : > { %v9250_v25 = vpop.eup %7977 }
 0xce3   : > { %v4173_v35 = vsel %vm1234_vm4, %v9250_v25, 0.0 }
 0xce4   : > { %v9254_v10 = vpop.eup %7979  ;;  %4174 = vadd.xlane.f32.xlu0 %v4173_v35 }
 0xce5   : > { %v4176_v4 = vsel %vm1234_vm4, %v9254_v10, 0.0 }
 0xce6   : > { %4177 = vadd.xlane.f32.xlu1 %v4176_v4 }
 0xd59   : > { %v4157_v6 = vpop.xlane.xlu0 %4156 }
 0xd5a   : > { %7981 = vrcp.f32 %v4157_v6 }
 0xd5b   : > { %v4160_v2 = vpop.xlane.xlu1 %4159 }
 0xd5c   : > { %7983 = vrcp.f32 %v4160_v2  ;;  %v4748_v2 = vpack.c.bf16 %v6742_v24, %v6741_v54 }
 0xd61   : > { %v4163_v28 = vpop.xlane.xlu0 %4162 }
 0xd62   : > { %7985 = vrcp.f32 %v4163_v28 }
 0xd63   : > { %v4166_v23 = vpop.xlane.xlu1 %4165 }
 0xd64   : > { %v7982_v57 = vpop.eup %7981  ;;  %7987 = vrcp.f32 %v4166_v23  ;;  %v6743_v23 = vld [vmem:[%s8337_s2 + $0x70] sm:$0xff] }
 0xd65   : > { %v4187_v27 = vmul.f32 %v7982_v57, %v7966_v16  ;;  %v6744_v57 = vld [vmem:[%s8337_s2 + $0x78] sm:$0xff] }
 0xd66   : > { %v7984_v34 = vpop.eup %7983  ;;  %v4749_v53 = vpack.c.bf16 %v6744_v57, %v6743_v23 }
 0xd67   : > { %v4188_v61 = vmul.f32 %v7984_v34, %v7968_v20  ;;  %v4195_v11 = vpack.c.bf16 %v4187_v27, %v4187_v27  ;;  %v4207_v20 = vpack.c.bf16 %v9104_v46, %v9104_v46  ;;  %v4445_v46 = vsel %vm1726_vm5, %v4208_v15, 0 }
 0xd69   : > { %7509 = vmatmul.mubr.msk.bf16.vlgmr.msra.gmra.mrb[132].mxu1 %vm1234_vm4, %v4195_v11  ;;  %v4169_v7 = vpop.xlane.xlu0 %4168  ;;  %v4196_v50 = vpack.c.bf16 %v4188_v61, %v4188_v61  ;;  %v4399_v38 = vsel %vm1726_vm5, %v4207_v20, 0  ;;  %v6749_v61 = vld [vmem:[%s9846_s5 + $0x60] sm:$0xff]  ;;  %v6750_v11 = vld [vmem:[%s9846_s5 + $0x68] sm:$0xff] }
 0xd6a   : > { %7519 = vmatpush3.bf16.msra.mxu1 %v4307_v32  ;;  %7989 = vrcp.f32 %v4169_v7  ;;  %7520 = vmatprep.mubr.msk.bf16.mxu1 %vm8158_vm3, %v8157_v55  ;;  %v6752_v32 = vld [vmem:[%s9846_s5 + $0x78] sm:$0xff] }
 0xd6b   : > { %7515 = vmatmul.mubr.msk.bf16.vlgmr.msra.gmra.mrb[132].mxu0 %vm1234_vm4, %v4196_v50  ;;  %v4172_v16 = vpop.xlane.xlu1 %4171  ;;  %7530 = vmatprep.subr.bf16.mxu1 %v8157_v55  ;;  %v6757_v50 = vld [vmem:[%s8347_s28 + $0x60] sm:$0xff] }
 0xd6c   : > { %v7986_v51 = vpop.eup %7985  ;;  %7525 = vmatpush3.bf16.msra.mxu0 %v4353_v17  ;;  %7991 = vrcp.f32 %v4172_v16  ;;  %7526 = vmatprep.mubr.msk.bf16.mxu0 %vm8158_vm3, %v8157_v55  ;;  %v6758_v17 = vld [vmem:[%s8347_s28 + $0x68] sm:$0xff]  ;;  %v6759_v16 = vld [vmem:[%s8347_s28 + $0x70] sm:$0xff] }
 0xd6d   : > { %v4189_v48 = vmul.f32 %v7986_v51, %v7970_v59  ;;  %7536 = vmatprep.subr.bf16.mxu0 %v8157_v55  ;;  %v6760_v51 = vld [vmem:[%s8347_s28 + $0x78] sm:$0xff] }
 0xd6e   : > { %v7988_v0 = vpop.eup %7987  ;;  %v4893_v20 = vpack.c.bf16 %v6760_v51, %v6759_v16 }
 0xd6f   : > { %v4190_v22 = vmul.f32 %v7988_v0, %v7972_v21  ;;  %v4197_v47 = vpack.c.bf16 %v4189_v48, %v4189_v48  ;;  %v4209_v21 = vpack.c.bf16 %v9102_v39, %v9102_v39 }
 0xd71   : > { %7521 = vmatmul.mubr.msk.bf16.vlgmr.msra.gmra.mrb[136].mxu1 %vm1234_vm4, %v4197_v47  ;;  %v4175_v42 = vpop.xlane.xlu0 %4174  ;;  %v4198_v30 = vpack.c.bf16 %v4190_v22, %v4190_v22  ;;  %v4491_v6 = vsel %vm1726_vm5, %v4209_v21, 0 }
 0xd72   : > { %7531 = vmatpush3.bf16.msra.mxu1 %v4399_v38  ;;  %7993 = vrcp.f32 %v4175_v42  ;;  %7532 = vmatprep.mubr.msk.bf16.mxu1 %vm8158_vm3, %v8157_v55 }
 0xd73   : > { %7527 = vmatmul.mubr.msk.bf16.vlgmr.msra.gmra.mrb[136].mxu0 %vm1234_vm4, %v4198_v30  ;;  %v4178_v58 = vpop.xlane.xlu1 %4177  ;;  %7542 = vmatprep.subr.bf16.mxu1 %v8157_v55 }
 0xd74   : > { %v7990_v59 = vpop.eup %7989  ;;  %7537 = vmatpush3.bf16.msra.mxu0 %v4445_v46  ;;  %7995 = vrcp.f32 %v4178_v58  ;;  %7538 = vmatprep.mubr.msk.bf16.mxu0 %vm8158_vm3, %v8157_v55 }
 0xd75   : > { %v4191_v45 = vmul.f32 %v7990_v59, %v9242_v8  ;;  %7548 = vmatprep.subr.bf16.mxu0 %v8157_v55  ;;  %v4537_v8 = vsel %vm1726_vm5, %v4210_v63, 0 }
 0xd76   : > { %v7992_v49 = vpop.eup %7991 }
 0xd77   : > { %v4192_v35 = vmul.f32 %v7992_v49, %v9246_v1  ;;  %v4199_v4 = vpack.c.bf16 %v4191_v45, %v4191_v45 }
 0xd79   : > { %7533 = vmatmul.mubr.msk.bf16.vlgmr.msra.gmra.mrb[140].mxu1 %vm1234_vm4, %v4199_v4  ;;  %v4200_v39 = vpack.c.bf16 %v4192_v35, %v4192_v35 }
 0xd7a   : > { %7543 = vmatpush3.bf16.msra.mxu1 %v4491_v6  ;;  %7544 = vmatprep.mubr.msk.bf16.mxu1 %vm8158_vm3, %v8157_v55 }
 0xd7b   : > { %7539 = vmatmul.mubr.msk.bf16.vlgmr.msra.gmra.mrb[140].mxu0 %vm1234_vm4, %v4200_v39 }
 0xd7c   : > { %v7994_v36 = vpop.eup %7993  ;;  %7549 = vmatpush3.bf16.msra.mxu0 %v4537_v8  ;;  %7550 = vmatprep.mubr.msk.bf16.mxu0 %vm8158_vm3, %v8157_v55 }
 0xd7d   : > { %v4193_v1 = vmul.f32 %v7994_v36, %v9250_v25  ;;  %7580 = vmatprep.subr.bf16.mxu0 %v4748_v2  ;;  %v4820_v25 = vpack.c.bf16 %v6750_v11, %v6749_v61 }
 0xd7e   : > { %v7996_v28 = vpop.eup %7995 }
 0xd7f   : > { %v4194_v29 = vmul.f32 %v7996_v28, %v9254_v10  ;;  %v4201_v27 = vpack.c.bf16 %v4193_v1, %v4193_v1  ;;  %v6751_v10 = vld [vmem:[%s9846_s5 + $0x70] sm:$0xff] }
 0xd80   : > { %v4821_v7 = vpack.c.bf16 %v6752_v32, %v6751_v10 }
 0xd81   : > { %7545 = vmatmul.mubr.msk.bf16.vlgmr.msra.gmra.mrb[144].mxu1 %vm1234_vm4, %v4201_v27  ;;  %v4202_v34 = vpack.c.bf16 %v4194_v29, %v4194_v29 }
 0xd82   : > { %7562 = vmatprep.mubr.msk.bf16.mxu1 %vm899_vm2, %v8449_v3 }
 0xd83   : > { %7551 = vmatmul.mubr.msk.bf16.vlgmr.msra.gmra.mrb[144].mxu0 %vm1234_vm4, %v4202_v34 }
 0xd84   : > { %7581 = vmatpush3.bf16.msra.mxu0 %v4748_v2  ;;  %7584 = vmatprep.mubr.msk.bf16.mxu0 %vm757_vm1, %v8475_v52  ;;  %v4892_v52 = vpack.c.bf16 %v6758_v17, %v6757_v50  ;;  %v6736_v2 = vld [vmem:[%s8353_s25 + $0x10] sm:$0xff] }
 0xd85   : > { %7582 = vmatprep.subr.bf16.mxu0 %v4749_v53  ;;  %v4654_v29 = vpack.c.bf16 %v6736_v2, %v6736_v2 }
 0xd88   : > { %7583 = vmatpush3.bf16.msra.mxu0 %v4749_v53  ;;  %v4668_v53 = vsel %vm1726_vm5, %v4654_v29, 0 }
 0xd89   : > { %7592 = vmatprep.subr.bf16.mxu0 %v4820_v25 }
 0xd8b   : > { %7585 = vmatmul.mubr.msk.bf16.vlgmr.msra.gmra.mrb[148].mxu0 %vm757_vm1, %v8483_v37 }
 0xd8c   : > { %7588 = vmatprep.mubr.msk.bf16.mxu0 %vm757_vm1, %v8490_v56  ;;  %7593 = vmatpush3.bf16.msra.mxu0 %v4820_v25 }
 0xd8d   : > { %7594 = vmatprep.subr.bf16.mxu0 %v4821_v7 }
 0xd90   : > { %7595 = vmatpush3.bf16.msra.mxu0 %v4821_v7 }
 0xd91   : > { %7604 = vmatprep.subr.bf16.mxu0 %v4892_v52 }
 0xd93   : > { %7589 = vmatmul.mubr.msk.bf16.gmra.mrb[152].mxu0 %vm757_vm1, %v8512_v13 }
 0xd94   : > { %7596 = vmatprep.mubr.msk.bf16.mxu0 %vm757_vm1, %v8546_v43 }
 0xd9b   : > { %7597 = vmatmul.mubr.msk.bf16.vlgmr.msra.gmra.mrb[156].mxu0 %vm757_vm1, %v8542_v40 }
 0xd9c   : > { %7600 = vmatprep.mubr.msk.bf16.mxu0 %vm757_vm1, %v8548_v44  ;;  %7605 = vmatpush3.bf16.msra.mxu0 %v4892_v52 }
 0xd9d   : > { %7606 = vmatprep.subr.bf16.mxu0 %v4893_v20 }
 0xda0   : > { %7607 = vmatpush3.bf16.msra.mxu0 %v4893_v20 }
 0xda1   : > { %7628 = vmatprep.subr.bf16.mxu0 %v8157_v55 }
 0xda3   : > { %7601 = vmatmul.mubr.msk.bf16.gmra.mrb[160].mxu0 %vm757_vm1, %v8544_v41 }
 0xda4   : > { %7608 = vmatprep.mubr.msk.bf16.mxu0 %vm757_vm1, %v8546_v43 }
 0xdab   : > { %7609 = vmatmul.mubr.msk.bf16.vlgmr.msra.gmra.mrb[164].mxu0 %vm757_vm1, %v8542_v40 }
 0xdac   : > { %7612 = vmatprep.mubr.msk.bf16.mxu0 %vm757_vm1, %v8548_v44 }
 0xdb3   : > { %7613 = vmatmul.mubr.msk.bf16.gmra.mrb[168].mxu0 %vm757_vm1, %v8544_v41 }
 0xdb4   : > { %7630 = vmatprep.mubr.msk.bf16.mxu0 %vm8158_vm3, %v8157_v55 }
 0xe3c   : > { %v4251_v37 = vpop.f32.mrb[132].mxu1 }
 0xe3d   : > { %v7510_v56 = vpop.f32.mrb[133].mxu1 }
 0xe3e   : > { %v4254_v13 = vpop.f32.mrb[134].mxu1  ;;  %v4297_v48 = vpop.f32.mrb[132].mxu0 }
 0xe3f   : > { %v4579_v0 = vpack.c.bf16 %v4297_v48, %v4251_v37  ;;  %v7511_v15 = vpop.f32.mrb[135].mxu1  ;;  %v7516_v22 = vpop.f32.mrb[133].mxu0 }
 0xe40   : > { %v4300_v43 = vpop.f32.mrb[134].mxu0 }
 0xe41   : > { %v7517_v47 = vpop.f32.mrb[135].mxu0  ;;  %7554 = vmatprep.subr.bf16.mxu1 %v4579_v0 }
 0xe42   : > { %7555 = vmatpush3.bf16.msra.mxu1 %v4579_v0 }
 0xe44   : > { %v4343_v40 = vpop.f32.mrb[136].mxu1 }
 0xe45   : > { %v7522_v38 = vpop.f32.mrb[137].mxu1 }
 0xe46   : > { %v4346_v44 = vpop.f32.mrb[138].mxu1  ;;  %v4389_v42 = vpop.f32.mrb[136].mxu0 }
 0xe47   : > { %v4580_v30 = vpack.c.bf16 %v4389_v42, %v4343_v40  ;;  %v7523_v41 = vpop.f32.mrb[139].mxu1  ;;  %v7528_v46 = vpop.f32.mrb[137].mxu0 }
 0xe48   : > { %v4392_v58 = vpop.f32.mrb[138].mxu0 }
 0xe49   : > { %v7529_v59 = vpop.f32.mrb[139].mxu0  ;;  %7556 = vmatprep.subr.bf16.mxu1 %v4580_v30 }
 0xe4a   : > { %7557 = vmatpush3.bf16.msra.mxu1 %v4580_v30 }
 0xe4c   : > { %v4435_v21 = vpop.f32.mrb[140].mxu1 }
 0xe4d   : > { %v7534_v45 = vpop.f32.mrb[141].mxu1 }
 0xe4e   : > { %v4438_v49 = vpop.f32.mrb[142].mxu1  ;;  %v4481_v54 = vpop.f32.mrb[140].mxu0 }
 0xe4f   : > { %v4581_v24 = vpack.c.bf16 %v4481_v54, %v4435_v21  ;;  %v7535_v63 = vpop.f32.mrb[143].mxu1  ;;  %v7540_v35 = vpop.f32.mrb[141].mxu0 }
 0xe50   : > { %v4484_v4 = vpop.f32.mrb[142].mxu0 }
 0xe51   : > { %v7541_v6 = vpop.f32.mrb[143].mxu0  ;;  %7558 = vmatprep.subr.bf16.mxu1 %v4581_v24 }
 0xe52   : > { %7559 = vmatpush3.bf16.msra.mxu1 %v4581_v24 }
 0xe54   : > { %v4527_v39 = vpop.f32.mrb[144].mxu1 }
 0xe55   : > { %v7546_v8 = vpop.f32.mrb[145].mxu1 }
 0xe56   : > { %v4530_v36 = vpop.f32.mrb[146].mxu1  ;;  %v4573_v1 = vpop.f32.mrb[144].mxu0 }
 0xe57   : > { %v4582_v28 = vpack.c.bf16 %v4573_v1, %v4527_v39  ;;  %v7547_v23 = vpop.f32.mrb[147].mxu1  ;;  %v7552_v57 = vpop.f32.mrb[145].mxu0 }
 0xe58   : > { %v4576_v27 = vpop.f32.mrb[146].mxu0 }
 0xe59   : > { %v7553_v34 = vpop.f32.mrb[147].mxu0  ;;  %7560 = vmatprep.subr.bf16.mxu1 %v4582_v28 }
 0xe5a   : > { %7561 = vmatpush3.bf16.msra.mxu1 %v4582_v28 }
 0xe5b   : > { %7808 = vmatprep.subr.msk.bf16.mxu1 %vm1726_vm5, %v4654_v29 }
 0xe5d   : > { %7563 = vmatmul.mubr.msk.bf16.vlgmr.msra.gmra.mrb[148].mxu1 %vm899_vm2, %v8518_v18 }
 0xe5e   : > { %v7586_v61 = vpop.f32.mrb[148].mxu0  ;;  %7566 = vmatprep.mubr.msk.bf16.mxu1 %vm899_vm2, %v8454_v5  ;;  %7571 = vmatpush3.bf16.msra.mxu1 %v4668_v53 }
 0xe5f   : > { %v9352_v11 = vpop.f32.mrb[149].mxu0  ;;  %7616 = vmatprep.subr.bf16.mxu1 %v8157_v55  ;;  %v4961_v48 = vpack.c.bf16 %v7586_v61, %v7586_v61 }
 0xe60   : > { %v9355_v25 = vpop.f32.mrb[150].mxu0  ;;  %v4959_v53 = vpack.c.bf16 %v9352_v11, %v9352_v11 }
 0xe61   : > { %v9357_v10 = vpop.f32.mrb[151].mxu0 }
 0xe65   : > { %7567 = vmatmul.mubr.msk.bf16.gmra.mrb[152].mxu1 %vm899_vm2, %v8520_v19 }
 0xe66   : > { %v7590_v32 = vpop.f32.mrb[152].mxu0 }
 0xe67   : > { %v4800_v7 = vpop.f32.mrb[153].mxu0  ;;  %v4965_v45 = vpack.c.bf16 %v7590_v32, %v7590_v32 }
 0xe68   : > { %v9361_v50 = vpop.f32.mrb[154].mxu0  ;;  %v4963_v42 = vpack.c.bf16 %v4800_v7, %v4800_v7 }
 0xe69   : > { %v9363_v17 = vpop.f32.mrb[155].mxu0 }
 0xe6e   : > { %v7598_v52 = vpop.f32.mrb[156].mxu0 }
 0xe6f   : > { %v4969_v16 = vpack.c.bf16 %v7598_v52, %v7598_v52  ;;  %v4856_v51 = vpop.f32.mrb[157].mxu0  ;;  %v4960_v52 = vpack.c.bf16 %v9357_v10, %v9357_v10 }
 0xe70   : > { %v9365_v20 = vpop.f32.mrb[158].mxu0  ;;  %v4967_v6 = vpack.c.bf16 %v4856_v51, %v4856_v51 }
 0xe71   : > { %v5071_v37 = vsel %vm1234_vm4, %v4969_v16, 0  ;;  %v4859_v56 = vpop.f32.mrb[159].mxu0  ;;  %v4970_v32 = vpack.c.bf16 %v9365_v20, %v9365_v20 }
 0xe72   : > { %7629 = vmatpush3.bf16.xpose.msra.mxu0 %v5071_v37  ;;  %v4979_v36 = vsel %vm1234_vm4, %v4967_v6, 0  ;;  %v4968_v34 = vpack.c.bf16 %v4859_v56, %v4859_v56  ;;  %v4962_v56 = vpack.c.bf16 %v9355_v25, %v9355_v25  ;;  %v4964_v25 = vpack.c.bf16 %v9363_v17, %v9363_v17 }
 0xe73   : > { %7640 = vmatprep.subr.bf16.mxu0 %v8157_v55  ;;  %v5117_v11 = vsel %vm1234_vm4, %v4970_v32, 0  ;;  %v4966_v17 = vpack.c.bf16 %v9361_v50, %v9361_v50 }
 0xe74   : > { %v5025_v61 = vsel %vm1234_vm4, %v4968_v34, 0 }
 0xe76   : > { %v7602_v13 = vpop.f32.mrb[160].mxu0 }
 0xe77   : > { %v4872_v0 = vpop.f32.mrb[161].mxu0  ;;  %v4973_v40 = vpack.c.bf16 %v7602_v13, %v7602_v13 }
 0xe78   : > { %v4971_v15 = vpack.c.bf16 %v4872_v0, %v4872_v0  ;;  %v9369_v22 = vpop.f32.mrb[162].mxu0 }
 0xe79   : > { %v9371_v43 = vpop.f32.mrb[163].mxu0  ;;  %7631 = vmatmul.mubr.msk.bf16.vlgmr.msra.gmra.mrb[172].mxu0 %vm1234_vm4, %v4961_v48  ;;  %v5255_v46 = vsel %vm1234_vm4, %v4973_v40, 0 }
 0xe7a   : > { %v5163_v47 = vsel %vm1234_vm4, %v4971_v15, 0  ;;  %7642 = vmatprep.mubr.msk.bf16.mxu0 %vm8158_vm3, %v8157_v55  ;;  %v4972_v20 = vpack.c.bf16 %v9371_v43, %v9371_v43  ;;  %v4974_v43 = vpack.c.bf16 %v9369_v22, %v9369_v22 }
 0xe7b   : > { %7641 = vmatpush3.bf16.xpose.msra.mxu0 %v5163_v47 }
 0xe7c   : > { %7652 = vmatprep.subr.bf16.mxu0 %v8157_v55  ;;  %v5209_v48 = vsel %vm1234_vm4, %v4972_v20, 0 }
 0xe7e   : > { %v9378_v38 = vpop.f32.mrb[164].mxu0 }
 0xe7f   : > { %v4928_v44 = vpop.f32.mrb[165].mxu0 }
 0xe80   : > { %v9380_v30 = vpop.f32.mrb[166].mxu0  ;;  %v5455_v58 = vpack.c.bf16 %v4928_v44, %v4928_v44  ;;  %v5301_v44 = vsel %vm1234_vm4, %v4974_v43, 0 }
 0xe81   : > { %v9382_v41 = vpop.f32.mrb[167].mxu0 }
 0xe82   : > { %7643 = vmatmul.mubr.msk.bf16.vlgmr.msra.gmra.mrb[176].mxu0 %vm1234_vm4, %v4963_v42  ;;  %v5467_v24 = vsel %vm1726_vm5, %v5455_v58, 0  ;;  %v5456_v22 = vpack.c.bf16 %v9382_v41, %v9382_v41 }
 0xe83   : > { %7653 = vmatpush3.bf16.xpose.msra.mxu0 %v5255_v46  ;;  %7654 = vmatprep.mubr.msk.bf16.mxu0 %vm8158_vm3, %v8157_v55 }
 0xe84   : > { %7664 = vmatprep.subr.bf16.mxu0 %v8157_v55  ;;  %v5513_v58 = vsel %vm1726_vm5, %v5456_v22, 0 }
 0xe86   : > { %v9389_v59 = vpop.f32.mrb[168].mxu0 }
 0xe87   : > { %v9391_v21 = vpop.f32.mrb[169].mxu0 }
 0xe88   : > { %v9393_v49 = vpop.f32.mrb[170].mxu0 }
 0xe89   : > { %v9395_v54 = vpop.f32.mrb[171].mxu0 }
 0xe8a   : > { %7655 = vmatmul.mubr.msk.bf16.vlgmr.msra.gmra.mrb[180].mxu0 %vm1234_vm4, %v4965_v45 }
 0xe8b   : > { %7665 = vmatpush3.bf16.msra.mxu0 %v5467_v24  ;;  %7666 = vmatprep.mubr.msk.bf16.mxu0 %vm8158_vm3, %v8157_v55 }
 0xe8c   : > { %7676 = vmatprep.subr.bf16.mxu0 %v8157_v55 }
 0xf30   : > { %v7564_v63 = vpop.f32.mrb[148].mxu1 }
 0xf31   : > { %v4617_v35 = vpop.f32.mrb[149].mxu1 }
 0xf32   : > { %v7565_v4 = vpop.f32.mrb[150].mxu1 }
 0xf33   : > { %v4651_v39 = vpack.c.bf16 %v7565_v4, %v7564_v63  ;;  %v4620_v2 = vpop.f32.mrb[151].mxu1 }
 0xf34   : > { %v4650_v8 = vpack.c.bf16 %v4620_v2, %v4617_v35 }
 0xf36   : > { %7572 = vmatprep.mubr.msk.bf16.mxu1 %vm1234_vm4, %v4650_v8 }
 0xf37   : > { %7573 = vmatmul.mubr.msk.bf16.vlgmr.msra.gmra.mrb[100].mxu1 %vm1234_vm4, %v4651_v39 }
 0xf38   : > { %7617 = vmatpush3.bf16.xpose.msra.mxu1 %v4979_v36  ;;  %v7568_v1 = vpop.f32.mrb[152].mxu1 }
 0xf39   : > { %v4633_v28 = vpop.f32.mrb[153].mxu1  ;;  %7622 = vmatprep.subr.bf16.mxu1 %v8157_v55 }
 0xf3a   : > { %v7569_v23 = vpop.f32.mrb[154].mxu1 }
 0xf3b   : > { %v4653_v57 = vpack.c.bf16 %v7569_v23, %v7568_v1  ;;  %v4636_v29 = vpop.f32.mrb[155].mxu1 }
 0xf3c   : > { %v4652_v27 = vpack.c.bf16 %v4636_v29, %v4633_v28 }
 0xf3e   : > { %7576 = vmatprep.mubr.msk.bf16.mxu1 %vm1234_vm4, %v4652_v27 }
 0xf3f   : > { %7577 = vmatmul.mubr.msk.bf16.gmra.mrb[104].mxu1 %vm1234_vm4, %v4653_v57 }
 0xf40   : > { %7618 = vmatprep.mubr.msk.bf16.mxu1 %vm8158_vm3, %v8157_v55 }
 0xf47   : > { %7619 = vmatmul.mubr.msk.bf16.vlgmr.msra.gmra.mrb[156].mxu1 %vm1234_vm4, %v4959_v53 }
 0xf48   : > { %7623 = vmatpush3.bf16.xpose.msra.mxu1 %v5025_v61  ;;  %7624 = vmatprep.mubr.msk.bf16.mxu1 %vm8158_vm3, %v8157_v55 }
 0xf49   : > { %7634 = vmatprep.subr.bf16.mxu1 %v8157_v55 }
 0xf4c   : > { %v5107_v7 = vpop.f32.mrb[172].mxu0 }
 0xf4d   : > { %v7632_v16 = vpop.f32.mrb[173].mxu0  ;;  %v5345_v24 = vmul.f32 0.35355338, %v5107_v7 }
 0xf4e   : > { %v5110_v51 = vpop.f32.mrb[174].mxu0 }
 0xf4f   : > { %7625 = vmatmul.mubr.msk.bf16.vlgmr.msra.gmra.mrb[160].mxu1 %vm1234_vm4, %v4960_v52  ;;  %v7633_v37 = vpop.f32.mrb[175].mxu0  ;;  %v5353_v2 = vadd.f32 %v9197_v9, %v5345_v24 }
 0xf50   : > { %7635 = vmatpush3.bf16.xpose.msra.mxu1 %v5117_v11  ;;  %7636 = vmatprep.mubr.msk.bf16.mxu1 %vm8158_vm3, %v8157_v55 }
 0xf51   : > { %7646 = vmatprep.subr.bf16.mxu1 %v8157_v55  ;;  %v5365_v23 = vsel %vm1234_vm4, %v5353_v2, -inf }
 0xf55   : > { %v5199_v10 = vpop.f32.mrb[176].mxu0 }
 0xf56   : > { %v7644_v13 = vpop.f32.mrb[177].mxu0  ;;  %v5347_v39 = vmul.f32 0.35355338, %v5199_v10 }
 0xf57   : > { %7637 = vmatmul.mubr.msk.bf16.vlgmr.msra.gmra.mrb[164].mxu1 %vm1234_vm4, %v4962_v56  ;;  %v5202_v0 = vpop.f32.mrb[178].mxu0 }
 0xf58   : > { %7647 = vmatpush3.bf16.xpose.msra.mxu1 %v5209_v48  ;;  %v7645_v15 = vpop.f32.mrb[179].mxu0  ;;  %7648 = vmatprep.mubr.msk.bf16.mxu1 %vm8158_vm3, %v8157_v55  ;;  %v5355_v57 = vadd.f32 %v9211_v26, %v5347_v39 }
 0xf59   : > { %7658 = vmatprep.subr.bf16.mxu1 %v8157_v55 }
 0xf5a   : > { %v5371_v53 = vsel %vm1234_vm4, %v5355_v57, -inf }
 0xf5d   : > { %v5291_v47 = vpop.f32.mrb[180].mxu0 }
 0xf5e   : > { %v7656_v40 = vpop.f32.mrb[181].mxu0  ;;  %v5349_v36 = vmul.f32 0.35355338, %v5291_v47 }
 0xf5f   : > { %7649 = vmatmul.mubr.msk.bf16.vlgmr.msra.gmra.mrb[168].mxu1 %vm1234_vm4, %v4964_v25  ;;  %v5294_v42 = vpop.f32.mrb[182].mxu0 }
 0xf60   : > { %7659 = vmatpush3.bf16.xpose.msra.mxu1 %v5301_v44  ;;  %v7657_v46 = vpop.f32.mrb[183].mxu0  ;;  %7660 = vmatprep.mubr.msk.bf16.mxu1 %vm8158_vm3, %v8157_v55  ;;  %v5357_v9 = vadd.f32 %v9225_v60, %v5349_v36 }
 0xf61   : > { %7670 = vmatprep.subr.bf16.mxu1 %v8157_v55 }
 0xf62   : > { %v5377_v52 = vsel %vm1234_vm4, %v5357_v9, -inf }
 0xf67   : > { %7661 = vmatmul.mubr.msk.bf16.vlgmr.msra.gmra.mrb[172].mxu1 %vm1234_vm4, %v4966_v17 }
 0xf68   : > { %7671 = vmatpush3.bf16.msra.mxu1 %v5513_v58  ;;  %7672 = vmatprep.mubr.msk.bf16.mxu1 %vm8158_vm3, %v8157_v55 }
 0xf69   : > { %7682 = vmatprep.subr.bf16.mxu1 %v8157_v55 }
0x101a   : > { %v5015_v45 = vpop.f32.mrb[156].mxu1 }
0x101b   : > { %v5343_v63 = vmul.f32 0.35355338, %v5015_v45  ;;  %v7620_v35 = vpop.f32.mrb[157].mxu1 }
0x101c   : > { %v5018_v4 = vpop.f32.mrb[158].mxu1 }
0x101d   : > { %v7621_v6 = vpop.f32.mrb[159].mxu1  ;;  %v5351_v41 = vadd.f32 %v9177_v62, %v5343_v63 }
0x101f   : > { %v5359_v50 = vsel %vm1234_vm4, %v5351_v41, -inf }
0x1020   : > { %5360 = vmax.xlane.f32.xlu0 %v5359_v50 }
0x1022   : > { %v5061_v8 = vpop.f32.mrb[160].mxu1 }
0x1023   : > { %v5344_v1 = vmul.f32 0.35355338, %v5061_v8  ;;  %v7626_v28 = vpop.f32.mrb[161].mxu1 }
0x1024   : > { %v5064_v29 = vpop.f32.mrb[162].mxu1  ;;  %5366 = vmax.xlane.f32.xlu0 %v5365_v23 }
0x1025   : > { %v7627_v27 = vpop.f32.mrb[163].mxu1  ;;  %v5352_v34 = vadd.f32 %v9187_v31, %v5344_v1 }
0x1027   : > { %v5362_v62 = vsel %vm1234_vm4, %v5352_v34, -inf }
0x1028   : > { %5363 = vmax.xlane.f32.xlu1 %v5362_v62  ;;  %5372 = vmax.xlane.f32.xlu0 %v5371_v53 }
0x102a   : > { %v5153_v61 = vpop.f32.mrb[164].mxu1 }
0x102b   : > { %v5346_v32 = vmul.f32 0.35355338, %v5153_v61  ;;  %v7638_v7 = vpop.f32.mrb[165].mxu1 }
0x102c   : > { %v5156_v16 = vpop.f32.mrb[166].mxu1  ;;  %5378 = vmax.xlane.f32.xlu0 %v5377_v52 }
0x102d   : > { %v7639_v26 = vpop.f32.mrb[167].mxu1  ;;  %v5354_v51 = vadd.f32 %v9204_v14, %v5346_v32 }
0x102f   : > { %v5368_v31 = vsel %vm1234_vm4, %v5354_v51, -inf }
0x1030   : > { %5369 = vmax.xlane.f32.xlu1 %v5368_v31 }
0x1032   : > { %v5245_v11 = vpop.f32.mrb[168].mxu1 }
0x1033   : > { %v5348_v37 = vmul.f32 0.35355338, %v5245_v11  ;;  %v7650_v20 = vpop.f32.mrb[169].mxu1 }
0x1034   : > { %v5248_v56 = vpop.f32.mrb[170].mxu1 }
0x1035   : > { %v7651_v60 = vpop.f32.mrb[171].mxu1  ;;  %v5356_v10 = vadd.f32 %v9218_v33, %v5348_v37 }
0x1037   : > { %v5374_v13 = vsel %vm1234_vm4, %v5356_v10, -inf }
0x1038   : > { %5375 = vmax.xlane.f32.xlu1 %v5374_v13  ;;  %v5457_v13 = vpack.c.bf16 %v9378_v38, %v9378_v38  ;;  %v5458_v38 = vpack.c.bf16 %v9380_v30, %v9380_v30 }
0x103a   : > { %v5337_v48 = vpop.f32.mrb[172].mxu1 }
0x103b   : > { %v5350_v0 = vmul.f32 0.35355338, %v5337_v48  ;;  %v7662_v15 = vpop.f32.mrb[173].mxu1 }
0x103c   : > { %v5340_v43 = vpop.f32.mrb[174].mxu1 }
0x103d   : > { %v7663_v25 = vpop.f32.mrb[175].mxu1  ;;  %v5358_v14 = vadd.f32 %v9232_v12, %v5350_v0  ;;  %v5559_v43 = vsel %vm1726_vm5, %v5457_v13, 0 }
0x103f   : > { %v5380_v47 = vsel %vm1234_vm4, %v5358_v14, -inf }
0x1040   : > { %5381 = vmax.xlane.f32.xlu1 %v5380_v47 }
0x10ad   : > { %v5361_v40 = vpop.xlane.xlu0 %5360 }
0x10ae   : > { %v5383_v44 = vsub.f32 %v5351_v41, %v5361_v40 }
0x10b0   : > { %v5391_v42 = vmul.f32 1.442695, %v5383_v44  ;;  %v5459_v44 = vpack.c.bf16 %v9391_v21, %v9391_v21 }
0x10b1   : > { %v5367_v46 = vpop.xlane.xlu0 %5366 }
0x10b2   : > { %7997 = vpow2.f32 %v5391_v42  ;;  %v5385_v22 = vsub.f32 %v5353_v2, %v5367_v46 }
0x10b4   : > { %v5395_v33 = vmul.f32 1.442695, %v5385_v22 }
0x10b5   : > { %v5364_v17 = vpop.xlane.xlu1 %5363  ;;  %v5373_v58 = vpop.xlane.xlu0 %5372 }
0x10b6   : > { %7999 = vpow2.f32 %v5395_v33  ;;  %v5384_v45 = vsub.f32 %v5352_v34, %v5364_v17  ;;  %v5387_v24 = vsub.f32 %v5355_v57, %v5373_v58  ;;  %v5605_v17 = vsel %vm1726_vm5, %v5458_v38, 0 }
0x10b7   : > { %v5651_v58 = vsel %vm1726_vm5, %v5459_v44, 0 }
0x10b8   : > { %v5393_v63 = vmul.f32 1.442695, %v5384_v45  ;;  %v5399_v35 = vmul.f32 1.442695, %v5387_v24  ;;  %v5461_v24 = vpack.c.bf16 %v9389_v59, %v9389_v59 }
0x10b9   : > { %v5379_v4 = vpop.xlane.xlu0 %5378 }
0x10ba   : > { %8001 = vpow2.f32 %v5393_v63  ;;  %v5389_v12 = vsub.f32 %v5357_v9, %v5379_v4  ;;  %v5460_v63 = vpack.c.bf16 %v9395_v54, %v9395_v54 }
0x10bb   : > { %8003 = vpow2.f32 %v5399_v35 }
0x10bc   : > { %v7998_v6 = vpop.eup %7997  ;;  %v5403_v39 = vmul.f32 1.442695, %v5389_v12 }
0x10bd   : > { %v5370_v50 = vpop.xlane.xlu1 %5369  ;;  %v5407_v41 = vsel %vm1234_vm4, %v7998_v6, 0.0 }
0x10be   : > { %8005 = vpow2.f32 %v5403_v39  ;;  %v5386_v8 = vsub.f32 %v5354_v51, %v5370_v50  ;;  %5408 = vadd.xlane.f32.xlu0 %v5407_v41  ;;  %v5743_v39 = vsel %vm1726_vm5, %v5461_v24, 0  ;;  %v5697_v50 = vsel %vm1726_vm5, %v5460_v63, 0 }
0x10c0   : > { %v8000_v2 = vpop.eup %7999  ;;  %v5397_v36 = vmul.f32 1.442695, %v5386_v8  ;;  %v5462_v8 = vpack.c.bf16 %v9393_v49, %v9393_v49 }
0x10c1   : > { %v5413_v1 = vsel %vm1234_vm4, %v8000_v2, 0.0 }
0x10c2   : > { %8007 = vpow2.f32 %v5397_v36  ;;  %5414 = vadd.xlane.f32.xlu0 %v5413_v1 }
0x10c4   : > { %v8002_v28 = vpop.eup %8001 }
0x10c5   : > { %v9471_v23 = vpop.eup %8003  ;;  %v5376_v57 = vpop.xlane.xlu1 %5375  ;;  %v5410_v29 = vsel %vm1234_vm4, %v8002_v28, 0.0 }
0x10c6   : > { %v5388_v27 = vsub.f32 %v5356_v10, %v5376_v57  ;;  %5411 = vadd.xlane.f32.xlu1 %v5410_v29  ;;  %v5419_v34 = vsel %vm1234_vm4, %v9471_v23, 0.0 }
0x10c7   : > { %5420 = vadd.xlane.f32.xlu0 %v5419_v34 }
0x10c8   : > { %v9476_v62 = vpop.eup %8005  ;;  %v5401_v53 = vmul.f32 1.442695, %v5388_v27 }
0x10c9   : > { %v5425_v9 = vsel %vm1234_vm4, %v9476_v62, 0.0 }
0x10ca   : > { %8009 = vpow2.f32 %v5401_v53 }
0x10cb   : > { %5426 = vadd.xlane.f32.xlu0 %v5425_v9 }
0x10cc   : > { %v8008_v61 = vpop.eup %8007 }
0x10cd   : > { %v5382_v32 = vpop.xlane.xlu1 %5381  ;;  %v5416_v7 = vsel %vm1234_vm4, %v8008_v61, 0.0 }
0x10ce   : > { %v5390_v52 = vsub.f32 %v5358_v14, %v5382_v32  ;;  %5417 = vadd.xlane.f32.xlu1 %v5416_v7 }
0x10d0   : > { %v5405_v16 = vmul.f32 1.442695, %v5390_v52 }
0x10d2   : > { %8011 = vpow2.f32 %v5405_v16 }
0x10d4   : > { %v9481_v26 = vpop.eup %8009 }
0x10d5   : > { %v5422_v51 = vsel %vm1234_vm4, %v9481_v26, 0.0 }
0x10d6   : > { %5423 = vadd.xlane.f32.xlu1 %v5422_v51 }
0x10dc   : > { %v9485_v31 = vpop.eup %8011 }
0x10dd   : > { %v5428_v11 = vsel %vm1234_vm4, %v9485_v31, 0.0 }
0x10de   : > { %5429 = vadd.xlane.f32.xlu1 %v5428_v11 }
0x114b   : > { %v5409_v37 = vpop.xlane.xlu0 %5408 }
0x114c   : > { %8013 = vrcp.f32 %v5409_v37 }
0x114f   : > { %v5415_v20 = vpop.xlane.xlu0 %5414 }
0x1150   : > { %8015 = vrcp.f32 %v5415_v20 }
0x1153   : > { %v5412_v56 = vpop.xlane.xlu1 %5411 }
0x1154   : > { %8017 = vrcp.f32 %v5412_v56  ;;  %v5421_v60 = vpop.xlane.xlu0 %5420 }
0x1155   : > { %8019 = vrcp.f32 %v5421_v60 }
0x1156   : > { %v8014_v10 = vpop.eup %8013 }
0x1157   : > { %v5439_v48 = vmul.f32 %v8014_v10, %v7998_v6 }
0x1158   : > { %v5427_v47 = vpop.xlane.xlu0 %5426 }
0x1159   : > { %v5447_v0 = vpack.c.bf16 %v5439_v48, %v5439_v48 }
0x115a   : > { %v8016_v15 = vpop.eup %8015 }
0x115b   : > { %v5418_v25 = vpop.xlane.xlu1 %5417  ;;  %7667 = vmatmul.mubr.msk.bf16.vlgmr.msra.gmra.mrb[184].mxu0 %vm1234_vm4, %v5447_v0  ;;  %v5441_v14 = vmul.f32 %v8016_v15, %v8000_v2 }
0x115c   : > { %8021 = vrcp.f32 %v5418_v25  ;;  %7677 = vmatpush3.bf16.msra.mxu0 %v5559_v43  ;;  %7678 = vmatprep.mubr.msk.bf16.mxu0 %vm8158_vm3, %v8157_v55 }
0x115d   : > { %7688 = vmatprep.subr.bf16.mxu0 %v8157_v55  ;;  %8023 = vrcp.f32 %v5427_v47  ;;  %v5449_v22 = vpack.c.bf16 %v5441_v14, %v5441_v14 }
0x115e   : > { %v8018_v40 = vpop.eup %8017 }
0x115f   : > { %v5440_v42 = vmul.f32 %v8018_v40, %v8002_v28  ;;  %v8020_v33 = vpop.eup %8019  ;;  %v5789_v28 = vsel %vm1726_vm5, %v5462_v8, 0 }
0x1160   : > { %v5443_v30 = vmul.f32 %v8020_v33, %v9471_v23  ;;  %v6785_v33 = vld [vmem:[%s8353_s25 + $0x18] sm:$0xff]  ;;  %s9849_s25 = scalar_lea.vmem %s9787_s9, %s8318_s16  ;;  %s9850_s16 = sld [smem:[#allocation9_spill]] }
0x1161   : > { %v5448_v46 = vpack.c.bf16 %v5440_v42, %v5440_v42 }
0x1162   : > { %v5451_v12 = vpack.c.bf16 %v5443_v30, %v5443_v30 }
0x1163   : > { %v5424_v45 = vpop.xlane.xlu1 %5423  ;;  %7673 = vmatmul.mubr.msk.bf16.vlgmr.msra.gmra.mrb[176].mxu1 %vm1234_vm4, %v5448_v46  ;;  %7679 = vmatmul.mubr.msk.bf16.vlgmr.msra.gmra.mrb[188].mxu0 %vm1234_vm4, %v5449_v22 }
0x1164   : > { %8025 = vrcp.f32 %v5424_v45  ;;  %7683 = vmatpush3.bf16.msra.mxu1 %v5605_v17  ;;  %7689 = vmatpush3.bf16.msra.mxu0 %v5651_v58  ;;  %v5906_v17 = vpack.c.bf16 %v6785_v33, %v6785_v33 }
0x1165   : > { %7684 = vmatprep.mubr.msk.bf16.mxu1 %vm8158_vm3, %v8157_v55  ;;  %7690 = vmatprep.mubr.msk.bf16.mxu0 %vm8158_vm3, %v8157_v55 }
0x1166   : > { %v8022_v21 = vpop.eup %8021  ;;  %7694 = vmatprep.subr.bf16.mxu1 %v8157_v55  ;;  %7700 = vmatprep.subr.bf16.mxu0 %v8157_v55  ;;  %v5920_v58 = vsel %vm1726_vm5, %v5906_v17, 0  ;;  %p6798_p1 = scmp.ne.s32.totalorder %s9850_s16, 1 }
0x1167   : > { %v5442_v35 = vmul.f32 %v8022_v21, %v8008_v61  ;;  %v8024_v6 = vpop.eup %8023 }
0x1168   : > { %v5445_v59 = vmul.f32 %v8024_v6, %v9476_v62 }
0x1169   : > { %v5450_v4 = vpack.c.bf16 %v5442_v35, %v5442_v35 }
0x116a   : > { %v5453_v1 = vpack.c.bf16 %v5445_v59, %v5445_v59 }
0x116b   : > { %v5430_v41 = vpop.xlane.xlu1 %5429  ;;  %7685 = vmatmul.mubr.msk.bf16.vlgmr.msra.gmra.mrb[180].mxu1 %vm1234_vm4, %v5450_v4  ;;  %7691 = vmatmul.mubr.msk.bf16.vlgmr.msra.gmra.mrb[192].mxu0 %vm1234_vm4, %v5451_v12 }
0x116c   : > { %8027 = vrcp.f32 %v5430_v41  ;;  %7695 = vmatpush3.bf16.msra.mxu1 %v5697_v50  ;;  %7701 = vmatpush3.bf16.msra.mxu0 %v5743_v39  ;;  %v8053_v41 = vld [vmem:[#allocation2] sm:$0xff] }
0x116d   : > { %7696 = vmatprep.mubr.msk.bf16.mxu1 %vm8158_vm3, %v8157_v55  ;;  %7702 = vmatprep.mubr.msk.bf16.mxu0 %vm8158_vm3, %v8157_v55 }
0x116e   : > { %v8026_v54 = vpop.eup %8025  ;;  %7706 = vmatprep.subr.bf16.mxu1 %v8157_v55 }
0x116f   : > { %v5444_v2 = vmul.f32 %v8026_v54, %v9481_v26 }
0x1171   : > { %v5452_v36 = vpack.c.bf16 %v5444_v2, %v5444_v2  ;;  %v8054_v2 = vld [vmem:[#allocation2 + $0x10] sm:$0xff] }
0x1173   : > { %7697 = vmatmul.mubr.msk.bf16.vlgmr.msra.gmra.mrb[184].mxu1 %vm1234_vm4, %v5452_v36  ;;  %7703 = vmatmul.mubr.msk.bf16.vlgmr.msra.gmra.mrb[196].mxu0 %vm1234_vm4, %v5453_v1  ;;  %v8055_v1 = vld [vmem:[#allocation2 + $0x8] sm:$0xff] }
0x1174   : > { %7707 = vmatpush3.bf16.msra.mxu1 %v5789_v28  ;;  %7708 = vmatprep.mubr.msk.bf16.mxu1 %vm8158_vm3, %v8157_v55 }
0x1175   : > { %7720 = vmatprep.mubr.msk.bf16.mxu0 %vm899_vm2, %v8449_v3  ;;  %7809 = vmatprep.subr.msk.bf16.mxu1 %vm1726_vm5, %v5906_v17 }
0x1176   : > { %v8028_v23 = vpop.eup %8027 }
0x1177   : > { %v5446_v49 = vmul.f32 %v8028_v23, %v9485_v31 }
0x1179   : > { %v5454_v57 = vpack.c.bf16 %v5446_v49, %v5446_v49  ;;  %v8056_v49 = vld [vmem:[#allocation2 + $0x18] sm:$0xff] }
0x117b   : > { %7709 = vmatmul.mubr.msk.bf16.vlgmr.msra.gmra.mrb[188].mxu1 %vm1234_vm4, %v5454_v57 }
0x117c   : > { %7729 = vmatpush3.bf16.msra.mxu1 %v5920_v58 }
0x122e   : > { %v5503_v29 = vpop.f32.mrb[184].mxu0 }
0x122f   : > { %v7668_v27 = vpop.f32.mrb[185].mxu0 }
0x1230   : > { %v5506_v34 = vpop.f32.mrb[186].mxu0 }
0x1231   : > { %v7669_v62 = vpop.f32.mrb[187].mxu0 }
0x1236   : > { %v5549_v53 = vpop.f32.mrb[176].mxu1  ;;  %v5595_v9 = vpop.f32.mrb[188].mxu0 }
0x1237   : > { %v5831_v61 = vpack.c.bf16 %v5549_v53, %v5503_v29  ;;  %v7674_v32 = vpop.f32.mrb[177].mxu1  ;;  %v7680_v7 = vpop.f32.mrb[189].mxu0  ;;  %v8057_v53 = vld [vmem:[#allocation2 + $0x20] sm:$0xff] }
0x1238   : > { %v5552_v52 = vpop.f32.mrb[178].mxu1  ;;  %v5598_v55 = vpop.f32.mrb[190].mxu0 }
0x1239   : > { %v7675_v16 = vpop.f32.mrb[179].mxu1  ;;  %v7681_v26 = vpop.f32.mrb[191].mxu0  ;;  %7712 = vmatprep.subr.bf16.mxu0 %v5831_v61  ;;  %v8058_v52 = vld [vmem:[#allocation2 + $0x30] sm:$0xff] }
0x123a   : > { %7713 = vmatpush3.bf16.msra.mxu0 %v5831_v61  ;;  %v8059_v16 = vld [vmem:[#allocation2 + $0x28] sm:$0xff] }
0x123e   : > { %v5641_v3 = vpop.f32.mrb[180].mxu1  ;;  %v5687_v51 = vpop.f32.mrb[192].mxu0 }
0x123f   : > { %v5832_v31 = vpack.c.bf16 %v5641_v3, %v5595_v9  ;;  %v7686_v11 = vpop.f32.mrb[181].mxu1  ;;  %v7692_v37 = vpop.f32.mrb[193].mxu0 }
0x1240   : > { %v5644_v20 = vpop.f32.mrb[182].mxu1  ;;  %v5690_v56 = vpop.f32.mrb[194].mxu0 }
0x1241   : > { %v7687_v60 = vpop.f32.mrb[183].mxu1  ;;  %v7693_v10 = vpop.f32.mrb[195].mxu0  ;;  %7714 = vmatprep.subr.bf16.mxu0 %v5832_v31 }
0x1242   : > { %7715 = vmatpush3.bf16.msra.mxu0 %v5832_v31 }
0x1246   : > { %v5733_v13 = vpop.f32.mrb[184].mxu1  ;;  %v5779_v48 = vpop.f32.mrb[196].mxu0 }
0x1247   : > { %v5833_v0 = vpack.c.bf16 %v5733_v13, %v5687_v51  ;;  %v7698_v15 = vpop.f32.mrb[185].mxu1  ;;  %v7704_v43 = vpop.f32.mrb[197].mxu0  ;;  %v8060_v51 = vld [vmem:[#allocation2 + $0x38] sm:$0xff] }
0x1248   : > { %v5736_v25 = vpop.f32.mrb[186].mxu1  ;;  %v5782_v14 = vpop.f32.mrb[198].mxu0 }
0x1249   : > { %v7699_v47 = vpop.f32.mrb[187].mxu1  ;;  %v7705_v40 = vpop.f32.mrb[199].mxu0  ;;  %7716 = vmatprep.subr.bf16.mxu0 %v5833_v0 }
0x124a   : > { %7717 = vmatpush3.bf16.msra.mxu0 %v5833_v0 }
0x124e   : > { %v5825_v38 = vpop.f32.mrb[188].mxu1 }
0x124f   : > { %v5834_v44 = vpack.c.bf16 %v5825_v38, %v5779_v48  ;;  %v7710_v42 = vpop.f32.mrb[189].mxu1 }
0x1250   : > { %v5828_v46 = vpop.f32.mrb[190].mxu1 }
0x1251   : > { %v7711_v22 = vpop.f32.mrb[191].mxu1  ;;  %7718 = vmatprep.subr.bf16.mxu0 %v5834_v44 }
0x1252   : > { %7719 = vmatpush3.bf16.msra.mxu0 %v5834_v44 }
0x1255   : > { %7721 = vmatmul.mubr.msk.bf16.vlgmr.msra.gmra.mrb[200].mxu0 %vm899_vm2, %v8518_v18 }
0x1256   : > { %7724 = vmatprep.mubr.msk.bf16.mxu0 %vm899_vm2, %v8454_v5 }
0x125d   : > { %7725 = vmatmul.mubr.msk.bf16.gmra.mrb[204].mxu0 %vm899_vm2, %v8520_v19 }
0x1328   : > { %v7722_v45 = vpop.f32.mrb[200].mxu0 }
0x1329   : > { %v5869_v30 = vpop.f32.mrb[201].mxu0 }
0x132a   : > { %v7723_v21 = vpop.f32.mrb[202].mxu0 }
0x132b   : > { %v5903_v24 = vpack.c.bf16 %v7723_v21, %v7722_v45  ;;  %v5872_v63 = vpop.f32.mrb[203].mxu0 }
0x132c   : > { %v5902_v35 = vpack.c.bf16 %v5872_v63, %v5869_v30 }
0x132e   : > { %7730 = vmatprep.mubr.msk.bf16.mxu1 %vm1234_vm4, %v5902_v35 }
0x132f   : > { %7731 = vmatmul.mubr.msk.bf16.vlgmr.msra.gmra.mrb[100].mxu1 %vm1234_vm4, %v5903_v24 }
0x1330   : > { %v7726_v5 = vpop.f32.mrb[204].mxu0 }
0x1331   : > { %v5885_v18 = vpop.f32.mrb[205].mxu0 }
0x1332   : > { %v7727_v19 = vpop.f32.mrb[206].mxu0 }
0x1333   : > { %v5905_v4 = vpack.c.bf16 %v7727_v19, %v7726_v5  ;;  %v5888_v12 = vpop.f32.mrb[207].mxu0 }
0x1334   : > { %v5904_v6 = vpack.c.bf16 %v5888_v12, %v5885_v18 }
0x1336   : > { %7734 = vmatprep.mubr.msk.bf16.mxu1 %vm1234_vm4, %v5904_v6 }
0x1337   : > { %7735 = vmatmul.mubr.msk.bf16.gmra.mrb[104].mxu1 %vm1234_vm4, %v5905_v4 }
0x1402   : > { %v7732_v39 = vpop.f32.mrb[100].mxu1 }
0x1403   : > { %v5956_v50 = vpop.f32.mrb[101].mxu1  ;;  %v9552_v36 = vadd.f32 %v8054_v2, %v7732_v39 }
0x1404   : > { %v9550_v59 = vadd.f32 %v8053_v41, %v5956_v50  ;;  %v7733_v54 = vpop.f32.mrb[102].mxu1 }
0x1405   : > { %v5959_v8 = vpop.f32.mrb[103].mxu1  ;;  %v9558_v57 = vadd.f32 %v8056_v49, %v7733_v54  ;;  %v6011_v34 = vsel %vm757_vm1, %v9552_v36, 0.0  ;;  %v6137_v49 = vld [vmem:[%s8366_s17] sm:$0xff] }
0x1406   : > { %v9554_v28 = vadd.f32 %v8055_v1, %v5959_v8  ;;  %v6005_v23 = vsel %vm757_vm1, %v9550_v59, 0.0 }
0x1407   : > { %6006 = vadd.xlane.f32.xlu0 %v6005_v23  ;;  %v6014_v32 = vsel %vm757_vm1, %v9558_v57, 0.0 }
0x1408   : > { %v6008_v29 = vsel %vm757_vm1, %v9554_v28, 0.0 }
0x1409   : > { %6009 = vadd.xlane.f32.xlu1 %v6008_v29  ;;  %v6138_v29 = vld [vmem:[%s8366_s17 + $0x8] sm:$0xff] }
0x140a   : > { %v7736_v27 = vpop.f32.mrb[104].mxu1 }
0x140b   : > { %6012 = vadd.xlane.f32.xlu0 %v6011_v34  ;;  %v5972_v62 = vpop.f32.mrb[105].mxu1  ;;  %v9568_v55 = vadd.f32 %v8058_v52, %v7736_v27  ;;  %v6145_v27 = vpack.c.bf16 %v6138_v29, %v6137_v49  ;;  %v6139_v34 = vld [vmem:[%s8366_s17 + $0x10] sm:$0xff] }
0x140c   : > { %v9564_v9 = vadd.f32 %v8057_v53, %v5972_v62  ;;  %v7737_v61 = vpop.f32.mrb[106].mxu1  ;;  %v6140_v62 = vld [vmem:[%s8366_s17 + $0x18] sm:$0xff] }
0x140d   : > { %6015 = vadd.xlane.f32.xlu1 %v6014_v32  ;;  %v5975_v7 = vpop.f32.mrb[107].mxu1  ;;  %v9574_v31 = vadd.f32 %v8060_v51, %v7737_v61  ;;  %v6023_v37 = vsel %vm757_vm1, %v9568_v55, 0.0  ;;  %7738 = vmatprep.subr.bf16.mxu1 %v6145_v27  ;;  %v6146_v53 = vpack.c.bf16 %v6140_v62, %v6139_v34  ;;  %v6239_v61 = vld [vmem:[%s8375_s8] sm:$0xff]  ;;  %v6240_v32 = vld [vmem:[%s8375_s8 + $0x8] sm:$0xff] }
0x140e   : > { %v9570_v26 = vadd.f32 %v8059_v16, %v5975_v7  ;;  %v6017_v3 = vsel %vm757_vm1, %v9564_v9, 0.0  ;;  %7739 = vmatpush3.bf16.msra.mxu1 %v6145_v27  ;;  %v6241_v7 = vld [vmem:[%s8375_s8 + $0x10] sm:$0xff]  ;;  %v6259_v52 = vpack.c.bf16 %v6240_v32, %v6239_v61  ;;  %v6242_v16 = vld [vmem:[%s8375_s8 + $0x18] sm:$0xff]  ;;  %v6243_v51 = vld [vmem:[%s8375_s8 + $0x20] sm:$0xff] }
0x140f   : > { %6018 = vadd.xlane.f32.xlu0 %v6017_v3  ;;  %v6026_v20 = vsel %vm757_vm1, %v9574_v31, 0.0  ;;  %7740 = vmatprep.subr.bf16.mxu1 %v6146_v53  ;;  %v6260_v3 = vpack.c.bf16 %v6242_v16, %v6241_v7  ;;  %v6791_v32 = vld [vmem:[%s692_s21] ss:$0 sm:$0xff] }
0x1410   : > { %v6020_v11 = vsel %vm757_vm1, %v9570_v26, 0.0  ;;  %7750 = vmatprep.subr.bf16.mxu0 %v6259_v52 }
0x1411   : > { %6021 = vadd.xlane.f32.xlu1 %v6020_v11  ;;  %v6244_v11 = vld [vmem:[%s8375_s8 + $0x28] sm:$0xff]  ;;  %7751 = vmatpush3.bf16.msra.mxu0 %v6259_v52 }
0x1412   : > { %7741 = vmatpush3.bf16.msra.mxu1 %v6146_v53  ;;  %7752 = vmatprep.subr.bf16.mxu0 %v6260_v3 }
0x1413   : > { %6024 = vadd.xlane.f32.xlu0 %v6023_v37  ;;  %v6261_v37 = vpack.c.bf16 %v6244_v11, %v6243_v51 }
0x1415   : > { %6027 = vadd.xlane.f32.xlu1 %v6026_v20  ;;  %v6245_v20 = vld [vmem:[%s8375_s8 + $0x30] sm:$0xff]  ;;  %7753 = vmatpush3.bf16.msra.mxu0 %v6260_v3 }
0x1416   : > { %7754 = vmatprep.subr.bf16.mxu0 %v6261_v37 }
0x1419   : > { %7755 = vmatpush3.bf16.msra.mxu0 %v6261_v37 }
0x1494   : > { %v6007_v56 = vpop.xlane.xlu0 %6006 }
0x1495   : > { %v6029_v60 = vmul.f32 0.03125, %v6007_v56  ;;  %v6246_v56 = vld [vmem:[%s8375_s8 + $0x38] sm:$0xff] }
0x1496   : > { %v6010_v10 = vpop.xlane.xlu1 %6009 }
0x1497   : > { %v9583_v13 = vsub.f32 %v9550_v59, %v6029_v60  ;;  %v6030_v48 = vmul.f32 0.03125, %v6010_v10  ;;  %v6262_v60 = vpack.c.bf16 %v6246_v56, %v6245_v20  ;;  %v6247_v10 = vld [vmem:[%s8375_s8 + $0x40] sm:$0xff] }
0x1498   : > { %v6013_v0 = vpop.xlane.xlu0 %6012 }
0x1499   : > { %v9586_v15 = vsub.f32 %v9554_v28, %v6030_v48  ;;  %v6031_v43 = vmul.f32 0.03125, %v6013_v0  ;;  %v6045_v25 = vmul.f32 %v9583_v13, %v9583_v13  ;;  %v6248_v48 = vld [vmem:[%s8375_s8 + $0x48] sm:$0xff]  ;;  %7756 = vmatprep.subr.bf16.mxu0 %v6262_v60 }
0x149a   : > { %v6016_v14 = vpop.xlane.xlu1 %6015  ;;  %v6263_v0 = vpack.c.bf16 %v6248_v48, %v6247_v10  ;;  %7757 = vmatpush3.bf16.msra.mxu0 %v6262_v60 }
0x149b   : > { %v9591_v47 = vsub.f32 %v9552_v36, %v6031_v43  ;;  %v6032_v40 = vmul.f32 0.03125, %v6016_v14  ;;  %v6053_v38 = vsel %vm757_vm1, %v6045_v25, 0.0  ;;  %v6046_v44 = vmul.f32 %v9586_v15, %v9586_v15  ;;  %v6249_v43 = vld [vmem:[%s8375_s8 + $0x50] sm:$0xff]  ;;  %v6250_v25 = vld [vmem:[%s8375_s8 + $0x58] sm:$0xff] }
0x149c   : > { %6054 = vadd.xlane.f32.xlu0 %v6053_v38  ;;  %v6019_v42 = vpop.xlane.xlu0 %6018  ;;  %7758 = vmatprep.subr.bf16.mxu0 %v6263_v0  ;;  %v6264_v14 = vpack.c.bf16 %v6250_v25, %v6249_v43 }
0x149d   : > { %v9597_v46 = vsub.f32 %v9558_v57, %v6032_v40  ;;  %v6033_v22 = vmul.f32 0.03125, %v6019_v42  ;;  %v6056_v33 = vsel %vm757_vm1, %v6046_v44, 0.0  ;;  %v6047_v17 = vmul.f32 %v9591_v47, %v9591_v47 }
0x149e   : > { %6057 = vadd.xlane.f32.xlu1 %v6056_v33  ;;  %v6022_v58 = vpop.xlane.xlu1 %6021  ;;  %7759 = vmatpush3.bf16.msra.mxu0 %v6263_v0 }
0x149f   : > { %v9603_v45 = vsub.f32 %v9564_v9, %v6033_v22  ;;  %v6034_v30 = vmul.f32 0.03125, %v6022_v58  ;;  %v6059_v21 = vsel %vm757_vm1, %v6047_v17, 0.0  ;;  %v6048_v24 = vmul.f32 %v9597_v46, %v9597_v46  ;;  %7760 = vmatprep.subr.bf16.mxu0 %v6264_v14 }
0x14a0   : > { %6060 = vadd.xlane.f32.xlu0 %v6059_v21  ;;  %v6025_v63 = vpop.xlane.xlu0 %6024 }
0x14a1   : > { %v9609_v35 = vsub.f32 %v9570_v26, %v6034_v30  ;;  %v6035_v5 = vmul.f32 0.03125, %v6025_v63  ;;  %v6062_v18 = vsel %vm757_vm1, %v6048_v24, 0.0  ;;  %v6049_v19 = vmul.f32 %v9603_v45, %v9603_v45 }
0x14a2   : > { %6063 = vadd.xlane.f32.xlu1 %v6062_v18  ;;  %v6028_v4 = vpop.xlane.xlu1 %6027  ;;  %7761 = vmatpush3.bf16.msra.mxu0 %v6264_v14 }
0x14a3   : > { %v9615_v12 = vsub.f32 %v9568_v55, %v6035_v5  ;;  %v6036_v6 = vmul.f32 0.03125, %v6028_v4  ;;  %v6065_v39 = vsel %vm757_vm1, %v6049_v19, 0.0  ;;  %v6050_v50 = vmul.f32 %v9609_v35, %v9609_v35 }
0x14a4   : > { %6066 = vadd.xlane.f32.xlu0 %v6065_v39 }
0x14a5   : > { %v9621_v41 = vsub.f32 %v9574_v31, %v6036_v6  ;;  %v6068_v54 = vsel %vm757_vm1, %v6050_v50, 0.0  ;;  %v6051_v8 = vmul.f32 %v9615_v12, %v9615_v12 }
0x14a6   : > { %6069 = vadd.xlane.f32.xlu1 %v6068_v54 }
0x14a7   : > { %v6071_v2 = vsel %vm757_vm1, %v6051_v8, 0.0  ;;  %v6052_v1 = vmul.f32 %v9621_v41, %v9621_v41 }
0x14a8   : > { %6072 = vadd.xlane.f32.xlu0 %v6071_v2 }
0x14a9   : > { %v6074_v23 = vsel %vm757_vm1, %v6052_v1, 0.0  ;;  %v6790_v1 = vld [vmem:[%s9849_s25] ss:$0 sm:$0xff] }
0x14aa   : > { %6075 = vadd.xlane.f32.xlu1 %v6074_v23 }
0x1529   : > { %v6055_v40 = vpop.xlane.xlu0 %6054 }
0x152a   : > { %v6077_v38 = vmul.f32 0.03125, %v6055_v40 }
0x152b   : > { %v6058_v44 = vpop.xlane.xlu1 %6057 }
0x152c   : > { %v6085_v42 = vadd.f32 1e-05, %v6077_v38  ;;  %v6078_v22 = vmul.f32 0.03125, %v6058_v44 }
0x152d   : > { %v6061_v33 = vpop.xlane.xlu0 %6060 }
0x152e   : > { %8029 = vrsqrt.f32 %v6085_v42  ;;  %v6086_v17 = vadd.f32 1e-05, %v6078_v22  ;;  %v6079_v58 = vmul.f32 0.03125, %v6061_v33 }
0x152f   : > { %v6064_v30 = vpop.xlane.xlu1 %6063 }
0x1530   : > { %8031 = vrsqrt.f32 %v6086_v17  ;;  %v6087_v21 = vadd.f32 1e-05, %v6079_v58  ;;  %v6080_v24 = vmul.f32 0.03125, %v6064_v30  ;;  %v6251_v58 = vld [vmem:[%s8375_s8 + $0x60] sm:$0xff]  ;;  %v6252_v30 = vld [vmem:[%s8375_s8 + $0x68] sm:$0xff] }
0x1531   : > { %v6067_v63 = vpop.xlane.xlu0 %6066 }
0x1532   : > { %8033 = vrsqrt.f32 %v6087_v21  ;;  %v6088_v5 = vadd.f32 1e-05, %v6080_v24  ;;  %v6081_v18 = vmul.f32 0.03125, %v6067_v63  ;;  %v6253_v21 = vld [vmem:[%s8375_s8 + $0x70] sm:$0xff]  ;;  %v6254_v24 = vld [vmem:[%s8375_s8 + $0x78] sm:$0xff] }
0x1533   : > { %v6070_v19 = vpop.xlane.xlu1 %6069  ;;  %v6266_v63 = vpack.c.bf16 %v6254_v24, %v6253_v21 }
0x1534   : > { %8035 = vrsqrt.f32 %v6088_v5  ;;  %v6089_v4 = vadd.f32 1e-05, %v6081_v18  ;;  %v6082_v6 = vmul.f32 0.03125, %v6070_v19  ;;  %v6792_v5 = vld [vmem:[%s700_s29] ss:$0 sm:$0xff] }
0x1535   : > { %v6073_v39 = vpop.xlane.xlu0 %6072 }
0x1536   : > { %8037 = vrsqrt.f32 %v6089_v4  ;;  %v6090_v50 = vadd.f32 1e-05, %v6082_v6  ;;  %v6083_v54 = vmul.f32 0.03125, %v6073_v39 }
0x1537   : > { %v6076_v8 = vpop.xlane.xlu1 %6075 }
0x1538   : > { %v8030_v2 = vpop.eup %8029  ;;  %8039 = vrsqrt.f32 %v6090_v50  ;;  %v6091_v23 = vadd.f32 1e-05, %v6083_v54  ;;  %v6084_v49 = vmul.f32 0.03125, %v6076_v8 }
0x1539   : > { %v6101_v29 = vmul.f32 %v8030_v2, %v9583_v13 }
0x153a   : > { %v8032_v27 = vpop.eup %8031  ;;  %8041 = vrsqrt.f32 %v6091_v23  ;;  %v6092_v34 = vadd.f32 1e-05, %v6084_v49 }
0x153b   : > { %v6102_v62 = vmul.f32 %v8032_v27, %v9586_v15  ;;  %v6115_v53 = vmul.f32 %v6790_v1, %v6101_v29 }
0x153c   : > { %v8034_v61 = vpop.eup %8033  ;;  %8043 = vrsqrt.f32 %v6092_v34 }
0x153d   : > { %v6103_v7 = vmul.f32 %v8034_v61, %v9591_v47  ;;  %v6116_v52 = vmul.f32 %v6790_v1, %v6102_v62  ;;  %v6129_v51 = vadd.f32 %v6791_v32, %v6115_v53 }
0x153e   : > { %v8036_v16 = vpop.eup %8035 }
0x153f   : > { %v6117_v3 = vmul.f32 %v6790_v1, %v6103_v7  ;;  %v6104_v13 = vmul.f32 %v8036_v16, %v9597_v46  ;;  %v6130_v11 = vadd.f32 %v6791_v32, %v6116_v52 }
0x1540   : > { %v8038_v37 = vpop.eup %8037 }
0x1541   : > { %v6118_v20 = vmul.f32 %v6790_v1, %v6104_v13  ;;  %v6105_v15 = vmul.f32 %v8038_v37, %v9603_v45  ;;  %v6141_v56 = vpack.c.bf16 %v6130_v11, %v6129_v51  ;;  %v6131_v10 = vadd.f32 %v6791_v32, %v6117_v3 }
0x1542   : > { %v8040_v60 = vpop.eup %8039 }
0x1543   : > { %v6132_v48 = vadd.f32 %v6791_v32, %v6118_v20  ;;  %v6106_v0 = vmul.f32 %v8040_v60, %v9609_v35  ;;  %7742 = vmatprep.mubr.msk.bf16.mxu1 %vm757_vm1, %v6141_v56  ;;  %v6119_v47 = vmul.f32 %v6790_v1, %v6105_v15  ;;  %v6797_v15 = vld [vmem:[%s708_s22] ss:$0 sm:$0xff] }
0x1544   : > { %v8042_v43 = vpop.eup %8041 }
0x1545   : > { %v6107_v25 = vmul.f32 %v8042_v43, %v9615_v12  ;;  %v6142_v46 = vpack.c.bf16 %v6132_v48, %v6131_v10  ;;  %v6120_v14 = vmul.f32 %v6790_v1, %v6106_v0  ;;  %v6133_v45 = vadd.f32 %v6791_v32, %v6119_v47 }
0x1546   : > { %v8044_v40 = vpop.eup %8043 }
0x1547   : > { %v6108_v38 = vmul.f32 %v8044_v40, %v9621_v41  ;;  %7743 = vmatmul.mubr.msk.bf16.vlgmr.msra.gmra.mrb[192].mxu1 %vm757_vm1, %v6142_v46  ;;  %v6134_v44 = vadd.f32 %v6791_v32, %v6120_v14  ;;  %v6121_v35 = vmul.f32 %v6790_v1, %v6107_v25  ;;  %v6265_v41 = vpack.c.bf16 %v6252_v30, %v6251_v58 }
0x1549   : > { %v6143_v42 = vpack.c.bf16 %v6134_v44, %v6133_v45  ;;  %v6122_v22 = vmul.f32 %v6790_v1, %v6108_v38  ;;  %v6135_v12 = vadd.f32 %v6791_v32, %v6121_v35  ;;  %7762 = vmatprep.subr.bf16.mxu0 %v6265_v41 }
0x154a   : > { %7763 = vmatpush3.bf16.msra.mxu0 %v6265_v41 }
0x154b   : > { %7746 = vmatprep.mubr.msk.bf16.mxu1 %vm757_vm1, %v6143_v42  ;;  %v6136_v33 = vadd.f32 %v6791_v32, %v6122_v22  ;;  %7764 = vmatprep.subr.bf16.mxu0 %v6266_v63 }
0x154d   : > { %v6144_v17 = vpack.c.bf16 %v6136_v33, %v6135_v12 }
0x154e   : > { %7765 = vmatpush3.bf16.msra.mxu0 %v6266_v63 }
0x154f   : > { %7747 = vmatmul.mubr.msk.bf16.gmra.mrb[196].mxu1 %vm757_vm1, %v6144_v17 }
0x161a   : > { %v7744_v18 = vpop.f32.mrb[192].mxu1 }
0x161b   : > { %v6209_v19 = vadd.f32 %v7744_v18, %v6792_v5  ;;  %v6200_v4 = vpop.f32.mrb[193].mxu1 }
0x161c   : > { %v6201_v6 = vadd.f32 %v6792_v5, %v6200_v4  ;;  %v7745_v39 = vpop.f32.mrb[194].mxu1 }
0x161d   : > { %v6212_v50 = vadd.f32 %v7745_v39, %v6792_v5  ;;  %v6203_v54 = vpop.f32.mrb[195].mxu1  ;;  %v6233_v2 = vmax.f32 %v6209_v19, 0.0 }
0x161e   : > { %v6204_v8 = vadd.f32 %v6792_v5, %v6203_v54  ;;  %v6231_v23 = vmax.f32 %v6201_v6, 0.0 }
0x161f   : > { %v6234_v1 = vmax.f32 %v6212_v50, 0.0 }
0x1620   : > { %v6232_v49 = vmax.f32 %v6204_v8, 0.0 }
0x1621   : > { %v6256_v29 = vpack.c.bf16 %v6234_v1, %v6233_v2 }
0x1622   : > { %v6255_v27 = vpack.c.bf16 %v6232_v49, %v6231_v23  ;;  %v7748_v34 = vpop.f32.mrb[196].mxu1 }
0x1623   : > { %v6225_v62 = vadd.f32 %v7748_v34, %v6792_v5  ;;  %v6216_v53 = vpop.f32.mrb[197].mxu1 }
0x1624   : > { %v6217_v61 = vadd.f32 %v6792_v5, %v6216_v53  ;;  %v7749_v32 = vpop.f32.mrb[198].mxu1  ;;  %7766 = vmatprep.mubr.bf16.mxu0 %v6255_v27 }
0x1625   : > { %v6228_v7 = vadd.f32 %v7749_v32, %v6792_v5  ;;  %v6219_v52 = vpop.f32.mrb[199].mxu1  ;;  %7767 = vmatmul.mubr.bf16.vlgmr.msra.gmra.mrb[208].mxu0 %v6256_v29  ;;  %v6237_v3 = vmax.f32 %v6225_v62, 0.0 }
0x1626   : > { %v6220_v16 = vadd.f32 %v6792_v5, %v6219_v52  ;;  %v6235_v51 = vmax.f32 %v6217_v61, 0.0 }
0x1627   : > { %v6238_v13 = vmax.f32 %v6228_v7, 0.0 }
0x1628   : > { %v6236_v11 = vmax.f32 %v6220_v16, 0.0 }
0x1629   : > { %v6258_v37 = vpack.c.bf16 %v6238_v13, %v6237_v3 }
0x162a   : > { %v6257_v20 = vpack.c.bf16 %v6236_v11, %v6235_v51 }
0x162c   : > { %7770 = vmatprep.mubr.bf16.mxu0 %v6257_v20 }
0x162d   : > { %7771 = vmatmul.mubr.bf16.gmra.mrb[212].mxu0 %v6258_v37 }
0x16f8   : > { %v7768_v56 = vpop.f32.mrb[208].mxu0 }
0x16f9   : > { %v6317_v60 = vadd.f32 %v7768_v56, %v6797_v15  ;;  %v6308_v10 = vpop.f32.mrb[209].mxu0 }
0x16fa   : > { %v6309_v48 = vadd.f32 %v6797_v15, %v6308_v10  ;;  %v7769_v0 = vpop.f32.mrb[210].mxu0 }
0x16fb   : > { %v6341_v47 = vadd.f32 %v6317_v60, %v9552_v36  ;;  %v6320_v43 = vadd.f32 %v7769_v0, %v6797_v15  ;;  %v6311_v25 = vpop.f32.mrb[211].mxu0 }
0x16fc   : > { %v6339_v46 = vadd.f32 %v6309_v48, %v9550_v59  ;;  %v6312_v14 = vadd.f32 %v6797_v15, %v6311_v25 }
0x16fd   : > { %6349 = vst.msk [vmem:[#allocation2 + $0x10] sm:$0xff] %vm757_vm1, %v6341_v47  ;;  %v6342_v40 = vadd.f32 %v6320_v43, %v9558_v57  ;;  %6361 = vst.msk [vmem:[%s8381_s0 + $0x10] sm:$0xff] (!%p6798_p1), %vm757_vm1, %v6341_v47 }
0x16fe   : > { %6347 = vst.msk [vmem:[#allocation2] sm:$0xff] %vm757_vm1, %v6339_v46  ;;  %v6340_v38 = vadd.f32 %v6312_v14, %v9554_v28  ;;  %6359 = vst.msk [vmem:[%s8381_s0] sm:$0xff] (!%p6798_p1), %vm757_vm1, %v6339_v46 }
0x16ff   : > { %6350 = vst.msk [vmem:[#allocation2 + $0x18] sm:$0xff] %vm757_vm1, %v6342_v40  ;;  %6362 = vst.msk [vmem:[%s8381_s0 + $0x18] sm:$0xff] (!%p6798_p1), %vm757_vm1, %v6342_v40 }
0x1700   : > { %6348 = vst.msk [vmem:[#allocation2 + $0x8] sm:$0xff] %vm757_vm1, %v6340_v38  ;;  %v7772_v45 = vpop.f32.mrb[212].mxu0  ;;  %6360 = vst.msk [vmem:[%s8381_s0 + $0x8] sm:$0xff] (!%p6798_p1), %vm757_vm1, %v6340_v38 }
0x1701   : > { %v6333_v44 = vadd.f32 %v7772_v45, %v6797_v15  ;;  %v6324_v36 = vpop.f32.mrb[213].mxu0 }
0x1702   : > { %v6325_v35 = vadd.f32 %v6797_v15, %v6324_v36  ;;  %v7773_v42 = vpop.f32.mrb[214].mxu0  ;;  %6358 = sbr.rel (%p6798_p1) target bundleno = 5897 (0x1709), region = 88 }
0x1703   : > { %v6345_v59 = vadd.f32 %v6333_v44, %v9568_v55  ;;  %v6336_v22 = vadd.f32 %v7773_v42, %v6797_v15  ;;  %v6327_v12 = vpop.f32.mrb[215].mxu0 }
0x1704   : > { %v6343_v33 = vadd.f32 %v6325_v35, %v9564_v9  ;;  %v6328_v57 = vadd.f32 %v6797_v15, %v6327_v12 }
0x1705   : > { %6353 = vst.msk [vmem:[#allocation2 + $0x30] sm:$0xff] %vm757_vm1, %v6345_v59  ;;  %v6346_v28 = vadd.f32 %v6336_v22, %v9574_v31  ;;  %6365 = vst.msk [vmem:[%s8381_s0 + $0x30] sm:$0xff] (!%p6798_p1), %vm757_vm1, %v6345_v59 }
0x1706   : > { %6351 = vst.msk [vmem:[#allocation2 + $0x20] sm:$0xff] %vm757_vm1, %v6343_v33  ;;  %v6344_v17 = vadd.f32 %v6328_v57, %v9570_v26  ;;  %6363 = vst.msk [vmem:[%s8381_s0 + $0x20] sm:$0xff] (!%p6798_p1), %vm757_vm1, %v6343_v33 }
0x1707   : > { %6354 = vst.msk [vmem:[#allocation2 + $0x38] sm:$0xff] %vm757_vm1, %v6346_v28  ;;  %6366 = vst.msk [vmem:[%s8381_s0 + $0x38] sm:$0xff] (!%p6798_p1), %vm757_vm1, %v6346_v28 }
0x1708   : > { %6352 = vst.msk [vmem:[#allocation2 + $0x28] sm:$0xff] %vm757_vm1, %v6344_v17  ;;  %6364 = vst.msk [vmem:[%s8381_s0 + $0x28] sm:$0xff] (!%p6798_p1), %vm757_vm1, %v6344_v17 }
0x1709 PF: > { %s9851_s22 = sld [smem:[#allocation10_spill]]  ;;  %s9852_s24 = sld [smem:[#allocation7_spill]] }
0x170a   : > { %s9854_s1 = sld [smem:[#allocation27_spill]]  ;;  %s6381_s7 = sshll.u32 %s8381_s0, 4  ;;  %s9722_s7 = int_to_ptr.vmem [resolvable:$true] %s6381_s7 }
0x170b   : > { %s8061_s28 = scalar_lea.vmem %s9722_s7, 1024  ;;  %s8159_s25 = smov [#allocation3]  }
0x170c   : > { %p8062_p2 = scmp.ne.s32.totalorder %s9722_s7, %s8061_s28  ;;  %s8065_s17 = sshll.u32 %s8159_s25, 4  ;;  %s8066_s17 = int_to_ptr.vmem [resolvable:$false] %s8065_s17 }
0x170d   : > { %s8067_s5 = scalar_lea.vmem %s8066_s17, 2048  ;;  %p8068_p6 = scmp.lt.s32.totalorder %s9722_s7, %s8066_s17 }
0x170e   : > { %p8063_p4 = pnand %p8062_p2, %p8291_p3  ;;  %p8069_p7 = scmp.lt.s32.totalorder %s8067_s5, %s8061_s28 }
0x170f   : > { %s6811_s20 = sshll.u32 %s9851_s22, 10  ;;  %s9855_s19 = sand.u32 1, %s9852_s24  }
0x1710   : > { %s9719_s6 = scalar_lea.hbm %s9854_s1, %s6811_s20  ;;  %s9726_s2 = scalar_lea.sflag [#allocation4], %s9855_s19 }
0x1711   : > { %p8064_p5 = pneg %p8063_p4  ;;  %p8070_p8 = por %p8069_p7, %p8068_p6 }
0x1713   : > { %p8071_p10 = pnand %p8070_p8, %p8064_p5 }
0x1715   : > { %8074 = shalt.err (!%p8071_p10)
}
0x1716   : > { %s8075_s0 = scalar_lea.hbm %s9719_s6, 1024  ;;  %s8079_s8 = scalar_lea.hbm %s9854_s1, 2048 }
0x1717   : > { %p8076_p11 = scmp.ne.s32.totalorder %s9719_s6, %s8075_s0  ;;  %p8080_p0 = scmp.lt.u32.totalorder %s9719_s6, %s9854_s1 }
0x1718   : > { %p8081_p1 = scmp.lt.u32.totalorder %s8079_s8, %s8075_s0  ;;  %p8083_p4 = scmp.lt.u32.totalorder %s8075_s0, %s9719_s6 }
0x1719   : > { %p8077_p12 = pnand %p8076_p11, %p8291_p3 }
0x171a   : > { %p8082_p2 = por %p8081_p1, %p8080_p0 }
0x171b   : > { %p8078_p13 = pneg %p8077_p12 }
0x171c   : > { %p8084_p5 = por %p8083_p4, %p8082_p2 }
0x171e   : > { %p8085_p6 = pnand %p8084_p5, %p8078_p13 }
0x1720   : > { %8088 = shalt.err (!%p8085_p6)
}
0x1721   : > { %s8160_s22 = smov 128   ;;  %s8161_s24 = smov 8  }
0x1722   : > { %7810 = dma.vmem_to_hbm [thread:$0]  (%p8291_p3), %s9722_s7, 1024, %s9719_s6, %s9726_s2, %s8160_s22, %s8160_s22, %s8161_s24  }
0x1723 PF: > { %s9856_s20 = sld [smem:[#allocation13_spill]]  ;;  %s9857_s15 = sld [smem:[#allocation6_spill]] }
0x1729   : > { %p7816_p7 = scmp.ge.s32.totalorder %s9856_s20, 2  ;;  %s6396_s19 = sand.u32 1, %s9857_s15  }
0x172a   : > { %s6397_s28 = scalar_lea.sflag [#allocation4], %s6396_s19 }
0x172b   : > { %p7813_p8 = pnand %p7816_p7, %p8301_p9 }
0x172d   : > { %8122 = dma.done.wait (!%p7813_p8), %s6397_s28, 1024  }
0x172e   : > { %8124 = vsyncadd (!%p7813_p8), %s6397_s28, 4294966272  ;;  %s28_s25 = sadd.s32 1, %s9856_s20   ;;  %s9859_s18 = sld [smem:[#allocation7_spill]] }
0x172f   : > { %p25_p10 = scmp.ge.s32.totalorder %s28_s25, 6   ;;  %s9860_s19 = sld [smem:[#allocation8_spill]] }
0x1730   : > { %s9861_s20 = sld [smem:[#allocation18_spill]]  ;;  %s9862_s21 = sld [smem:[#allocation11_spill]] }
0x1731   : > { %s9863_s22 = sld [smem:[#allocation12_spill]]  ;;  %s9864_s23 = sld [smem:[#allocation14_spill]] }
0x1732   : > { %s9865_s24 = sld [smem:[#allocation16_spill]]  ;;  %27 = sbr.rel (!%p25_p10) target bundleno = 14 (0xe), region = 171 }
0x1739   :  { %6402 = vsyncpa [#allocation4], 1 }
0x173a   :  { %6404 = vsyncpa [#allocation4 + $0x1], 1 }

</bundles_post_ra>
